<compile_context>
chip_gen: v7x
topology: tpu7x:2x2x1
jax: 0.10.0
libtpu: 0.0.40
codegen_flags: <defaults>
</compile_context>

<pallas_src>
import jax
import jax.numpy as jnp
from jax.experimental import pallas as pl
from jax.experimental.pallas import tpu as pltpu

KERNEL = (15, 15)
D = KERNEL[0] * KERNEL[1]        # 225 patch dimensions
STRIDE = 2
PADDING = 10
INTERP = 128                     # module hardcodes interpolate to (128, 128)
N_MEM = 128                      # synthetic memory-bank size (patterns stored via .add())
TILE_L = 2304                    # query rows per grid step -> 2 even grid steps for L=4489
                                 # (sweep {1152, 2304, 4608} on real HW to confirm)


# ---------------------------------------------------------------------------
# Pallas kernel: nearest-neighbour index search (flat L2)
# ---------------------------------------------------------------------------
def _nn_index_kernel(q_ref, m_ref, half_mnorm_ref, idx_ref):
    q = q_ref[...]                                    # (TILE_L, D)  bf16
    m = m_ref[...]                                    # (N_MEM, D)   bf16
    half_mnorm = half_mnorm_ref[...]                  # (N_MEM, 1)   f32

    # squared-L2 proxy, transposed so queries lie along lanes:
    #   scores[n, l] = 0.5*||m_n||^2 - <m_n, q_l>     (||q||^2 constant per query)
    dots = jax.lax.dot_general(
        m, q, (((1,), (1,)), ((), ())),
        preferred_element_type=jnp.float32)           # (N_MEM, TILE_L) f32
    scores = half_mnorm - dots

    # Single-pass argmin with lowest-index tie-break:
    #   1) bitcast f32 score -> int32 and make it order-preserving for signed
    #      compares (flip the low 31 bits when the sign bit is set),
    #   2) steal the low 7 mantissa bits for the memory index (N_MEM=128, well
    #      below bf16 input precision),
    #   3) one jnp.min over the memory axis yields value-argmin; extract index.
    bits = pltpu.bitcast(scores, jnp.int32)
    key = jnp.where(bits < 0, bits ^ jnp.int32(0x7FFFFFFF), bits)
    mem_iota = jax.lax.broadcasted_iota(jnp.int32, scores.shape, 0)
    packed = (key & jnp.int32(~0x7F)) | mem_iota
    best = jnp.min(packed, axis=0, keepdims=True)     # (1, TILE_L) int32
    idx_ref[...] = (best & jnp.int32(0x7F))[None, :, :]     # (1, 1, TILE_L)


def nn_search_indices(q_pad, memory):
    """q_pad (L_pad, 225) bf16, memory (N_MEM, 225) f32 -> nearest memory index (L_pad,) int32."""
    l_pad = q_pad.shape[0]
    num_steps = l_pad // TILE_L

    m_bf = memory.astype(jnp.bfloat16)
    # Norm from the bf16-cast memory, so scores use one consistent precision.
    half_mnorm = 0.5 * jnp.sum(
        jnp.square(m_bf.astype(jnp.float32)), axis=-1, keepdims=True)   # (N_MEM, 1) f32

    idx = pl.pallas_call(
        _nn_index_kernel,
        out_shape=jax.ShapeDtypeStruct((num_steps, 1, TILE_L), jnp.int32),
        grid_spec=pltpu.PrefetchScalarGridSpec(
            num_scalar_prefetch=0,
            grid=(num_steps,),
            in_specs=[
                pl.BlockSpec((TILE_L, D), lambda i: (i, 0)),
                pl.BlockSpec((N_MEM, D), lambda i: (0, 0)),
                pl.BlockSpec((N_MEM, 1), lambda i: (0, 0)),
            ],
            out_specs=pl.BlockSpec((1, 1, TILE_L), lambda i: (i, 0, 0)),
        ),
        compiler_params=pltpu.CompilerParams(
            dimension_semantics=("parallel",)),
    )(q_pad, m_bf, half_mnorm)

    return idx.reshape(l_pad)


# ---------------------------------------------------------------------------
# JAX glue reproducing the PyTorch forward (interpolate / unfold / fold)
# ---------------------------------------------------------------------------
def _interp_nearest(img, out_hw):
    # F.interpolate(mode='nearest') semantics: src = floor(dst * in/out)
    in_h, in_w = img.shape
    oh, ow = out_hw
    ih = jnp.minimum(jnp.floor(jnp.arange(oh) * (in_h / oh)).astype(jnp.int32), in_h - 1)
    iw = jnp.minimum(jnp.floor(jnp.arange(ow) * (in_w / ow)).astype(jnp.int32), in_w - 1)
    return img[ih][:, iw]


def _n_patches():
    return (INTERP + 2 * PADDING - KERNEL[0]) // STRIDE + 1       # 67


def _patch_indices():
    n = _n_patches()
    starts = jnp.arange(n) * STRIDE
    rows = starts[:, None] + jnp.arange(KERNEL[0])[None, :]    # (n, 15)
    cols = starts[:, None] + jnp.arange(KERNEL[1])[None, :]    # (n, 15)
    return n, rows, cols


def _unfold_queries_bf16(img, l_pad):
    """img (128,128) f32 -> (l_pad, 225) bf16 query slab, matching F.unfold
    ordering (kh*15+kw).  Padded tail rows replicate the last patch (their
    kernel result is discarded), so no separate cast/pad passes over the slab."""
    padded = jnp.pad(img, PADDING).astype(jnp.bfloat16)           # (148,148) bf16
    n = _n_patches()
    L = n * n
    pidx = jnp.minimum(jnp.arange(l_pad), L - 1)                  # padded rows -> last patch
    pr = pidx // n
    pc = pidx % n
    rows = pr[:, None] * STRIDE + jnp.arange(KERNEL[0])[None, :]  # (l_pad, 15)
    cols = pc[:, None] * STRIDE + jnp.arange(KERNEL[1])[None, :]  # (l_pad, 15)
    patches = padded[rows[:, :, None], cols[:, None, :]]          # (l_pad, 15, 15) bf16
    return patches.reshape(l_pad, D), n, L


def _fold(patches, n):
    # overlap-add, matching F.fold (no normalization by patch counts)
    _, rows, cols = _patch_indices()
    acc = jnp.zeros((INTERP + 2 * PADDING, INTERP + 2 * PADDING), jnp.float32)
    acc = acc.at[rows[:, None, :, None], cols[None, :, None, :]].add(
        patches.reshape(n, n, KERNEL[0], KERNEL[1]))
    return acc[PADDING:PADDING + INTERP, PADDING:PADDING + INTERP]


def neural_mem_forward(image, memory, output_size=(64, 64)):
    img128 = _interp_nearest(image.astype(jnp.float32), (INTERP, INTERP))
    n = _n_patches()
    L = n * n                                      # 4489 patches
    l_pad = pl.cdiv(L, TILE_L) * TILE_L            # 4608 (2 grid steps)
    # TODO(synk): an in-kernel im2col (building query blocks in VMEM from the
    # 148x148 padded image) would cut kernel HBM reads ~20x but needs stride-2
    # lane gathers; kept as a wrapper-side fused gather instead.
    q_pad, n, L = _unfold_queries_bf16(img128, l_pad)   # (4608, 225) bf16
    idx = nn_search_indices(q_pad, memory)[:L]     # (4489,) int32 nearest-pattern ids
    recon = memory[idx]                            # exact f32 reconstruct (FAISS .reconstruct)
    folded = _fold(recon, n)                       # (128, 128)
    out = _interp_nearest(folded, output_size)     # (64, 64)
    # NOTE: divides by zero (NaN) if folded image is all zeros -- matches the PyTorch module.
    return out / jnp.max(out)


if __name__ == "__main__":
    key = jax.random.PRNGKey(0)
    k_img, k_mem = jax.random.split(key)
    # small 2D input image (the module interpolates it up to 128x128 internally)
    image = jax.random.uniform(k_img, (16, 16), dtype=jnp.float32)
    # deterministic synthetic memory bank (stands in for patterns added via .add())
    # TODO(synk): FAISS IVF training / coarse quantization has no Pallas equivalent;
    # the search is exact flat-L2 over this synthetic bank.
    memory = jax.random.uniform(k_mem, (N_MEM, D), dtype=jnp.float32)

    out = jax.jit(neural_mem_forward)(image, memory)
    jax.block_until_ready(out)
    assert out.shape == (64, 64) and out.dtype == jnp.float32
    print("KERNEL_OK")
</pallas_src>

<mosaic_0001>
module attributes {stable_mosaic.version = 11 : i64} {
  func.func @_nn_index_kernel(%arg0: i32, %arg1: memref<2304x225xbf16, #tpu.memory_space<vmem>>, %arg2: memref<128x225xbf16, #tpu.memory_space<vmem>>, %arg3: memref<128x1xf32, #tpu.memory_space<vmem>>, %arg4: memref<1x1x2304xi32, #tpu.memory_space<vmem>>) attributes {dimension_semantics = [#tpu.dimension_semantics<parallel>], iteration_bounds = array<i64: 2>, scalar_prefetch = 0 : i64, scratch_operands = 0 : i64, tpu.core_type = #tpu.core_type<tc>, window_params = [{transform_indices = @transform_0, window_bounds = array<i64: 2304, 225>}, {pipeline_mode = #tpu.pipeline_mode<synchronous>, transform_indices = @transform_1, window_bounds = array<i64: 128, 225>}, {pipeline_mode = #tpu.pipeline_mode<synchronous>, transform_indices = @transform_2, window_bounds = array<i64: 128, 1>}, {transform_indices = @transform_3, window_bounds = array<i64: 1, 1, 2304>}]} {
    %c0 = arith.constant 0 : index
    %c0_0 = arith.constant 0 : index
    %0 = vector.load %arg1[%c0, %c0_0] : memref<2304x225xbf16, #tpu.memory_space<vmem>>, vector<2304x225xbf16>
    %c0_1 = arith.constant 0 : index
    %c0_2 = arith.constant 0 : index
    %1 = vector.load %arg2[%c0_1, %c0_2] : memref<128x225xbf16, #tpu.memory_space<vmem>>, vector<128x225xbf16>
    %c0_3 = arith.constant 0 : index
    %c0_4 = arith.constant 0 : index
    %2 = vector.load %arg3[%c0_3, %c0_4] : memref<128x1xf32, #tpu.memory_space<vmem>>, vector<128x1xf32>
    %cst = arith.constant dense<0.000000e+00> : vector<128x2304xf32>
    %3 = tpu.matmul %1, %0, %cst {dimension_numbers = #tpu.dot_dimension_numbers<[1], [1], [0], [0], [0, 0, 1, 0], [], []>} : vector<128x225xbf16>, vector<2304x225xbf16>, vector<128x2304xf32> -> vector<128x2304xf32>
    %4 = vector.broadcast %2 : vector<128x1xf32> to vector<128x2304xf32>
    %5 = arith.subf %4, %3 : vector<128x2304xf32>
    %6 = tpu.bitcast %5 : vector<128x2304xf32> -> vector<128x2304xi32>
    %c0_i32 = arith.constant 0 : i32
    %7 = vector.broadcast %c0_i32 : i32 to vector<128x2304xi32>
    %8 = arith.cmpi slt, %6, %7 : vector<128x2304xi32>
    %c2147483647_i32 = arith.constant 2147483647 : i32
    %9 = vector.broadcast %c2147483647_i32 : i32 to vector<128x2304xi32>
    %10 = arith.xori %6, %9 : vector<128x2304xi32>
    %11 = arith.select %8, %10, %6 : vector<128x2304xi1>, vector<128x2304xi32>
    %12 = tpu.iota {dimensions = array<i32: 0>} : vector<128x2304xi32>
    %c-128_i32 = arith.constant -128 : i32
    %13 = vector.broadcast %c-128_i32 : i32 to vector<128x2304xi32>
    %14 = arith.andi %11, %13 : vector<128x2304xi32>
    %15 = arith.ori %14, %12 : vector<128x2304xi32>
    %cst_5 = arith.constant dense<2147483647> : vector<2304xi32>
    %16 = vector.multi_reduction <minsi>, %15, %cst_5 [0] : vector<128x2304xi32> to vector<2304xi32>
    %17 = vector.shape_cast %16 : vector<2304xi32> to vector<1x2304xi32>
    %c127_i32 = arith.constant 127 : i32
    %18 = vector.broadcast %c127_i32 : i32 to vector<1x2304xi32>
    %19 = arith.andi %17, %18 : vector<1x2304xi32>
    %20 = vector.shape_cast %19 : vector<1x2304xi32> to vector<1x1x2304xi32>
    %c0_6 = arith.constant 0 : index
    %c0_7 = arith.constant 0 : index
    %c0_8 = arith.constant 0 : index
    %21 = vector.load %arg4[%c0_6, %c0_7, %c0_8] : memref<1x1x2304xi32, #tpu.memory_space<vmem>>, vector<1x1x2304xi32>
    tpu.vector_store %arg4[%c0_6, %c0_7, %c0_8], %20 {strides = array<i32>} : memref<1x1x2304xi32, #tpu.memory_space<vmem>>, vector<1x1x2304xi32>,
    return
  }
  func.func @transform_0(%arg0: i32) -> (i32, i32) {
    %c0_i32 = arith.constant 0 : i32
    %c0_i32_0 = arith.constant 0 : i32
    return %arg0, %c0_i32 : i32, i32
  }
  func.func @transform_1(%arg0: i32) -> (i32, i32) {
    %c0_i32 = arith.constant 0 : i32
    %c0_i32_0 = arith.constant 0 : i32
    %c0_i32_1 = arith.constant 0 : i32
    return %c0_i32, %c0_i32_0 : i32, i32
  }
  func.func @transform_2(%arg0: i32) -> (i32, i32) {
    %c0_i32 = arith.constant 0 : i32
    %c0_i32_0 = arith.constant 0 : i32
    %c0_i32_1 = arith.constant 0 : i32
    return %c0_i32, %c0_i32_0 : i32, i32
  }
  func.func @transform_3(%arg0: i32) -> (i32, i32, i32) {
    %c0_i32 = arith.constant 0 : i32
    %c0_i32_0 = arith.constant 0 : i32
    %c0_i32_1 = arith.constant 0 : i32
    return %arg0, %c0_i32, %c0_i32_0 : i32, i32, i32
  }
}

</mosaic_0001>

<bundles_post_ra>
// kernel: neural_mem_forward.1
= control target key start
LH: loop header
LB: loop body
LE: loop exit
PB: predicated region body
PF: predicated region fallthrough
CT: control target
= control target key end

     0   :  { %s7450_s12 = smov 0   ;;  %s9987_s0 = inlined_call_operand.vmem [shape: bf16[4608,225], index: 0, kind: input, shape index: {}]   ;;  %s9988_s1 = inlined_call_operand.vmem [shape: bf16[128,225], index: 1, kind: input, shape index: {}]   ;;  %s9989_s2 = inlined_call_operand.vmem [shape: f32[128,1], index: 2, kind: input, shape index: {}]   ;;  %s9990_s3 = inlined_call_operand.vmem [shape: s32[2,1,2304], index: 3, kind: output, shape index: {}]  }
   0x1 LB: > { %s7456_s13 = sadd.s32 4294967295, %s7426_s12   ;;  %p6346_p0 = scmp.ge.s32.totalorder %s7426_s12, 1  ;;  %s7426_s12 = sphi %s7450_s12, %s13_s12  }
   0x2   : > { %p139_p1 = scmp.lt.s32.totalorder %s7426_s12, 3 }
   0x4   : > { %p140_p2 = pnand %p6346_p0, %p139_p1 }
   0x6   : > { %143 = sbr.rel (%p140_p2) target bundleno = 1005 (0x3ed), region = 32 }
   0xd   : > { %s163_s14 = smul.u32 288, %s7456_s13  ;;  %v7013_v0 = vld [vmem:[%s9988_s1 + $0x4] ss:$8 sps:$4 sm:$0xff]   ;;  %vm1862_vm0 = vcmask 793600   ;;  %v7428_v45 = vmov 0   ;;  %v480_v54 = vld [vmem:[%s9989_s2 + $0x10] sm:$0xff] }
   0xe   : > { %6669 = vmatprep.mubr.msk.bf16.mxu0 %vm1862_vm0, %v7013_v0  ;;  %6693 = vmatprep.mubr.msk.bf16.mxu1 %vm1862_vm0, %v7013_v0  ;;  %v478_v48 = vld [vmem:[%s9989_s2] sm:$0xff]  ;;  %v479_v49 = vld [vmem:[%s9989_s2 + $0x8] sm:$0xff]  ;;  %v481_v55 = vld [vmem:[%s9989_s2 + $0x18] sm:$0xff]  ;;  %p170_p4 = scmp.lt.s32.totalorder %s7456_s13, 1 }
   0xf   : > { %p164_p3 = scmp.lt.s32.totalorder %s163_s14, 575  ;;  %6915 = vset.pattern.permute.xlu0 %v7428_v45  ;;  %6916 = vset.pattern.permute.xlu1 %v7428_v45  ;;  %v482_v60 = vld [vmem:[%s9989_s2 + $0x20] sm:$0xff]  ;;  %v483_v61 = vld [vmem:[%s9989_s2 + $0x28] sm:$0xff] }
  0x10   : > { %3338 = vperm.xlu0 %6915, %v478_v48   ;;  %3348 = vperm.xlu1 %6916, %v480_v54   ;;  %s10329_s13 = smov (!%p170_p4, %s7456_s13), 1 }
  0x11   : > { %s10327_s14 = smov (!%p164_p3, %s163_s14), 575  ;;  %s6904_s29 = smul.u32 18, %s10329_s13 }
  0x12   : > { %s6871_s17 = sshll.u32 %s10327_s14, 3 }
  0x13   : > { %s7469_s20 = scalar_lea.vmem %s9987_s0, %s6871_s17  ;;  %s9165_s30 = scalar_lea.vmem %s9990_s3, %s6904_s29 }
  0x14   : > { %v6917_v1 = vld [vmem:[%s7469_s20 + $0x4] ss:$8 sps:$4 sm:$0xff]   ;;  %v6921_v3 = vld [vmem:[%s7469_s20] ss:$8 sps:$4 sm:$0xff]   ;;  %v6923_v5 = vld [vmem:[%s7469_s20 + $0x14] ss:$8 sps:$4 sm:$0xff]   ;;  %3343 = vperm.xlu0 %6915, %v479_v49   ;;  %3353 = vperm.xlu1 %6916, %v481_v55  }
  0x15   : > { %v6919_v2 = vld [vmem:[%s7469_s20 + $0x104] ss:$8 sps:$4 sm:$0xff]   ;;  %6653 = vmatprep.subr.msk.bf16.mxu0 %vm1862_vm0, %v6917_v1  ;;  %v6922_v4 = vld [vmem:[%s7469_s20 + $0x100] ss:$8 sps:$4 sm:$0xff]   ;;  %v6925_v6 = vld [vmem:[%s7469_s20 + $0x114] ss:$8 sps:$4 sm:$0xff]  }
  0x16   : > { %6677 = vmatprep.subr.msk.bf16.mxu1 %vm1862_vm0, %v6919_v2  ;;  %2320 = vmatpush1.bf16.xpose.msra.mxu0 %v6921_v3  ;;  %v6927_v7 = vld [vmem:[%s7469_s20 + $0x10] ss:$8 sps:$4 sm:$0xff]   ;;  %v6929_v9 = vld [vmem:[%s7469_s20 + $0x24] ss:$8 sps:$4 sm:$0xff]   ;;  %v6933_v11 = vld [vmem:[%s7469_s20 + $0x20] ss:$8 sps:$4 sm:$0xff]  }
  0x17   : > { %2433 = vmatpush1.bf16.xpose.msra.mxu1 %v6922_v4  ;;  %6654 = vmatprep.subr.msk.bf16.mxu0 %vm1862_vm0, %v6923_v5  ;;  %v6928_v8 = vld [vmem:[%s7469_s20 + $0x110] ss:$8 sps:$4 sm:$0xff]   ;;  %v6931_v10 = vld [vmem:[%s7469_s20 + $0x124] ss:$8 sps:$4 sm:$0xff]   ;;  %v6934_v12 = vld [vmem:[%s7469_s20 + $0x120] ss:$8 sps:$4 sm:$0xff]  }
  0x18   : > { %6678 = vmatprep.subr.msk.bf16.mxu1 %vm1862_vm0, %v6925_v6  ;;  %v6935_v13 = vld [vmem:[%s7469_s20 + $0x34] ss:$8 sps:$4 sm:$0xff]   ;;  %v6939_v15 = vld [vmem:[%s7469_s20 + $0x30] ss:$8 sps:$4 sm:$0xff]   ;;  %v6941_v17 = vld [vmem:[%s7469_s20 + $0x44] ss:$8 sps:$4 sm:$0xff]   ;;  %3358 = vperm.xlu0 %6915, %v482_v60  }
  0x19   : > { %v6937_v14 = vld [vmem:[%s7469_s20 + $0x134] ss:$8 sps:$4 sm:$0xff]   ;;  %v6940_v16 = vld [vmem:[%s7469_s20 + $0x130] ss:$8 sps:$4 sm:$0xff]   ;;  %v6943_v18 = vld [vmem:[%s7469_s20 + $0x144] ss:$8 sps:$4 sm:$0xff]   ;;  %3363 = vperm.xlu1 %6916, %v483_v61  }
  0x1a   : > { %v6945_v19 = vld [vmem:[%s7469_s20 + $0x40] ss:$8 sps:$4 sm:$0xff]   ;;  %v6947_v21 = vld [vmem:[%s7469_s20 + $0x54] ss:$8 sps:$4 sm:$0xff]   ;;  %v6951_v23 = vld [vmem:[%s7469_s20 + $0x50] ss:$8 sps:$4 sm:$0xff]  }
  0x1b   : > { %v6946_v20 = vld [vmem:[%s7469_s20 + $0x140] ss:$8 sps:$4 sm:$0xff]   ;;  %v6949_v22 = vld [vmem:[%s7469_s20 + $0x154] ss:$8 sps:$4 sm:$0xff]   ;;  %v6952_v24 = vld [vmem:[%s7469_s20 + $0x150] ss:$8 sps:$4 sm:$0xff]  }
  0x1c   : > { %v6953_v25 = vld [vmem:[%s7469_s20 + $0x64] ss:$8 sps:$4 sm:$0xff]   ;;  %v6957_v27 = vld [vmem:[%s7469_s20 + $0x60] ss:$8 sps:$4 sm:$0xff]   ;;  %v6959_v29 = vld [vmem:[%s7469_s20 + $0x74] ss:$8 sps:$4 sm:$0xff]  }
  0x1d   : > { %v6955_v26 = vld [vmem:[%s7469_s20 + $0x164] ss:$8 sps:$4 sm:$0xff]   ;;  %v6958_v28 = vld [vmem:[%s7469_s20 + $0x160] ss:$8 sps:$4 sm:$0xff]   ;;  %v6961_v30 = vld [vmem:[%s7469_s20 + $0x174] ss:$8 sps:$4 sm:$0xff]  }
  0x1e   : > { %2322 = vmatpush1.bf16.xpose.msra.mxu0 %v6927_v7  ;;  %v6963_v31 = vld [vmem:[%s7469_s20 + $0x70] ss:$8 sps:$4 sm:$0xff]   ;;  %v6965_v33 = vld [vmem:[%s7469_s20 + $0x84] ss:$8 sps:$4 sm:$0xff]   ;;  %v6969_v35 = vld [vmem:[%s7469_s20 + $0x80] ss:$8 sps:$4 sm:$0xff]  }
  0x1f   : > { %2435 = vmatpush1.bf16.xpose.msra.mxu1 %v6928_v8  ;;  %6655 = vmatprep.subr.msk.bf16.mxu0 %vm1862_vm0, %v6929_v9  ;;  %v6964_v32 = vld [vmem:[%s7469_s20 + $0x170] ss:$8 sps:$4 sm:$0xff]   ;;  %v6967_v34 = vld [vmem:[%s7469_s20 + $0x184] ss:$8 sps:$4 sm:$0xff]   ;;  %v6970_v36 = vld [vmem:[%s7469_s20 + $0x180] ss:$8 sps:$4 sm:$0xff]  }
  0x20   : > { %6679 = vmatprep.subr.msk.bf16.mxu1 %vm1862_vm0, %v6931_v10  ;;  %v6971_v37 = vld [vmem:[%s7469_s20 + $0x94] ss:$8 sps:$4 sm:$0xff]   ;;  %v6975_v39 = vld [vmem:[%s7469_s20 + $0x90] ss:$8 sps:$4 sm:$0xff]   ;;  %v6977_v41 = vld [vmem:[%s7469_s20 + $0xa4] ss:$8 sps:$4 sm:$0xff]  }
  0x21   : > { %v6973_v38 = vld [vmem:[%s7469_s20 + $0x194] ss:$8 sps:$4 sm:$0xff]   ;;  %v6976_v40 = vld [vmem:[%s7469_s20 + $0x190] ss:$8 sps:$4 sm:$0xff]   ;;  %v6979_v42 = vld [vmem:[%s7469_s20 + $0x1a4] ss:$8 sps:$4 sm:$0xff]  }
  0x22   : > { %v6981_v43 = vld [vmem:[%s7469_s20 + $0xa0] ss:$8 sps:$4 sm:$0xff]   ;;  %v6983_v46 = vld [vmem:[%s7469_s20 + $0xb4] ss:$8 sps:$4 sm:$0xff]   ;;  %v6987_v50 = vld [vmem:[%s7469_s20 + $0xb0] ss:$8 sps:$4 sm:$0xff]  }
  0x23   : > { %v6982_v44 = vld [vmem:[%s7469_s20 + $0x1a0] ss:$8 sps:$4 sm:$0xff]   ;;  %v6985_v47 = vld [vmem:[%s7469_s20 + $0x1b4] ss:$8 sps:$4 sm:$0xff]   ;;  %v6988_v51 = vld [vmem:[%s7469_s20 + $0x1b0] ss:$8 sps:$4 sm:$0xff]  }
  0x24   : > { %v6989_v52 = vld [vmem:[%s7469_s20 + $0xc4] ss:$8 sps:$4 sm:$0xff]   ;;  %v6993_v56 = vld [vmem:[%s7469_s20 + $0xc0] ss:$8 sps:$4 sm:$0xff]   ;;  %v6995_v58 = vld [vmem:[%s7469_s20 + $0xd4] ss:$8 sps:$4 sm:$0xff]  }
  0x25   : > { %v6991_v53 = vld [vmem:[%s7469_s20 + $0x1c4] ss:$8 sps:$4 sm:$0xff]   ;;  %v6994_v57 = vld [vmem:[%s7469_s20 + $0x1c0] ss:$8 sps:$4 sm:$0xff]   ;;  %v6997_v59 = vld [vmem:[%s7469_s20 + $0x1d4] ss:$8 sps:$4 sm:$0xff]  }
  0x26   : > { %2324 = vmatpush1.bf16.xpose.msra.mxu0 %v6933_v11  ;;  %v6999_v62 = vld [vmem:[%s7469_s20 + $0xd0] ss:$8 sps:$4 sm:$0xff]   ;;  %v7001_v0 = vld [vmem:[%s7469_s20 + $0xe4] ss:$8 sps:$4 sm:$0xff]   ;;  %v7005_v4 = vld [vmem:[%s7469_s20 + $0xe0] ss:$8 sps:$4 sm:$0xff]  }
  0x27   : > { %2437 = vmatpush1.bf16.xpose.msra.mxu1 %v6934_v12  ;;  %6656 = vmatprep.subr.msk.bf16.mxu0 %vm1862_vm0, %v6935_v13  ;;  %v7000_v63 = vld [vmem:[%s7469_s20 + $0x1d0] ss:$8 sps:$4 sm:$0xff]   ;;  %v7003_v1 = vld [vmem:[%s7469_s20 + $0x1e4] ss:$8 sps:$4 sm:$0xff]   ;;  %v7006_v5 = vld [vmem:[%s7469_s20 + $0x1e0] ss:$8 sps:$4 sm:$0xff]  }
  0x28   : > { %6680 = vmatprep.subr.msk.bf16.mxu1 %vm1862_vm0, %v6937_v14  ;;  %v484_v2 = vld [vmem:[%s9989_s2 + $0x30] sm:$0xff]  ;;  %v485_v3 = vld [vmem:[%s9989_s2 + $0x38] sm:$0xff]  ;;  %v486_v8 = vld [vmem:[%s9989_s2 + $0x40] sm:$0xff] }
  0x29   : > { %3368 = vperm.xlu0 %6915, %v484_v2   ;;  %3373 = vperm.xlu1 %6916, %v485_v3   ;;  %v7007_v6 = vld [vmem:[%s7469_s20 + $0xf4] ss:$8 sps:$4 sm:$0xff]   ;;  %v487_v9 = vld [vmem:[%s9989_s2 + $0x48] sm:$0xff]  ;;  %v7011_v10 = vld [vmem:[%s7469_s20 + $0xf0] ss:$8 sps:$4 sm:$0xff]  }
  0x2a   : > { %v7009_v7 = vld [vmem:[%s7469_s20 + $0x1f4] ss:$8 sps:$4 sm:$0xff]   ;;  %v7012_v11 = vld [vmem:[%s7469_s20 + $0x1f0] ss:$8 sps:$4 sm:$0xff]   ;;  %v7016_v12 = vld [vmem:[%s7469_s20 + $0x204] ss:$8 sps:$4 sm:$0xff]  }
  0x2b   : > { %v7018_v13 = vld [vmem:[%s7469_s20 + $0x304] ss:$8 sps:$4 sm:$0xff]   ;;  %v488_v14 = vld [vmem:[%s9989_s2 + $0x50] sm:$0xff]  ;;  %v7056_v45 = vld [vmem:[%s7469_s20 + $0x240] ss:$8 sps:$4 sm:$0xff]  }
  0x2c   : > { %v7061_v48 = vld [vmem:[%s7469_s20 + $0x254] ss:$8 sps:$4 sm:$0xff]   ;;  %v7070_v54 = vld [vmem:[%s7469_s20 + $0x264] ss:$8 sps:$4 sm:$0xff]  }
  0x2d   : > { %3378 = vperm.xlu0 %6915, %v486_v8   ;;  %3383 = vperm.xlu1 %6916, %v487_v9   ;;  %v7063_v49 = vld [vmem:[%s7469_s20 + $0x354] ss:$8 sps:$4 sm:$0xff]   ;;  %v7072_v55 = vld [vmem:[%s7469_s20 + $0x364] ss:$8 sps:$4 sm:$0xff]   ;;  %v7095_v8 = vld [vmem:[%s7469_s20 + $0x290] ss:$8 sps:$4 sm:$0xff]  }
  0x2e   : > { %2326 = vmatpush1.bf16.xpose.msra.mxu0 %v6939_v15  ;;  %v489_v15 = vld [vmem:[%s9989_s2 + $0x58] sm:$0xff]  ;;  %v7087_v2 = vld [vmem:[%s7469_s20 + $0x384] ss:$8 sps:$4 sm:$0xff]  }
  0x2f   : > { %2439 = vmatpush1.bf16.xpose.msra.mxu1 %v6940_v16  ;;  %6657 = vmatprep.subr.msk.bf16.mxu0 %vm1862_vm0, %v6941_v17  ;;  %v7608_v16 = vld [vmem:[%s9988_s1] ss:$8 sps:$4 sm:$0xff]   ;;  %v7079_v60 = vld [vmem:[%s7469_s20 + $0x274] ss:$8 sps:$4 sm:$0xff]   ;;  %v7789_v3 = vld [vmem:[%s9988_s1 + $0x4] ss:$8 sps:$4 sm:$0xff]  }
  0x30   : > { %6681 = vmatprep.subr.msk.bf16.mxu1 %vm1862_vm0, %v6943_v18  ;;  %v7020_v17 = vld [vmem:[%s7469_s20 + $0x200] ss:$8 sps:$4 sm:$0xff]   ;;  %v7081_v61 = vld [vmem:[%s7469_s20 + $0x374] ss:$8 sps:$4 sm:$0xff]   ;;  %v7096_v9 = vld [vmem:[%s7469_s20 + $0x390] ss:$8 sps:$4 sm:$0xff]  }
  0x31   : > { %v7021_v18 = vld [vmem:[%s7469_s20 + $0x300] ss:$8 sps:$4 sm:$0xff]   ;;  %3388 = vperm.xlu0 %6915, %v488_v14   ;;  %3393 = vperm.xlu1 %6916, %v489_v15   ;;  %v7103_v14 = vld [vmem:[%s7469_s20 + $0x2b4] ss:$8 sps:$4 sm:$0xff]  }
  0x32   : > { %v7105_v15 = vld [vmem:[%s7469_s20 + $0x3b4] ss:$8 sps:$4 sm:$0xff]  }
  0x36   : > { %2328 = vmatpush1.bf16.xpose.msra.mxu0 %v6945_v19  ;;  %v7617_v19 = vld [vmem:[%s9988_s1 + $0x14] ss:$8 sps:$4 sm:$0xff]  }
  0x37   : > { %2441 = vmatpush1.bf16.xpose.msra.mxu1 %v6946_v20  ;;  %6658 = vmatprep.subr.msk.bf16.mxu0 %vm1862_vm0, %v6947_v21  ;;  %v7025_v20 = vld [vmem:[%s7469_s20 + $0x214] ss:$8 sps:$4 sm:$0xff]  }
  0x38   : > { %6682 = vmatprep.subr.msk.bf16.mxu1 %vm1862_vm0, %v6949_v22  ;;  %v7027_v21 = vld [vmem:[%s7469_s20 + $0x314] ss:$8 sps:$4 sm:$0xff]   ;;  %v490_v22 = vld [vmem:[%s9989_s2 + $0x60] sm:$0xff] }
  0x39   : > { %3398 = vperm.xlu0 %6915, %v490_v22   ;;  %v7113_v22 = vld [vmem:[%s7469_s20 + $0x2c0] ss:$8 sps:$4 sm:$0xff]  }
  0x3e   : > { %2330 = vmatpush1.bf16.xpose.msra.mxu0 %v6951_v23  ;;  %v491_v23 = vld [vmem:[%s9989_s2 + $0x68] sm:$0xff] }
  0x3f   : > { %2443 = vmatpush1.bf16.xpose.msra.mxu1 %v6952_v24  ;;  %6659 = vmatprep.subr.msk.bf16.mxu0 %vm1862_vm0, %v6953_v25  ;;  %v7636_v24 = vld [vmem:[%s9988_s1 + $0x10] ss:$8 sps:$4 sm:$0xff]  }
  0x40   : > { %6683 = vmatprep.subr.msk.bf16.mxu1 %vm1862_vm0, %v6955_v26  ;;  %v7029_v25 = vld [vmem:[%s7469_s20 + $0x210] ss:$8 sps:$4 sm:$0xff]   ;;  %3403 = vperm.xlu1 %6916, %v491_v23   ;;  %v7114_v23 = vld [vmem:[%s7469_s20 + $0x3c0] ss:$8 sps:$4 sm:$0xff]  }
  0x41   : > { %v7030_v26 = vld [vmem:[%s7469_s20 + $0x310] ss:$8 sps:$4 sm:$0xff]  }
  0x46   : > { %2332 = vmatpush1.bf16.xpose.msra.mxu0 %v6957_v27  ;;  %v7645_v27 = vld [vmem:[%s9988_s1 + $0x24] ss:$8 sps:$4 sm:$0xff]  }
  0x47   : > { %2445 = vmatpush1.bf16.xpose.msra.mxu1 %v6958_v28  ;;  %6660 = vmatprep.subr.msk.bf16.mxu0 %vm1862_vm0, %v6959_v29  ;;  %v7034_v28 = vld [vmem:[%s7469_s20 + $0x224] ss:$8 sps:$4 sm:$0xff]  }
  0x48   : > { %6684 = vmatprep.subr.msk.bf16.mxu1 %vm1862_vm0, %v6961_v30  ;;  %v7036_v29 = vld [vmem:[%s7469_s20 + $0x324] ss:$8 sps:$4 sm:$0xff]   ;;  %v492_v30 = vld [vmem:[%s9989_s2 + $0x70] sm:$0xff] }
  0x49   : > { %3408 = vperm.xlu0 %6915, %v492_v30   ;;  %v7121_v30 = vld [vmem:[%s7469_s20 + $0x2e4] ss:$8 sps:$4 sm:$0xff]  }
  0x4e   : > { %2334 = vmatpush1.bf16.xpose.msra.mxu0 %v6963_v31  ;;  %v493_v31 = vld [vmem:[%s9989_s2 + $0x78] sm:$0xff] }
  0x4f   : > { %2447 = vmatpush1.bf16.xpose.msra.mxu1 %v6964_v32  ;;  %6661 = vmatprep.subr.msk.bf16.mxu0 %vm1862_vm0, %v6965_v33  ;;  %v7664_v32 = vld [vmem:[%s9988_s1 + $0x20] ss:$8 sps:$4 sm:$0xff]  }
  0x50   : > { %6685 = vmatprep.subr.msk.bf16.mxu1 %vm1862_vm0, %v6967_v34  ;;  %v7038_v33 = vld [vmem:[%s7469_s20 + $0x220] ss:$8 sps:$4 sm:$0xff]   ;;  %3413 = vperm.xlu1 %6916, %v493_v31   ;;  %v7123_v31 = vld [vmem:[%s7469_s20 + $0x3e4] ss:$8 sps:$4 sm:$0xff]  }
  0x51   : > { %v7039_v34 = vld [vmem:[%s7469_s20 + $0x320] ss:$8 sps:$4 sm:$0xff]  }
  0x56   : > { %2336 = vmatpush1.bf16.xpose.msra.mxu0 %v6969_v35  ;;  %v7673_v35 = vld [vmem:[%s9988_s1 + $0x34] ss:$8 sps:$4 sm:$0xff]  }
  0x57   : > { %2449 = vmatpush1.bf16.xpose.msra.mxu1 %v6970_v36  ;;  %6662 = vmatprep.subr.msk.bf16.mxu0 %vm1862_vm0, %v6971_v37  ;;  %v7043_v36 = vld [vmem:[%s7469_s20 + $0x234] ss:$8 sps:$4 sm:$0xff]  }
  0x58   : > { %6686 = vmatprep.subr.msk.bf16.mxu1 %vm1862_vm0, %v6973_v38  ;;  %v7045_v37 = vld [vmem:[%s7469_s20 + $0x334] ss:$8 sps:$4 sm:$0xff]   ;;  %v7686_v38 = vld [vmem:[%s9988_s1 + $0x30] ss:$8 sps:$4 sm:$0xff]  }
  0x5e   : > { %2338 = vmatpush1.bf16.xpose.msra.mxu0 %v6975_v39  ;;  %v7047_v39 = vld [vmem:[%s7469_s20 + $0x230] ss:$8 sps:$4 sm:$0xff]  }
  0x5f   : > { %2451 = vmatpush1.bf16.xpose.msra.mxu1 %v6976_v40  ;;  %6663 = vmatprep.subr.msk.bf16.mxu0 %vm1862_vm0, %v6977_v41  ;;  %v7048_v40 = vld [vmem:[%s7469_s20 + $0x330] ss:$8 sps:$4 sm:$0xff]   ;;  %v7695_v41 = vld [vmem:[%s9988_s1 + $0x44] ss:$8 sps:$4 sm:$0xff]  }
  0x60   : > { %6687 = vmatprep.subr.msk.bf16.mxu1 %vm1862_vm0, %v6979_v42  ;;  %v7052_v42 = vld [vmem:[%s7469_s20 + $0x244] ss:$8 sps:$4 sm:$0xff]  }
  0x66   : > { %2340 = vmatpush1.bf16.xpose.msra.mxu0 %v6981_v43  ;;  %v7054_v43 = vld [vmem:[%s7469_s20 + $0x344] ss:$8 sps:$4 sm:$0xff]  }
  0x67   : > { %2453 = vmatpush1.bf16.xpose.msra.mxu1 %v6982_v44  ;;  %6664 = vmatprep.subr.msk.bf16.mxu0 %vm1862_vm0, %v6983_v46  ;;  %v7710_v44 = vld [vmem:[%s9988_s1 + $0x40] ss:$8 sps:$4 sm:$0xff]  }
  0x68   : > { %6688 = vmatprep.subr.msk.bf16.mxu1 %vm1862_vm0, %v6985_v47  ;;  %v7057_v46 = vld [vmem:[%s7469_s20 + $0x340] ss:$8 sps:$4 sm:$0xff]   ;;  %v7717_v47 = vld [vmem:[%s9988_s1 + $0x54] ss:$8 sps:$4 sm:$0xff]  }
  0x6e   : > { %2342 = vmatpush1.bf16.xpose.msra.mxu0 %v6987_v50  ;;  %v7732_v50 = vld [vmem:[%s9988_s1 + $0x50] ss:$8 sps:$4 sm:$0xff]  }
  0x6f   : > { %2455 = vmatpush1.bf16.xpose.msra.mxu1 %v6988_v51  ;;  %6665 = vmatprep.subr.msk.bf16.mxu0 %vm1862_vm0, %v6989_v52  ;;  %v7065_v51 = vld [vmem:[%s7469_s20 + $0x250] ss:$8 sps:$4 sm:$0xff]  }
  0x70   : > { %6689 = vmatprep.subr.msk.bf16.mxu1 %vm1862_vm0, %v6991_v53  ;;  %v7066_v52 = vld [vmem:[%s7469_s20 + $0x350] ss:$8 sps:$4 sm:$0xff]   ;;  %v7739_v53 = vld [vmem:[%s9988_s1 + $0x64] ss:$8 sps:$4 sm:$0xff]  }
  0x76   : > { %2344 = vmatpush1.bf16.xpose.msra.mxu0 %v6993_v56  ;;  %v7754_v56 = vld [vmem:[%s9988_s1 + $0x60] ss:$8 sps:$4 sm:$0xff]  }
  0x77   : > { %2457 = vmatpush1.bf16.xpose.msra.mxu1 %v6994_v57  ;;  %6666 = vmatprep.subr.msk.bf16.mxu0 %vm1862_vm0, %v6995_v58  ;;  %v7074_v57 = vld [vmem:[%s7469_s20 + $0x260] ss:$8 sps:$4 sm:$0xff]  }
  0x78   : > { %6690 = vmatprep.subr.msk.bf16.mxu1 %vm1862_vm0, %v6997_v59  ;;  %v7075_v58 = vld [vmem:[%s7469_s20 + $0x360] ss:$8 sps:$4 sm:$0xff]   ;;  %v7761_v59 = vld [vmem:[%s9988_s1 + $0x74] ss:$8 sps:$4 sm:$0xff]  }
  0x7e   : > { %2346 = vmatpush1.bf16.xpose.msra.mxu0 %v6999_v62  ;;  %v7776_v62 = vld [vmem:[%s9988_s1 + $0x70] ss:$8 sps:$4 sm:$0xff]  }
  0x7f   : > { %2459 = vmatpush1.bf16.xpose.msra.mxu1 %v7000_v63  ;;  %6667 = vmatprep.subr.msk.bf16.mxu0 %vm1862_vm0, %v7001_v0  ;;  %v7083_v63 = vld [vmem:[%s7469_s20 + $0x270] ss:$8 sps:$4 sm:$0xff]  }
  0x80   : > { %6691 = vmatprep.subr.msk.bf16.mxu1 %vm1862_vm0, %v7003_v1  ;;  %v7084_v0 = vld [vmem:[%s7469_s20 + $0x370] ss:$8 sps:$4 sm:$0xff]   ;;  %v7085_v1 = vld [vmem:[%s7469_s20 + $0x284] ss:$8 sps:$4 sm:$0xff]  }
  0x86   : > { %2348 = vmatpush1.bf16.xpose.msra.mxu0 %v7005_v4  ;;  %v7089_v4 = vld [vmem:[%s7469_s20 + $0x280] ss:$8 sps:$4 sm:$0xff]  }
  0x87   : > { %2461 = vmatpush1.bf16.xpose.msra.mxu1 %v7006_v5  ;;  %6668 = vmatprep.subr.msk.bf16.mxu0 %vm1862_vm0, %v7007_v6  ;;  %v7090_v5 = vld [vmem:[%s7469_s20 + $0x380] ss:$8 sps:$4 sm:$0xff]   ;;  %v7091_v6 = vld [vmem:[%s7469_s20 + $0x294] ss:$8 sps:$4 sm:$0xff]  }
  0x88   : > { %6692 = vmatprep.subr.msk.bf16.mxu1 %vm1862_vm0, %v7009_v7  ;;  %v7093_v7 = vld [vmem:[%s7469_s20 + $0x394] ss:$8 sps:$4 sm:$0xff]  }
  0x8e   : > { %2350 = vmatpush1.bf16.xpose.msra.mxu0 %v7011_v10  ;;  %v7097_v10 = vld [vmem:[%s7469_s20 + $0x2a4] ss:$8 sps:$4 sm:$0xff]  }
  0x8f   : > { %2463 = vmatpush1.bf16.xpose.msra.mxu1 %v7012_v11  ;;  %6701 = vmatprep.subr.msk.bf16.mxu0 %vm1862_vm0, %v7016_v12  ;;  %v7099_v11 = vld [vmem:[%s7469_s20 + $0x3a4] ss:$8 sps:$4 sm:$0xff]   ;;  %v7101_v12 = vld [vmem:[%s7469_s20 + $0x2a0] ss:$8 sps:$4 sm:$0xff]  }
  0x90   : > { %6725 = vmatprep.subr.msk.bf16.mxu1 %vm1862_vm0, %v7018_v13  ;;  %v7102_v13 = vld [vmem:[%s7469_s20 + $0x3a0] ss:$8 sps:$4 sm:$0xff]  }
  0x95   : > { %2352 = vmatmul.mubr.bf16.vlgmr.msra.gmra.mrb[0].mxu0 %v7608_v16 }
  0x96   : > { %2465 = vmatmul.mubr.bf16.vlgmr.msra.gmra.mrb[0].mxu1 %v7608_v16  ;;  %2546 = vmatpush1.bf16.xpose.msra.mxu0 %v7020_v17  ;;  %v7107_v17 = vld [vmem:[%s7469_s20 + $0x2b0] ss:$8 sps:$4 sm:$0xff]  }
  0x97   : > { %2659 = vmatpush1.bf16.xpose.msra.mxu1 %v7021_v18  ;;  %6670 = vmatprep.mubr.msk.bf16.mxu0 %vm1862_vm0, %v7617_v19  ;;  %v7108_v18 = vld [vmem:[%s7469_s20 + $0x3b0] ss:$8 sps:$4 sm:$0xff]  }
  0x98   : > { %6694 = vmatprep.mubr.msk.bf16.mxu1 %vm1862_vm0, %v7617_v19  ;;  %6702 = vmatprep.subr.msk.bf16.mxu0 %vm1862_vm0, %v7025_v20  ;;  %v7109_v20 = vld [vmem:[%s7469_s20 + $0x2c4] ss:$8 sps:$4 sm:$0xff]  }
  0x99   : > { %6726 = vmatprep.subr.msk.bf16.mxu1 %vm1862_vm0, %v7027_v21  ;;  %v7111_v21 = vld [vmem:[%s7469_s20 + $0x3c4] ss:$8 sps:$4 sm:$0xff]  }
  0x9d   : > { %2362 = vmatmul.mubr.bf16.gmra.mrb[4].mxu0 %v7636_v24 }
  0x9e   : > { %2475 = vmatmul.mubr.bf16.gmra.mrb[4].mxu1 %v7636_v24  ;;  %2548 = vmatpush1.bf16.xpose.msra.mxu0 %v7029_v25  ;;  %v7115_v25 = vld [vmem:[%s7469_s20 + $0x2d4] ss:$8 sps:$4 sm:$0xff]  }
  0x9f   : > { %2661 = vmatpush1.bf16.xpose.msra.mxu1 %v7030_v26  ;;  %6671 = vmatprep.mubr.msk.bf16.mxu0 %vm1862_vm0, %v7645_v27  ;;  %v7117_v26 = vld [vmem:[%s7469_s20 + $0x3d4] ss:$8 sps:$4 sm:$0xff]  }
  0xa0   : > { %6695 = vmatprep.mubr.msk.bf16.mxu1 %vm1862_vm0, %v7645_v27  ;;  %6703 = vmatprep.subr.msk.bf16.mxu0 %vm1862_vm0, %v7034_v28  ;;  %v7119_v28 = vld [vmem:[%s7469_s20 + $0x2d0] ss:$8 sps:$4 sm:$0xff]  }
  0xa1   : > { %6727 = vmatprep.subr.msk.bf16.mxu1 %vm1862_vm0, %v7036_v29  ;;  %v7120_v29 = vld [vmem:[%s7469_s20 + $0x3d0] ss:$8 sps:$4 sm:$0xff]  }
  0xa5   : > { %2372 = vmatmul.mubr.bf16.gmra.mrb[8].mxu0 %v7664_v32 }
  0xa6   : > { %2485 = vmatmul.mubr.bf16.gmra.mrb[8].mxu1 %v7664_v32  ;;  %2550 = vmatpush1.bf16.xpose.msra.mxu0 %v7038_v33  ;;  %v7125_v33 = vld [vmem:[%s7469_s20 + $0x2e0] ss:$8 sps:$4 sm:$0xff]  }
  0xa7   : > { %2663 = vmatpush1.bf16.xpose.msra.mxu1 %v7039_v34  ;;  %6672 = vmatprep.mubr.msk.bf16.mxu0 %vm1862_vm0, %v7673_v35  ;;  %v7126_v34 = vld [vmem:[%s7469_s20 + $0x3e0] ss:$8 sps:$4 sm:$0xff]  }
  0xa8   : > { %6696 = vmatprep.mubr.msk.bf16.mxu1 %vm1862_vm0, %v7673_v35  ;;  %6704 = vmatprep.subr.msk.bf16.mxu0 %vm1862_vm0, %v7043_v36  ;;  %v7127_v36 = vld [vmem:[%s7469_s20 + $0x2f4] ss:$8 sps:$4 sm:$0xff]  }
  0xa9   : > { %6728 = vmatprep.subr.msk.bf16.mxu1 %vm1862_vm0, %v7045_v37  ;;  %v7129_v37 = vld [vmem:[%s7469_s20 + $0x3f4] ss:$8 sps:$4 sm:$0xff]  }
  0xad   : > { %2382 = vmatmul.mubr.bf16.gmra.mrb[12].mxu0 %v7686_v38 }
  0xae   : > { %2495 = vmatmul.mubr.bf16.gmra.mrb[12].mxu1 %v7686_v38  ;;  %2552 = vmatpush1.bf16.xpose.msra.mxu0 %v7047_v39  ;;  %v7131_v39 = vld [vmem:[%s7469_s20 + $0x2f0] ss:$8 sps:$4 sm:$0xff]  }
  0xaf   : > { %2665 = vmatpush1.bf16.xpose.msra.mxu1 %v7048_v40  ;;  %6673 = vmatprep.mubr.msk.bf16.mxu0 %vm1862_vm0, %v7695_v41  ;;  %v7132_v40 = vld [vmem:[%s7469_s20 + $0x3f0] ss:$8 sps:$4 sm:$0xff]  }
  0xb0   : > { %6697 = vmatprep.mubr.msk.bf16.mxu1 %vm1862_vm0, %v7695_v41  ;;  %6705 = vmatprep.subr.msk.bf16.mxu0 %vm1862_vm0, %v7052_v42  ;;  %v7133_v42 = vld [vmem:[%s7469_s20 + $0x404] ss:$8 sps:$4 sm:$0xff]  }
  0xb1   : > { %6729 = vmatprep.subr.msk.bf16.mxu1 %vm1862_vm0, %v7054_v43  ;;  %v7135_v43 = vld [vmem:[%s7469_s20 + $0x504] ss:$8 sps:$4 sm:$0xff]  }
  0xb5   : > { %2392 = vmatmul.mubr.bf16.gmra.mrb[16].mxu0 %v7710_v44 }
  0xb6   : > { %2505 = vmatmul.mubr.bf16.gmra.mrb[16].mxu1 %v7710_v44  ;;  %2554 = vmatpush1.bf16.xpose.msra.mxu0 %v7056_v45  ;;  %v7137_v45 = vld [vmem:[%s7469_s20 + $0x400] ss:$8 sps:$4 sm:$0xff]  }
  0xb7   : > { %2667 = vmatpush1.bf16.xpose.msra.mxu1 %v7057_v46  ;;  %6674 = vmatprep.mubr.msk.bf16.mxu0 %vm1862_vm0, %v7717_v47  ;;  %v7138_v46 = vld [vmem:[%s7469_s20 + $0x500] ss:$8 sps:$4 sm:$0xff]  }
  0xb8   : > { %6698 = vmatprep.mubr.msk.bf16.mxu1 %vm1862_vm0, %v7717_v47  ;;  %6706 = vmatprep.subr.msk.bf16.mxu0 %vm1862_vm0, %v7061_v48  ;;  %v7139_v48 = vld [vmem:[%s7469_s20 + $0x414] ss:$8 sps:$4 sm:$0xff]  }
  0xb9   : > { %6730 = vmatprep.subr.msk.bf16.mxu1 %vm1862_vm0, %v7063_v49  ;;  %v7141_v49 = vld [vmem:[%s7469_s20 + $0x514] ss:$8 sps:$4 sm:$0xff]  }
  0xbd   : > { %2402 = vmatmul.mubr.bf16.gmra.mrb[20].mxu0 %v7732_v50 }
  0xbe   : > { %2515 = vmatmul.mubr.bf16.gmra.mrb[20].mxu1 %v7732_v50  ;;  %2556 = vmatpush1.bf16.xpose.msra.mxu0 %v7065_v51  ;;  %v7143_v51 = vld [vmem:[%s7469_s20 + $0x410] ss:$8 sps:$4 sm:$0xff]  }
  0xbf   : > { %2669 = vmatpush1.bf16.xpose.msra.mxu1 %v7066_v52  ;;  %6675 = vmatprep.mubr.msk.bf16.mxu0 %vm1862_vm0, %v7739_v53  ;;  %v7144_v52 = vld [vmem:[%s7469_s20 + $0x510] ss:$8 sps:$4 sm:$0xff]  }
  0xc0   : > { %6699 = vmatprep.mubr.msk.bf16.mxu1 %vm1862_vm0, %v7739_v53  ;;  %6707 = vmatprep.subr.msk.bf16.mxu0 %vm1862_vm0, %v7070_v54  ;;  %v7145_v54 = vld [vmem:[%s7469_s20 + $0x424] ss:$8 sps:$4 sm:$0xff]  }
  0xc1   : > { %6731 = vmatprep.subr.msk.bf16.mxu1 %vm1862_vm0, %v7072_v55  ;;  %v7150_v55 = vld [vmem:[%s7469_s20 + $0x520] ss:$8 sps:$4 sm:$0xff]  }
  0xc5   : > { %2412 = vmatmul.mubr.bf16.gmra.mrb[24].mxu0 %v7754_v56 }
  0xc6   : > { %2525 = vmatmul.mubr.bf16.gmra.mrb[24].mxu1 %v7754_v56  ;;  %2558 = vmatpush1.bf16.xpose.msra.mxu0 %v7074_v57  ;;  %v7151_v57 = vld [vmem:[%s7469_s20 + $0x434] ss:$8 sps:$4 sm:$0xff]  }
  0xc7   : > { %2671 = vmatpush1.bf16.xpose.msra.mxu1 %v7075_v58  ;;  %6676 = vmatprep.mubr.msk.bf16.mxu0 %vm1862_vm0, %v7761_v59  ;;  %v7156_v58 = vld [vmem:[%s7469_s20 + $0x530] ss:$8 sps:$4 sm:$0xff]  }
  0xc8   : > { %6700 = vmatprep.mubr.msk.bf16.mxu1 %vm1862_vm0, %v7761_v59  ;;  %6708 = vmatprep.subr.msk.bf16.mxu0 %vm1862_vm0, %v7079_v60  ;;  %v7157_v60 = vld [vmem:[%s7469_s20 + $0x444] ss:$8 sps:$4 sm:$0xff]  }
  0xc9   : > { %6732 = vmatprep.subr.msk.bf16.mxu1 %vm1862_vm0, %v7081_v61  ;;  %v7162_v61 = vld [vmem:[%s7469_s20 + $0x540] ss:$8 sps:$4 sm:$0xff]  }
  0xcd   : > { %2422 = vmatmul.mubr.bf16.gmra.mrb[28].mxu0 %v7776_v62 }
  0xce   : > { %2535 = vmatmul.mubr.bf16.gmra.mrb[28].mxu1 %v7776_v62  ;;  %2560 = vmatpush1.bf16.xpose.msra.mxu0 %v7083_v63  ;;  %v7163_v63 = vld [vmem:[%s7469_s20 + $0x454] ss:$8 sps:$4 sm:$0xff]  }
  0xcf   : > { %2673 = vmatpush1.bf16.xpose.msra.mxu1 %v7084_v0  ;;  %6709 = vmatprep.subr.msk.bf16.mxu0 %vm1862_vm0, %v7085_v1  ;;  %v7168_v0 = vld [vmem:[%s7469_s20 + $0x550] ss:$8 sps:$4 sm:$0xff]   ;;  %v7169_v1 = vld [vmem:[%s7469_s20 + $0x464] ss:$8 sps:$4 sm:$0xff]  }
  0xd0   : > { %6733 = vmatprep.subr.msk.bf16.mxu1 %vm1862_vm0, %v7087_v2  ;;  %6717 = vmatprep.mubr.msk.bf16.mxu0 %vm1862_vm0, %v7789_v3  ;;  %v7174_v2 = vld [vmem:[%s7469_s20 + $0x560] ss:$8 sps:$4 sm:$0xff]  }
  0xd1   : > { %6741 = vmatprep.mubr.msk.bf16.mxu1 %vm1862_vm0, %v7789_v3 }
  0xd6   : > { %2562 = vmatpush1.bf16.xpose.msra.mxu0 %v7089_v4  ;;  %v7175_v4 = vld [vmem:[%s7469_s20 + $0x474] ss:$8 sps:$4 sm:$0xff]  }
  0xd7   : > { %2675 = vmatpush1.bf16.xpose.msra.mxu1 %v7090_v5  ;;  %6710 = vmatprep.subr.msk.bf16.mxu0 %vm1862_vm0, %v7091_v6  ;;  %v7180_v5 = vld [vmem:[%s7469_s20 + $0x570] ss:$8 sps:$4 sm:$0xff]   ;;  %v7181_v6 = vld [vmem:[%s7469_s20 + $0x484] ss:$8 sps:$4 sm:$0xff]  }
  0xd8   : > { %6734 = vmatprep.subr.msk.bf16.mxu1 %vm1862_vm0, %v7093_v7  ;;  %v7186_v7 = vld [vmem:[%s7469_s20 + $0x580] ss:$8 sps:$4 sm:$0xff]  }
  0xde   : > { %2564 = vmatpush1.bf16.xpose.msra.mxu0 %v7095_v8  ;;  %v7187_v8 = vld [vmem:[%s7469_s20 + $0x494] ss:$8 sps:$4 sm:$0xff]  }
  0xdf   : > { %2677 = vmatpush1.bf16.xpose.msra.mxu1 %v7096_v9  ;;  %6711 = vmatprep.subr.msk.bf16.mxu0 %vm1862_vm0, %v7097_v10  ;;  %v7191_v9 = vld [vmem:[%s7469_s20 + $0x490] ss:$8 sps:$4 sm:$0xff]  }
  0xe0   : > { %6735 = vmatprep.subr.msk.bf16.mxu1 %vm1862_vm0, %v7099_v11  ;;  %v7192_v10 = vld [vmem:[%s7469_s20 + $0x590] ss:$8 sps:$4 sm:$0xff]   ;;  %v7193_v11 = vld [vmem:[%s7469_s20 + $0x4a4] ss:$8 sps:$4 sm:$0xff]  }
  0xe6   : > { %2566 = vmatpush1.bf16.xpose.msra.mxu0 %v7101_v12  ;;  %v7195_v12 = vld [vmem:[%s7469_s20 + $0x5a4] ss:$8 sps:$4 sm:$0xff]  }
  0xe7   : > { %2679 = vmatpush1.bf16.xpose.msra.mxu1 %v7102_v13  ;;  %6712 = vmatprep.subr.msk.bf16.mxu0 %vm1862_vm0, %v7103_v14  ;;  %v7951_v13 = vpop.permute.xlu0 %3338  ;;  %v7197_v14 = vld [vmem:[%s7469_s20 + $0x4a0] ss:$8 sps:$4 sm:$0xff]  }
  0xe8   : > { %6736 = vmatprep.subr.msk.bf16.mxu1 %vm1862_vm0, %v7105_v15  ;;  %10122 = vst [vmem:[#allocation2_spill] sm:$0xff] %v7951_v13  ;;  %v7198_v15 = vld [vmem:[%s7469_s20 + $0x5a0] ss:$8 sps:$4 sm:$0xff]  }
  0xee   : > { %2568 = vmatpush1.bf16.xpose.msra.mxu0 %v7107_v17 }
  0xef   : > { %2681 = vmatpush1.bf16.xpose.msra.mxu1 %v7108_v18  ;;  %6713 = vmatprep.subr.msk.bf16.mxu0 %vm1862_vm0, %v7109_v20  ;;  %v7199_v18 = vld [vmem:[%s7469_s20 + $0x4b4] ss:$8 sps:$4 sm:$0xff]  }
  0xf0   : > { %6737 = vmatprep.subr.msk.bf16.mxu1 %vm1862_vm0, %v7111_v21  ;;  %v7201_v20 = vld [vmem:[%s7469_s20 + $0x5b4] ss:$8 sps:$4 sm:$0xff]  }
  0xf6   : > { %2570 = vmatpush1.bf16.xpose.msra.mxu0 %v7113_v22 }
  0xf7   : > { %2683 = vmatpush1.bf16.xpose.msra.mxu1 %v7114_v23  ;;  %6714 = vmatprep.subr.msk.bf16.mxu0 %vm1862_vm0, %v7115_v25  ;;  %v7969_v25 = vpop.permute.xlu0 %3343 }
  0xf8   : > { %6738 = vmatprep.subr.msk.bf16.mxu1 %vm1862_vm0, %v7117_v26  ;;  %10127 = vst [vmem:[#allocation7_spill] sm:$0xff] %v7969_v25  ;;  %v7973_v26 = vpop.permute.xlu1 %3348 }
  0xf9   : > { %10128 = vst [vmem:[#allocation8_spill] sm:$0xff] %v7973_v26 }
  0xfe   : > { %2572 = vmatpush1.bf16.xpose.msra.mxu0 %v7119_v28 }
  0xff   : > { %2685 = vmatpush1.bf16.xpose.msra.mxu1 %v7120_v29  ;;  %6715 = vmatprep.subr.msk.bf16.mxu0 %vm1862_vm0, %v7121_v30 }
 0x100   : > { %6739 = vmatprep.subr.msk.bf16.mxu1 %vm1862_vm0, %v7123_v31 }
 0x106   : > { %2574 = vmatpush1.bf16.xpose.msra.mxu0 %v7125_v33 }
 0x107   : > { %2687 = vmatpush1.bf16.xpose.msra.mxu1 %v7126_v34  ;;  %6716 = vmatprep.subr.msk.bf16.mxu0 %vm1862_vm0, %v7127_v36  ;;  %v7203_v34 = vld [vmem:[%s7469_s20 + $0x4b0] ss:$8 sps:$4 sm:$0xff]  }
 0x108   : > { %6740 = vmatprep.subr.msk.bf16.mxu1 %vm1862_vm0, %v7129_v37  ;;  %v7204_v36 = vld [vmem:[%s7469_s20 + $0x5b0] ss:$8 sps:$4 sm:$0xff]  }
 0x10e   : > { %2576 = vmatpush1.bf16.xpose.msra.mxu0 %v7131_v39 }
 0x10f   : > { %2689 = vmatpush1.bf16.xpose.msra.mxu1 %v7132_v40  ;;  %6749 = vmatprep.subr.msk.bf16.mxu0 %vm1862_vm0, %v7133_v42 }
 0x110   : > { %6773 = vmatprep.subr.msk.bf16.mxu1 %vm1862_vm0, %v7135_v43 }
 0x115   : > { %2578 = vmatmul.mubr.bf16.vlgmr.msra.gmra.mrb[32].mxu0 %v7608_v16 }
 0x116   : > { %2691 = vmatmul.mubr.bf16.vlgmr.msra.gmra.mrb[32].mxu1 %v7608_v16  ;;  %2772 = vmatpush1.bf16.xpose.msra.mxu0 %v7137_v45  ;;  %v7147_v16 = vld [vmem:[%s7469_s20 + $0x524] ss:$8 sps:$4 sm:$0xff]  }
 0x117   : > { %2885 = vmatpush1.bf16.xpose.msra.mxu1 %v7138_v46  ;;  %6718 = vmatprep.mubr.msk.bf16.mxu0 %vm1862_vm0, %v7617_v19 }
 0x118   : > { %6742 = vmatprep.mubr.msk.bf16.mxu1 %vm1862_vm0, %v7617_v19  ;;  %6750 = vmatprep.subr.msk.bf16.mxu0 %vm1862_vm0, %v7139_v48  ;;  %v7149_v19 = vld [vmem:[%s7469_s20 + $0x420] ss:$8 sps:$4 sm:$0xff]  }
 0x119   : > { %6774 = vmatprep.subr.msk.bf16.mxu1 %vm1862_vm0, %v7141_v49 }
 0x11d   : > { %2588 = vmatmul.mubr.bf16.gmra.mrb[36].mxu0 %v7636_v24 }
 0x11e   : > { %2701 = vmatmul.mubr.bf16.gmra.mrb[36].mxu1 %v7636_v24  ;;  %2774 = vmatpush1.bf16.xpose.msra.mxu0 %v7143_v51  ;;  %v7153_v24 = vld [vmem:[%s7469_s20 + $0x534] ss:$8 sps:$4 sm:$0xff]   ;;  %v7205_v51 = vld [vmem:[%s7469_s20 + $0x4c4] ss:$8 sps:$4 sm:$0xff]  }
 0x11f   : > { %2887 = vmatpush1.bf16.xpose.msra.mxu1 %v7144_v52  ;;  %6719 = vmatprep.mubr.msk.bf16.mxu0 %vm1862_vm0, %v7645_v27 }
 0x120   : > { %6743 = vmatprep.mubr.msk.bf16.mxu1 %vm1862_vm0, %v7645_v27  ;;  %6751 = vmatprep.subr.msk.bf16.mxu0 %vm1862_vm0, %v7145_v54  ;;  %v7155_v27 = vld [vmem:[%s7469_s20 + $0x430] ss:$8 sps:$4 sm:$0xff]  }
 0x121   : > { %6775 = vmatprep.subr.msk.bf16.mxu1 %vm1862_vm0, %v7147_v16 }
 0x125   : > { %2598 = vmatmul.mubr.bf16.gmra.mrb[40].mxu0 %v7664_v32 }
 0x126   : > { %2711 = vmatmul.mubr.bf16.gmra.mrb[40].mxu1 %v7664_v32  ;;  %2776 = vmatpush1.bf16.xpose.msra.mxu0 %v7149_v19  ;;  %v7159_v32 = vld [vmem:[%s7469_s20 + $0x544] ss:$8 sps:$4 sm:$0xff]  }
 0x127   : > { %2889 = vmatpush1.bf16.xpose.msra.mxu1 %v7150_v55  ;;  %6720 = vmatprep.mubr.msk.bf16.mxu0 %vm1862_vm0, %v7673_v35 }
 0x128   : > { %6744 = vmatprep.mubr.msk.bf16.mxu1 %vm1862_vm0, %v7673_v35  ;;  %6752 = vmatprep.subr.msk.bf16.mxu0 %vm1862_vm0, %v7151_v57  ;;  %v7161_v35 = vld [vmem:[%s7469_s20 + $0x440] ss:$8 sps:$4 sm:$0xff]  }
 0x129   : > { %6776 = vmatprep.subr.msk.bf16.mxu1 %vm1862_vm0, %v7153_v24  ;;  %v7207_v24 = vld [vmem:[%s7469_s20 + $0x5c4] ss:$8 sps:$4 sm:$0xff]  }
 0x12d   : > { %2608 = vmatmul.mubr.bf16.gmra.mrb[44].mxu0 %v7686_v38 }
 0x12e   : > { %2721 = vmatmul.mubr.bf16.gmra.mrb[44].mxu1 %v7686_v38  ;;  %2778 = vmatpush1.bf16.xpose.msra.mxu0 %v7155_v27  ;;  %v7165_v38 = vld [vmem:[%s7469_s20 + $0x554] ss:$8 sps:$4 sm:$0xff]  }
 0x12f   : > { %2891 = vmatpush1.bf16.xpose.msra.mxu1 %v7156_v58  ;;  %6721 = vmatprep.mubr.msk.bf16.mxu0 %vm1862_vm0, %v7695_v41 }
 0x130   : > { %6745 = vmatprep.mubr.msk.bf16.mxu1 %vm1862_vm0, %v7695_v41  ;;  %6753 = vmatprep.subr.msk.bf16.mxu0 %vm1862_vm0, %v7157_v60  ;;  %v7167_v41 = vld [vmem:[%s7469_s20 + $0x450] ss:$8 sps:$4 sm:$0xff]  }
 0x131   : > { %6777 = vmatprep.subr.msk.bf16.mxu1 %vm1862_vm0, %v7159_v32 }
 0x135   : > { %2618 = vmatmul.mubr.bf16.gmra.mrb[48].mxu0 %v7710_v44 }
 0x136   : > { %2731 = vmatmul.mubr.bf16.gmra.mrb[48].mxu1 %v7710_v44  ;;  %2780 = vmatpush1.bf16.xpose.msra.mxu0 %v7161_v35  ;;  %v7171_v44 = vld [vmem:[%s7469_s20 + $0x564] ss:$8 sps:$4 sm:$0xff]  }
 0x137   : > { %2893 = vmatpush1.bf16.xpose.msra.mxu1 %v7162_v61  ;;  %6722 = vmatprep.mubr.msk.bf16.mxu0 %vm1862_vm0, %v7717_v47 }
 0x138   : > { %6746 = vmatprep.mubr.msk.bf16.mxu1 %vm1862_vm0, %v7717_v47  ;;  %6754 = vmatprep.subr.msk.bf16.mxu0 %vm1862_vm0, %v7163_v63  ;;  %v7173_v47 = vld [vmem:[%s7469_s20 + $0x460] ss:$8 sps:$4 sm:$0xff]  }
 0x139   : > { %6778 = vmatprep.subr.msk.bf16.mxu1 %vm1862_vm0, %v7165_v38 }
 0x13d   : > { %2628 = vmatmul.mubr.bf16.gmra.mrb[52].mxu0 %v7732_v50 }
 0x13e   : > { %2741 = vmatmul.mubr.bf16.gmra.mrb[52].mxu1 %v7732_v50  ;;  %2782 = vmatpush1.bf16.xpose.msra.mxu0 %v7167_v41  ;;  %v7177_v50 = vld [vmem:[%s7469_s20 + $0x574] ss:$8 sps:$4 sm:$0xff]  }
 0x13f   : > { %2895 = vmatpush1.bf16.xpose.msra.mxu1 %v7168_v0  ;;  %6723 = vmatprep.mubr.msk.bf16.mxu0 %vm1862_vm0, %v7739_v53 }
 0x140   : > { %6747 = vmatprep.mubr.msk.bf16.mxu1 %vm1862_vm0, %v7739_v53  ;;  %6755 = vmatprep.subr.msk.bf16.mxu0 %vm1862_vm0, %v7169_v1  ;;  %v7179_v53 = vld [vmem:[%s7469_s20 + $0x470] ss:$8 sps:$4 sm:$0xff]  }
 0x141   : > { %6779 = vmatprep.subr.msk.bf16.mxu1 %vm1862_vm0, %v7171_v44 }
 0x145   : > { %2638 = vmatmul.mubr.bf16.gmra.mrb[56].mxu0 %v7754_v56 }
 0x146   : > { %2751 = vmatmul.mubr.bf16.gmra.mrb[56].mxu1 %v7754_v56  ;;  %2784 = vmatpush1.bf16.xpose.msra.mxu0 %v7173_v47  ;;  %v7183_v56 = vld [vmem:[%s7469_s20 + $0x584] ss:$8 sps:$4 sm:$0xff]  }
 0x147   : > { %2897 = vmatpush1.bf16.xpose.msra.mxu1 %v7174_v2  ;;  %6724 = vmatprep.mubr.msk.bf16.mxu0 %vm1862_vm0, %v7761_v59 }
 0x148   : > { %6748 = vmatprep.mubr.msk.bf16.mxu1 %vm1862_vm0, %v7761_v59  ;;  %6756 = vmatprep.subr.msk.bf16.mxu0 %vm1862_vm0, %v7175_v4  ;;  %v7185_v59 = vld [vmem:[%s7469_s20 + $0x480] ss:$8 sps:$4 sm:$0xff]  }
 0x149   : > { %6780 = vmatprep.subr.msk.bf16.mxu1 %vm1862_vm0, %v7177_v50 }
 0x14d   : > { %2648 = vmatmul.mubr.bf16.gmra.mrb[60].mxu0 %v7776_v62 }
 0x14e   : > { %2761 = vmatmul.mubr.bf16.gmra.mrb[60].mxu1 %v7776_v62  ;;  %2786 = vmatpush1.bf16.xpose.msra.mxu0 %v7179_v53  ;;  %v7189_v62 = vld [vmem:[%s7469_s20 + $0x594] ss:$8 sps:$4 sm:$0xff]  }
 0x14f   : > { %2899 = vmatpush1.bf16.xpose.msra.mxu1 %v7180_v5  ;;  %6757 = vmatprep.subr.msk.bf16.mxu0 %vm1862_vm0, %v7181_v6  ;;  %v8026_v6 = vpop.permute.xlu1 %3353 }
 0x150   : > { %6781 = vmatprep.subr.msk.bf16.mxu1 %vm1862_vm0, %v7183_v56  ;;  %6765 = vmatprep.mubr.msk.bf16.mxu0 %vm1862_vm0, %v7789_v3  ;;  %10141 = vst [vmem:[#allocation21_spill] sm:$0xff] %v8026_v6 }
 0x151   : > { %6789 = vmatprep.mubr.msk.bf16.mxu1 %vm1862_vm0, %v7789_v3  ;;  %v9991_v3 = vlaneseq }
 0x153   : > { %v7956_v17 = vshrl.u32 %v9991_v3, 7 }
 0x155   : > { %10123 = vst [vmem:[#allocation3_spill] sm:$0xff] %v7956_v17  ;;  %v7961_v21 = vadd.s32 8, %v7956_v17  ;;  %v7964_v22 = vadd.s32 16, %v7956_v17  ;;  %v7967_v23 = vadd.s32 24, %v7956_v17  ;;  %v7976_v28 = vadd.s32 32, %v7956_v17 }
 0x156   : > { %2788 = vmatpush1.bf16.xpose.msra.mxu0 %v7185_v59  ;;  %v7979_v29 = vadd.s32 40, %v7956_v17  ;;  %v7982_v30 = vadd.s32 48, %v7956_v17  ;;  %v7985_v31 = vadd.s32 56, %v7956_v17  ;;  %v7990_v39 = vadd.s32 64, %v7956_v17 }
 0x157   : > { %2901 = vmatpush1.bf16.xpose.msra.mxu1 %v7186_v7  ;;  %6758 = vmatprep.subr.msk.bf16.mxu0 %vm1862_vm0, %v7187_v8  ;;  %10124 = vst [vmem:[#allocation4_spill] sm:$0xff] %v7961_v21  ;;  %10125 = vst [vmem:[#allocation5_spill] sm:$0xff] %v7964_v22  ;;  %v7993_v40 = vadd.s32 72, %v7956_v17  ;;  %v7996_v42 = vadd.s32 80, %v7956_v17  ;;  %v7999_v43 = vadd.s32 88, %v7956_v17  ;;  %v8005_v52 = vadd.s32 96, %v7956_v17 }
 0x158   : > { %6782 = vmatprep.subr.msk.bf16.mxu1 %vm1862_vm0, %v7189_v62  ;;  %10126 = vst [vmem:[#allocation6_spill] sm:$0xff] %v7967_v23  ;;  %10129 = vst [vmem:[#allocation9_spill] sm:$0xff] %v7976_v28  ;;  %v8008_v54 = vadd.s32 104, %v7956_v17  ;;  %v8016_v27 = vadd.s32 112, %v7956_v17  ;;  %v8019_v58 = vadd.s32 120, %v7956_v17 }
 0x159   : > { %10130 = vst [vmem:[#allocation10_spill] sm:$0xff] %v7979_v29  ;;  %10131 = vst [vmem:[#allocation11_spill] sm:$0xff] %v7982_v30 }
 0x15a   : > { %10132 = vst [vmem:[#allocation12_spill] sm:$0xff] %v7985_v31  ;;  %10133 = vst [vmem:[#allocation13_spill] sm:$0xff] %v7990_v39 }
 0x15b   : > { %10134 = vst [vmem:[#allocation14_spill] sm:$0xff] %v7993_v40  ;;  %10135 = vst [vmem:[#allocation15_spill] sm:$0xff] %v7996_v42 }
 0x15c   : > { %10136 = vst [vmem:[#allocation16_spill] sm:$0xff] %v7999_v43  ;;  %10137 = vst [vmem:[#allocation17_spill] sm:$0xff] %v8005_v52 }
 0x15d   : > { %10138 = vst [vmem:[#allocation18_spill] sm:$0xff] %v8008_v54  ;;  %10139 = vst [vmem:[#allocation19_spill] sm:$0xff] %v8016_v27 }
 0x15e   : > { %2790 = vmatpush1.bf16.xpose.msra.mxu0 %v7191_v9  ;;  %10140 = vst [vmem:[#allocation20_spill] sm:$0xff] %v8019_v58 }
 0x15f   : > { %2903 = vmatpush1.bf16.xpose.msra.mxu1 %v7192_v10  ;;  %6759 = vmatprep.subr.msk.bf16.mxu0 %vm1862_vm0, %v7193_v11  ;;  %v7209_v10 = vld [vmem:[%s7469_s20 + $0x4c0] ss:$8 sps:$4 sm:$0xff]  }
 0x160   : > { %6783 = vmatprep.subr.msk.bf16.mxu1 %vm1862_vm0, %v7195_v12  ;;  %v7210_v11 = vld [vmem:[%s7469_s20 + $0x5c0] ss:$8 sps:$4 sm:$0xff]  }
 0x166   : > { %2792 = vmatpush1.bf16.xpose.msra.mxu0 %v7197_v14 }
 0x167   : > { %2905 = vmatpush1.bf16.xpose.msra.mxu1 %v7198_v15  ;;  %6760 = vmatprep.subr.msk.bf16.mxu0 %vm1862_vm0, %v7199_v18 }
 0x168   : > { %6784 = vmatprep.subr.msk.bf16.mxu1 %vm1862_vm0, %v7201_v20  ;;  %v2353_v33 = vpop.f32.mrb[0].mxu0 }
 0x169   : > { %v2466_v37 = vpop.f32.mrb[0].mxu1  ;;  %v3416_v45 = vsub.f32 %v7951_v13, %v2353_v33  ;;  %v2355_v46 = vpop.f32.mrb[1].mxu0 }
 0x16a   : > { %v3418_v48 = vsub.f32 %v7951_v13, %v2466_v37  ;;  %v2468_v49 = vpop.f32.mrb[1].mxu1  ;;  %v3417_v16 = vsub.f32 %v7951_v13, %v2355_v46  ;;  %v2357_v19 = vpop.f32.mrb[2].mxu0 }
 0x16b   : > { %v3419_v55 = vsub.f32 %v7951_v13, %v2468_v49  ;;  %v8012_v57 = vpop.f32.mrb[2].mxu1  ;;  %vm3992_vm1 = vcmp.lt.s32.totalorder %v3416_v45, 0  ;;  %v4280_v60 = vxor.u32 2147483647, %v3416_v45  ;;  %v3434_v32 = vsub.f32 %v7969_v25, %v2357_v19  ;;  %v2359_v35 = vpop.f32.mrb[3].mxu0 }
 0x16c   : > { %vm3994_vm2 = vcmp.lt.s32.totalorder %v3418_v48, 0  ;;  %v8022_v61 = vpop.f32.mrb[3].mxu1  ;;  %vm3993_vm3 = vcmp.lt.s32.totalorder %v3417_v16, 0  ;;  %v4281_v63 = vxor.u32 2147483647, %v3417_v16  ;;  %v3435_v38 = vsub.f32 %v7969_v25, %v2359_v35 }
 0x16d   : > { %v4282_v41 = vxor.u32 2147483647, %v3418_v48  ;;  %v4568_v0 = vsel %vm3992_vm1, %v4280_v60, %v3416_v45  ;;  %vm4010_vm4 = vcmp.lt.s32.totalorder %v3434_v32, 0  ;;  %v4298_v1 = vxor.u32 2147483647, %v3434_v32 }
 0x16e   : > { %vm3995_vm5 = vcmp.lt.s32.totalorder %v3419_v55, 0  ;;  %v4873_v44 = vand.u32 4294967168, %v4568_v0  ;;  %v4569_v47 = vsel %vm3993_vm3, %v4281_v63, %v3417_v16  ;;  %vm4011_vm6 = vcmp.lt.s32.totalorder %v3435_v38, 0  ;;  %2794 = vmatpush1.bf16.xpose.msra.mxu0 %v7203_v34  ;;  %v7211_v34 = vld [vmem:[%s7469_s20 + $0x4d4] ss:$8 sps:$4 sm:$0xff]  }
 0x16f   : > { %v4299_v2 = vxor.u32 2147483647, %v3435_v38  ;;  %2907 = vmatpush1.bf16.xpose.msra.mxu1 %v7204_v36  ;;  %v4874_v4 = vand.u32 4294967168, %v4569_v47  ;;  %v4586_v50 = vsel %vm4010_vm4, %v4298_v1, %v3434_v32  ;;  %v4570_v53 = vsel %vm3994_vm2, %v4282_v41, %v3418_v48  ;;  %6761 = vmatprep.subr.msk.bf16.mxu0 %vm1862_vm0, %v7205_v51  ;;  %v7213_v51 = vld [vmem:[%s7469_s20 + $0x5d4] ss:$8 sps:$4 sm:$0xff]  }
 0x170   : > { %v4283_v5 = vxor.u32 2147483647, %v3419_v55  ;;  %6785 = vmatprep.subr.msk.bf16.mxu1 %vm1862_vm0, %v7207_v24  ;;  %v5161_v56 = vor.u32 %v4873_v44, %v7956_v17  ;;  %v4891_v59 = vand.u32 4294967168, %v4586_v50  ;;  %v2363_v8 = vpop.f32.mrb[4].mxu0  ;;  %v4875_v62 = vand.u32 4294967168, %v4570_v53 }
 0x171   : > { %v4587_v7 = vsel %vm4011_vm6, %v4299_v2, %v3435_v38  ;;  %v2476_v9 = vpop.f32.mrb[4].mxu1  ;;  %v5162_v12 = vor.u32 %v4874_v4, %v7956_v17  ;;  %v3452_v15 = vsub.f32 %v7973_v26, %v2363_v8  ;;  %v2365_v18 = vpop.f32.mrb[5].mxu0  ;;  %v3436_v2 = vsub.f32 %v7969_v25, %v8012_v57  ;;  %v7215_v57 = vld [vmem:[%s7469_s20 + $0x4d0] ss:$8 sps:$4 sm:$0xff]   ;;  %v7247_v13 = vld [vmem:[%s7469_s20 + $0x634] ss:$8 sps:$4 sm:$0xff]  }
 0x172   : > { %v4892_v14 = vand.u32 4294967168, %v4587_v7  ;;  %v4571_v20 = vsel %vm3995_vm5, %v4283_v5, %v3419_v55  ;;  %v2478_v33 = vpop.f32.mrb[5].mxu1  ;;  %v5179_v36 = vor.u32 %v4891_v59, %v7961_v21  ;;  %v8039_v37 = vor.u32 %v4875_v62, %v7956_v17  ;;  %v2367_v48 = vpop.f32.mrb[6].mxu0  ;;  %v7216_v62 = vld [vmem:[%s7469_s20 + $0x5d0] ss:$8 sps:$4 sm:$0xff]  }
 0x173   : > { %v3453_v45 = vsub.f32 %v7973_v26, %v2365_v18  ;;  %v4876_v46 = vand.u32 4294967168, %v4571_v20  ;;  %v8042_v49 = vpop.f32.mrb[6].mxu1  ;;  %vm4028_vm7 = vcmp.lt.s32.totalorder %v3452_v15, 0  ;;  %v4316_v19 = vxor.u32 2147483647, %v3452_v15  ;;  %v2369_v24 = vpop.f32.mrb[7].mxu0 }
 0x174   : > { %v5180_v16 = vor.u32 %v4892_v14, %v7961_v21  ;;  %v3470_v55 = vsub.f32 %v8026_v6, %v2367_v48  ;;  %v8047_v60 = vpop.f32.mrb[7].mxu1  ;;  %vm5449_vm8 = vcmp.lt.s32.totalorder %v5161_v56, %v5179_v36  ;;  %v3471_v4 = vsub.f32 %v8026_v6, %v2369_v24  ;;  %v7219_v48 = vld [vmem:[%s7469_s20 + $0x5e4] ss:$8 sps:$4 sm:$0xff]  }
 0x175   : > { %vm4029_vm9 = vcmp.lt.s32.totalorder %v3453_v45, 0  ;;  %v4317_v32 = vxor.u32 2147483647, %v3453_v45  ;;  %v8050_v35 = vor.u32 %v4876_v46, %v7956_v17  ;;  %v4604_v63 = vsel %vm4028_vm7, %v4316_v19, %v3452_v15  ;;  %v7217_v46 = vld [vmem:[%s7469_s20 + $0x4e4] ss:$8 sps:$4 sm:$0xff]  }
 0x176   : > { %vm5488_vm10 = vcmp.lt.s32.totalorder %v5162_v12, %v5180_v16  ;;  %v5450_v38 = vsel %vm5449_vm8, %v5161_v56, %v5179_v36  ;;  %vm4046_vm11 = vcmp.lt.s32.totalorder %v3470_v55, 0  ;;  %v4909_v41 = vand.u32 4294967168, %v4604_v63  ;;  %2796 = vmatpush1.bf16.xpose.msra.mxu0 %v7209_v10 }
 0x177   : > { %v4605_v0 = vsel %vm4029_vm9, %v4317_v32, %v3453_v45  ;;  %v5489_v1 = vsel %vm5488_vm10, %v5162_v12, %v5180_v16  ;;  %v4334_v44 = vxor.u32 2147483647, %v3470_v55  ;;  %2909 = vmatpush1.bf16.xpose.msra.mxu1 %v7210_v11  ;;  %v3437_v50 = vsub.f32 %v7969_v25, %v8022_v61  ;;  %6762 = vmatprep.subr.msk.bf16.mxu0 %vm1862_vm0, %v7211_v34 }
 0x178   : > { %v4910_v47 = vand.u32 4294967168, %v4605_v0  ;;  %6786 = vmatprep.subr.msk.bf16.mxu1 %vm1862_vm0, %v7213_v51  ;;  %v5197_v53 = vor.u32 %v4909_v41, %v7964_v22  ;;  %v3454_v56 = vsub.f32 %v7973_v26, %v2476_v9  ;;  %v3455_v59 = vsub.f32 %v7973_v26, %v2478_v33  ;;  %v8062_v7 = vpop.f32.mrb[8].mxu0 }
 0x179   : > { %v4622_v5 = vsel %vm4046_vm11, %v4334_v44, %v3470_v55  ;;  %v8064_v8 = vpop.f32.mrb[8].mxu1  ;;  %vm4012_vm12 = vcmp.lt.s32.totalorder %v3436_v2, 0  ;;  %v4300_v11 = vxor.u32 2147483647, %v3436_v2  ;;  %v8069_v12 = vpop.f32.mrb[9].mxu0  ;;  %vm4047_vm14 = vcmp.lt.s32.totalorder %v3471_v4, 0 }
 0x17a   : > { %v5198_v10 = vor.u32 %v4910_v47, %v7964_v22  ;;  %v4927_v61 = vand.u32 4294967168, %v4622_v5  ;;  %v8071_v14 = vpop.f32.mrb[9].mxu1  ;;  %vm5451_vm13 = vcmp.lt.s32.totalorder %v5450_v38, %v5197_v53  ;;  %v4335_v9 = vxor.u32 2147483647, %v3471_v4  ;;  %v8073_v15 = vpop.f32.mrb[10].mxu0 }
 0x17b   : > { %vm4013_vm15 = vcmp.lt.s32.totalorder %v3437_v50, 0  ;;  %v8075_v18 = vpop.f32.mrb[10].mxu1  ;;  %v5452_v33 = vsel %vm5451_vm13, %v5450_v38, %v5197_v53  ;;  %v4588_v34 = vsel %vm4012_vm12, %v4300_v11, %v3436_v2  ;;  %v8078_v36 = vpop.f32.mrb[11].mxu0  ;;  %v4301_v55 = vxor.u32 2147483647, %v3437_v50 }
 0x17c   : > { %vm5490_vm1 = vcmp.lt.s32.totalorder %v5489_v1, %v5198_v10  ;;  %v5215_v20 = vor.u32 %v4927_v61, %v7967_v23  ;;  %v8080_v45 = vpop.f32.mrb[11].mxu1  ;;  %v4893_v51 = vand.u32 4294967168, %v4588_v34  ;;  %v4623_v16 = vsel %vm4047_vm14, %v4335_v9, %v3471_v4  ;;  %v8091_v2 = vpop.permute.xlu0 %3358 }
 0x17d   : > { %v8084_v19 = vsel %vm5490_vm1, %v5489_v1, %v5198_v10  ;;  %v4928_v24 = vand.u32 4294967168, %v4623_v16  ;;  %vm4030_vm3 = vcmp.lt.s32.totalorder %v3454_v56, 0  ;;  %v4318_v32 = vxor.u32 2147483647, %v3454_v56  ;;  %10142 = vst [vmem:[#allocation22_spill] sm:$0xff] %v8091_v2 }
 0x17e   : > { %vm5453_vm2 = vcmp.lt.s32.totalorder %v5452_v33, %v5215_v20  ;;  %v5181_v63 = vor.u32 %v4893_v51, %v7961_v21  ;;  %v4589_v38 = vsel %vm4013_vm15, %v4301_v55, %v3437_v50  ;;  %vm4031_vm4 = vcmp.lt.s32.totalorder %v3455_v59, 0  ;;  %2798 = vmatpush1.bf16.xpose.msra.mxu0 %v7215_v57  ;;  %v7221_v57 = vld [vmem:[%s7469_s20 + $0x4e0] ss:$8 sps:$4 sm:$0xff]  }
 0x17f   : > { %v4319_v41 = vxor.u32 2147483647, %v3455_v59  ;;  %2911 = vmatpush1.bf16.xpose.msra.mxu1 %v7216_v62  ;;  %v5216_v0 = vor.u32 %v4928_v24, %v7967_v23  ;;  %v4894_v44 = vand.u32 4294967168, %v4589_v38  ;;  %v4606_v47 = vsel %vm4030_vm3, %v4318_v32, %v3454_v56  ;;  %6763 = vmatprep.subr.msk.bf16.mxu0 %vm1862_vm0, %v7217_v46  ;;  %v7223_v24 = vld [vmem:[%s7469_s20 + $0x4f4] ss:$8 sps:$4 sm:$0xff]  }
 0x180   : > { %v3472_v1 = vsub.f32 %v8026_v6, %v8042_v49  ;;  %6787 = vmatprep.subr.msk.bf16.mxu1 %vm1862_vm0, %v7219_v48  ;;  %vm5527_vm5 = vcmp.lt.s32.totalorder %v8039_v37, %v5181_v63  ;;  %v4911_v4 = vand.u32 4294967168, %v4606_v47  ;;  %v3473_v53 = vsub.f32 %v8026_v6, %v8047_v60  ;;  %v8098_v5 = vpop.f32.mrb[12].mxu0 }
 0x181   : > { %v4607_v50 = vsel %vm4031_vm4, %v4319_v41, %v3455_v59  ;;  %v8100_v56 = vpop.f32.mrb[12].mxu1  ;;  %vm5492_vm6 = vcmp.lt.s32.totalorder %v8084_v19, %v5216_v0  ;;  %v5182_v49 = vor.u32 %v4894_v44, %v7961_v21  ;;  %v5528_v62 = vsel %vm5527_vm5, %v8039_v37, %v5181_v63  ;;  %v8106_v61 = vpop.f32.mrb[13].mxu0  ;;  %v7222_v59 = vld [vmem:[%s7469_s20 + $0x5e0] ss:$8 sps:$4 sm:$0xff]   ;;  %v7225_v41 = vld [vmem:[%s7469_s20 + $0x5f4] ss:$8 sps:$4 sm:$0xff]  }
 0x182   : > { %v4912_v10 = vand.u32 4294967168, %v4607_v50  ;;  %v8108_v11 = vpop.f32.mrb[13].mxu1  ;;  %v5199_v60 = vor.u32 %v4911_v4, %v7964_v22  ;;  %vm4048_vm7 = vcmp.lt.s32.totalorder %v3472_v1, 0  ;;  %v4336_v9 = vxor.u32 2147483647, %v3472_v1  ;;  %v8112_v34 = vpop.f32.mrb[14].mxu0 }
 0x183   : > { %vm4049_vm8 = vcmp.lt.s32.totalorder %v3473_v53, 0  ;;  %v8114_v46 = vpop.f32.mrb[14].mxu1  ;;  %vm5566_vm9 = vcmp.lt.s32.totalorder %v8050_v35, %v5182_v49  ;;  %v4337_v48 = vxor.u32 2147483647, %v3473_v53  ;;  %v3488_v51 = vsub.f32 %v8091_v2, %v8062_v7  ;;  %v8120_v16 = vpop.f32.mrb[15].mxu0 }
 0x184   : > { %v5200_v37 = vor.u32 %v4912_v10, %v7964_v22  ;;  %v8122_v55 = vpop.f32.mrb[15].mxu1  ;;  %vm5529_vm10 = vcmp.lt.s32.totalorder %v5528_v62, %v5199_v60  ;;  %v5567_v32 = vsel %vm5566_vm9, %v8050_v35, %v5182_v49  ;;  %v4624_v63 = vsel %vm4048_vm7, %v4336_v9, %v3472_v1  ;;  %v8129_v50 = vpop.permute.xlu1 %3363  ;;  %v7241_v21 = vld [vmem:[%s7469_s20 + $0x624] ss:$8 sps:$4 sm:$0xff]  }
 0x185   : > { %v5454_v38 = vsel %vm5453_vm2, %v5452_v33, %v5215_v20  ;;  %v4929_v44 = vand.u32 4294967168, %v4624_v63  ;;  %v5530_v47 = vsel %vm5529_vm10, %v5528_v62, %v5199_v60  ;;  %v4625_v4 = vsel %vm4049_vm8, %v4337_v48, %v3473_v53  ;;  %10143 = vst [vmem:[#allocation23_spill] sm:$0xff] %v8129_v50 }
 0x186   : > { %vm5568_vm11 = vcmp.lt.s32.totalorder %v5567_v32, %v5200_v37  ;;  %v4930_v7 = vand.u32 4294967168, %v4625_v4  ;;  %vm4064_vm12 = vcmp.lt.s32.totalorder %v3488_v51, 0  ;;  %v4352_v3 = vxor.u32 2147483647, %v3488_v51  ;;  %2800 = vmatpush1.bf16.xpose.msra.mxu0 %v7221_v57 }
 0x187   : > { %v5569_v10 = vsel %vm5568_vm11, %v5567_v32, %v5200_v37  ;;  %2913 = vmatpush1.bf16.xpose.msra.mxu1 %v7222_v59  ;;  %v5217_v35 = vor.u32 %v4929_v44, %v7967_v23  ;;  %v3490_v20 = vsub.f32 %v8091_v2, %v8064_v8  ;;  %v3489_v33 = vsub.f32 %v8091_v2, %v8069_v12 }
 0x188   : > { %v8139_v1 = vsel %vm5492_vm6, %v8084_v19, %v5216_v0  ;;  %6764 = vmatprep.subr.msk.bf16.mxu0 %vm1862_vm0, %v7223_v24  ;;  %v5218_v53 = vor.u32 %v4930_v7, %v7967_v23  ;;  %v4640_v57 = vsel %vm4064_vm12, %v4352_v3, %v3488_v51  ;;  %v3491_v49 = vsub.f32 %v8091_v2, %v8071_v14  ;;  %v8147_v62 = vpop.f32.mrb[16].mxu0  ;;  %v7227_v19 = vld [vmem:[%s7469_s20 + $0x4f0] ss:$8 sps:$4 sm:$0xff]   ;;  %v7229_v14 = vld [vmem:[%s7469_s20 + $0x604] ss:$8 sps:$4 sm:$0xff]  }
 0x189   : > { %v3506_v8 = vsub.f32 %v8129_v50, %v8073_v15  ;;  %v8149_v12 = vpop.f32.mrb[16].mxu1  ;;  %6788 = vmatprep.subr.msk.bf16.mxu1 %vm1862_vm0, %v7225_v41  ;;  %v7228_v0 = vld [vmem:[%s7469_s20 + $0x5f0] ss:$8 sps:$4 sm:$0xff]   ;;  %vm5531_vm13 = vcmp.lt.s32.totalorder %v5530_v47, %v5217_v35  ;;  %v4945_v59 = vand.u32 4294967168, %v4640_v57  ;;  %vm4066_vm14 = vcmp.lt.s32.totalorder %v3490_v20, 0  ;;  %v8154_v9 = vpop.f32.mrb[17].mxu0 }
 0x18a   : > { %v4354_v60 = vxor.u32 2147483647, %v3490_v20  ;;  %v8156_v3 = vpop.f32.mrb[17].mxu1  ;;  %vm5570_vm15 = vcmp.lt.s32.totalorder %v5569_v10, %v5218_v53  ;;  %v5532_v15 = vsel %vm5531_vm13, %v5530_v47, %v5217_v35  ;;  %vm4065_vm1 = vcmp.lt.s32.totalorder %v3489_v33, 0  ;;  %v8159_v48 = vpop.f32.mrb[18].mxu0 }
 0x18b   : > { %v4353_v37 = vxor.u32 2147483647, %v3489_v33  ;;  %v8161_v51 = vpop.f32.mrb[18].mxu1  ;;  %v5233_v24 = vor.u32 %v4945_v59, %v7976_v28  ;;  %vm4067_vm2 = vcmp.lt.s32.totalorder %v3491_v49, 0  ;;  %v4355_v63 = vxor.u32 2147483647, %v3491_v49 }
 0x18c   : > { %v4642_v32 = vsel %vm4066_vm14, %v4354_v60, %v3490_v20  ;;  %v8164_v41 = vpop.f32.mrb[19].mxu0  ;;  %v8166_v44 = vpop.f32.mrb[19].mxu1  ;;  %v5571_v57 = vsel %vm5570_vm15, %v5569_v10, %v5218_v53  ;;  %vm4082_vm3 = vcmp.lt.s32.totalorder %v3506_v8, 0  ;;  %v7231_v47 = vld [vmem:[%s7469_s20 + $0x704] ss:$8 sps:$4 sm:$0xff]   ;;  %v3508_v20 = vsub.f32 %v8129_v50, %v8075_v18 }
 0x18d   : > { %v4947_v4 = vand.u32 4294967168, %v4642_v32  ;;  %v4641_v7 = vsel %vm4065_vm1, %v4353_v37, %v3489_v33  ;;  %vm5455_vm4 = vcmp.lt.s32.totalorder %v5454_v38, %v5233_v24  ;;  %v4643_v2 = vsel %vm4067_vm2, %v4355_v63, %v3491_v49  ;;  %v8177_v49 = vpop.permute.xlu0 %3368  ;;  %v7234_v63 = vld [vmem:[%s7469_s20 + $0x700] ss:$8 sps:$4 sm:$0xff]  }
 0x18e   : > { %v4946_v35 = vand.u32 4294967168, %v4641_v7  ;;  %v4370_v23 = vxor.u32 2147483647, %v3506_v8  ;;  %v4948_v22 = vand.u32 4294967168, %v4643_v2  ;;  %v5456_v59 = vsel %vm5455_vm4, %v5454_v38, %v5233_v24  ;;  %2802 = vmatpush1.bf16.xpose.msra.mxu0 %v7227_v19  ;;  %10144 = vst [vmem:[#allocation24_spill] sm:$0xff] %v8177_v49 }
 0x18f   : > { %v5235_v6 = vor.u32 %v4947_v4, %v7976_v28  ;;  %2915 = vmatpush1.bf16.xpose.msra.mxu1 %v7228_v0  ;;  %v3507_v10 = vsub.f32 %v8129_v50, %v8078_v36  ;;  %v3509_v53 = vsub.f32 %v8129_v50, %v8080_v45  ;;  %6797 = vmatprep.subr.msk.bf16.mxu0 %vm1862_vm0, %v7229_v14  ;;  %vm4084_vm6 = vcmp.lt.s32.totalorder %v3508_v20, 0 }
 0x190   : > { %v5234_v60 = vor.u32 %v4946_v35, %v7976_v28  ;;  %v4658_v33 = vsel %vm4082_vm3, %v4370_v23, %v3506_v8  ;;  %v5236_v2 = vor.u32 %v4948_v22, %v7976_v28  ;;  %v8181_v38 = vpop.f32.mrb[20].mxu0  ;;  %6821 = vmatprep.subr.msk.bf16.mxu1 %vm1862_vm0, %v7231_v47  ;;  %v7233_v23 = vld [vmem:[%s7469_s20 + $0x600] ss:$8 sps:$4 sm:$0xff]   ;;  %v4372_v36 = vxor.u32 2147483647, %v3508_v20 }
 0x191   : > { %vm5533_vm5 = vcmp.lt.s32.totalorder %v5532_v15, %v5235_v6  ;;  %v4963_v18 = vand.u32 4294967168, %v4658_v33  ;;  %v8183_v19 = vpop.f32.mrb[20].mxu1  ;;  %vm4083_vm8 = vcmp.lt.s32.totalorder %v3507_v10, 0  ;;  %v8188_v8 = vpop.f32.mrb[21].mxu0  ;;  %v4371_v14 = vxor.u32 2147483647, %v3507_v10 }
 0x192   : > { %vm5494_vm7 = vcmp.lt.s32.totalorder %v8139_v1, %v5234_v60  ;;  %v5534_v45 = vsel %vm5533_vm5, %v5532_v15, %v5235_v6  ;;  %v8190_v0 = vpop.f32.mrb[21].mxu1  ;;  %vm5572_vm9 = vcmp.lt.s32.totalorder %v5571_v57, %v5236_v2  ;;  %v8194_v24 = vpop.f32.mrb[22].mxu0  ;;  %v4660_v4 = vsel %vm4084_vm6, %v4372_v36, %v3508_v20 }
 0x193   : > { %v5251_v22 = vor.u32 %v4963_v18, %v7979_v29  ;;  %v5495_v37 = vsel %vm5494_vm7, %v8139_v1, %v5234_v60  ;;  %v8196_v32 = vpop.f32.mrb[22].mxu1  ;;  %vm4085_vm10 = vcmp.lt.s32.totalorder %v3509_v53, 0  ;;  %v4373_v6 = vxor.u32 2147483647, %v3509_v53  ;;  %v8200_v7 = vpop.f32.mrb[23].mxu0 }
 0x194   : > { %v5573_v15 = vsel %vm5572_vm9, %v5571_v57, %v5236_v2  ;;  %v8202_v47 = vpop.f32.mrb[23].mxu1  ;;  %v4965_v35 = vand.u32 4294967168, %v4660_v4  ;;  %v4659_v33 = vsel %vm4083_vm8, %v4371_v14, %v3507_v10  ;;  %v3524_v1 = vsub.f32 %v8177_v49, %v8098_v5  ;;  %v7235_v60 = vld [vmem:[%s7469_s20 + $0x614] ss:$8 sps:$4 sm:$0xff]   ;;  %v7374_v57 = vld [vmem:[%s9988_s1] ss:$8 sps:$4 sm:$0xff]  }
 0x195   : > { %vm5457_vm11 = vcmp.lt.s32.totalorder %v5456_v59, %v5251_v22  ;;  %v4964_v18 = vand.u32 4294967168, %v4659_v33  ;;  %v4661_v50 = vsel %vm4085_vm10, %v4373_v6, %v3509_v53  ;;  %v3526_v20 = vsub.f32 %v8177_v49, %v8100_v56  ;;  %2804 = vmatmul.mubr.bf16.vlgmr.msra.gmra.mrb[64].mxu0 %v7374_v57  ;;  %v7237_v2 = vld [vmem:[%s7469_s20 + $0x714] ss:$8 sps:$4 sm:$0xff]   ;;  %v7239_v6 = vld [vmem:[%s7469_s20 + $0x610] ss:$8 sps:$4 sm:$0xff]  }
 0x196   : > { %v8208_v28 = vsel %vm5457_vm11, %v5456_v59, %v5251_v22  ;;  %2917 = vmatmul.mubr.bf16.vlgmr.msra.gmra.mrb[64].mxu1 %v7374_v57  ;;  %v5253_v10 = vor.u32 %v4965_v35, %v7979_v29  ;;  %v4966_v36 = vand.u32 4294967168, %v4661_v50  ;;  %vm4100_vm12 = vcmp.lt.s32.totalorder %v3524_v1, 0  ;;  %2998 = vmatpush1.bf16.xpose.msra.mxu0 %v7233_v23  ;;  %v8220_v22 = vpop.permute.xlu1 %3373  ;;  %v7375_v14 = vld [vmem:[%s9988_s1 + $0x14] ss:$8 sps:$4 sm:$0xff]  }
 0x197   : > { %v4388_v5 = vxor.u32 2147483647, %v3524_v1  ;;  %3111 = vmatpush1.bf16.xpose.msra.mxu1 %v7234_v63  ;;  %v5252_v59 = vor.u32 %v4964_v18, %v7979_v29  ;;  %vm4102_vm13 = vcmp.lt.s32.totalorder %v3526_v20, 0  ;;  %v4390_v53 = vxor.u32 2147483647, %v3526_v20  ;;  %10145 = vst [vmem:[#allocation25_spill] sm:$0xff] %v8220_v22  ;;  %6766 = vmatprep.mubr.msk.bf16.mxu0 %vm1862_vm0, %v7375_v14 }
 0x198   : > { %v3525_v56 = vsub.f32 %v8177_v49, %v8106_v61  ;;  %6790 = vmatprep.mubr.msk.bf16.mxu1 %vm1862_vm0, %v7375_v14  ;;  %vm5535_vm14 = vcmp.lt.s32.totalorder %v5534_v45, %v5253_v10  ;;  %v5254_v50 = vor.u32 %v4966_v36, %v7979_v29  ;;  %v3527_v63 = vsub.f32 %v8177_v49, %v8108_v11  ;;  %v8230_v4 = vpop.f32.mrb[24].mxu0 }
 0x199   : > { %v4676_v23 = vsel %vm4100_vm12, %v4388_v5, %v3524_v1  ;;  %v8232_v61 = vpop.f32.mrb[24].mxu1  ;;  %6798 = vmatprep.subr.msk.bf16.mxu0 %vm1862_vm0, %v7235_v60  ;;  %vm5496_vm15 = vcmp.lt.s32.totalorder %v5495_v37, %v5252_v59  ;;  %v4678_v33 = vsel %vm4102_vm13, %v4390_v53, %v3526_v20  ;;  %v5536_v18 = vsel %vm5535_vm14, %v5534_v45, %v5253_v10  ;;  %v8237_v57 = vpop.f32.mrb[25].mxu0  ;;  %v7240_v1 = vld [vmem:[%s7469_s20 + $0x710] ss:$8 sps:$4 sm:$0xff]  }
 0x19a   : > { %v4981_v35 = vand.u32 4294967168, %v4676_v23  ;;  %v8239_v14 = vpop.f32.mrb[25].mxu1  ;;  %6822 = vmatprep.subr.msk.bf16.mxu1 %vm1862_vm0, %v7237_v2  ;;  %vm5574_vm1 = vcmp.lt.s32.totalorder %v5573_v15, %v5254_v50  ;;  %v4983_v11 = vand.u32 4294967168, %v4678_v33  ;;  %vm4101_vm2 = vcmp.lt.s32.totalorder %v3525_v56, 0  ;;  %v8243_v5 = vpop.f32.mrb[26].mxu0 }
 0x19b   : > { %v4389_v36 = vxor.u32 2147483647, %v3525_v56  ;;  %v8245_v60 = vpop.f32.mrb[26].mxu1  ;;  %v5497_v20 = vsel %vm5496_vm15, %v5495_v37, %v5252_v59  ;;  %vm4103_vm3 = vcmp.lt.s32.totalorder %v3527_v63, 0  ;;  %v4391_v45 = vxor.u32 2147483647, %v3527_v63 }
 0x19c   : > { %v5269_v23 = vor.u32 %v4981_v35, %v7982_v30  ;;  %v8248_v10 = vpop.f32.mrb[27].mxu0  ;;  %v8250_v53 = vpop.f32.mrb[27].mxu1  ;;  %v5271_v2 = vor.u32 %v4983_v11, %v7982_v30  ;;  %v5575_v33 = vsel %vm5574_vm1, %v5573_v15, %v5254_v50  ;;  %v3542_v29 = vsub.f32 %v8220_v22, %v8112_v34  ;;  %v7376_v59 = vld [vmem:[%s9988_s1 + $0x10] ss:$8 sps:$4 sm:$0xff]   ;;  %v7243_v11 = vld [vmem:[%s7469_s20 + $0x724] ss:$8 sps:$4 sm:$0xff]  }
 0x19d   : > { %v4677_v49 = vsel %vm4101_vm2, %v4389_v36, %v3525_v56  ;;  %v4679_v35 = vsel %vm4103_vm3, %v4391_v45, %v3527_v63  ;;  %v3544_v37 = vsub.f32 %v8220_v22, %v8114_v46  ;;  %2814 = vmatmul.mubr.bf16.gmra.mrb[68].mxu0 %v7376_v59  ;;  %v8265_v50 = vpop.permute.xlu0 %3378  ;;  %v7377_v63 = vld [vmem:[%s9988_s1 + $0x24] ss:$8 sps:$4 sm:$0xff]   ;;  %v7245_v45 = vld [vmem:[%s7469_s20 + $0x620] ss:$8 sps:$4 sm:$0xff]  }
 0x19e   : > { %vm5459_vm4 = vcmp.lt.s32.totalorder %v8208_v28, %v5269_v23  ;;  %v4982_v26 = vand.u32 4294967168, %v4677_v49  ;;  %2927 = vmatmul.mubr.bf16.gmra.mrb[68].mxu1 %v7376_v59  ;;  %vm5537_vm5 = vcmp.lt.s32.totalorder %v5536_v18, %v5271_v2  ;;  %v4984_v15 = vand.u32 4294967168, %v4679_v35  ;;  %3000 = vmatpush1.bf16.xpose.msra.mxu0 %v7239_v6  ;;  %10146 = vst [vmem:[#allocation26_spill] sm:$0xff] %v8265_v50 }
 0x19f   : > { %vm4118_vm6 = vcmp.lt.s32.totalorder %v3542_v29, 0  ;;  %v4406_v56 = vxor.u32 2147483647, %v3542_v29  ;;  %3113 = vmatpush1.bf16.xpose.msra.mxu1 %v7240_v1  ;;  %v5460_v49 = vsel %vm5459_vm4, %v8208_v28, %v5269_v23  ;;  %vm4120_vm7 = vcmp.lt.s32.totalorder %v3544_v37, 0  ;;  %6767 = vmatprep.mubr.msk.bf16.mxu0 %vm1862_vm0, %v7377_v63 }
 0x1a0   : > { %v5270_v34 = vor.u32 %v4982_v26, %v7982_v30  ;;  %v4408_v46 = vxor.u32 2147483647, %v3544_v37  ;;  %6791 = vmatprep.mubr.msk.bf16.mxu1 %vm1862_vm0, %v7377_v63  ;;  %v5272_v6 = vor.u32 %v4984_v15, %v7982_v30  ;;  %v5538_v26 = vsel %vm5537_vm5, %v5536_v18, %v5271_v2  ;;  %v8276_v36 = vpop.f32.mrb[28].mxu0  ;;  %6799 = vmatprep.subr.msk.bf16.mxu0 %vm1862_vm0, %v7241_v21 }
 0x1a1   : > { %v4694_v1 = vsel %vm4118_vm6, %v4406_v56, %v3542_v29  ;;  %v3543_v28 = vsub.f32 %v8220_v22, %v8120_v16  ;;  %v8278_v23 = vpop.f32.mrb[28].mxu1  ;;  %v3545_v15 = vsub.f32 %v8220_v22, %v8122_v55  ;;  %v8285_v29 = vpop.f32.mrb[29].mxu0  ;;  %6823 = vmatprep.subr.msk.bf16.mxu1 %vm1862_vm0, %v7243_v11  ;;  %v7246_v16 = vld [vmem:[%s7469_s20 + $0x720] ss:$8 sps:$4 sm:$0xff]   ;;  %v3560_v25 = vsub.f32 %v8265_v50, %v8147_v62 }
 0x1a2   : > { %vm5498_vm8 = vcmp.lt.s32.totalorder %v5497_v20, %v5270_v34  ;;  %v4999_v35 = vand.u32 4294967168, %v4694_v1  ;;  %v4696_v59 = vsel %vm4120_vm7, %v4408_v46, %v3544_v37  ;;  %v8287_v18 = vpop.f32.mrb[29].mxu1  ;;  %vm5576_vm9 = vcmp.lt.s32.totalorder %v5575_v33, %v5272_v6  ;;  %v8291_v56 = vpop.f32.mrb[30].mxu0 }
 0x1a3   : > { %v5001_v2 = vand.u32 4294967168, %v4696_v59  ;;  %vm4119_vm10 = vcmp.lt.s32.totalorder %v3543_v28, 0  ;;  %v4407_v21 = vxor.u32 2147483647, %v3543_v28  ;;  %v8293_v63 = vpop.f32.mrb[30].mxu1  ;;  %v5499_v46 = vsel %vm5498_vm8, %v5497_v20, %v5270_v34  ;;  %v8296_v1 = vpop.f32.mrb[31].mxu0 }
 0x1a4   : > { %v5287_v37 = vor.u32 %v4999_v35, %v7985_v31  ;;  %vm4121_vm11 = vcmp.lt.s32.totalorder %v3545_v15, 0  ;;  %v4409_v55 = vxor.u32 2147483647, %v3545_v15  ;;  %v8298_v30 = vpop.f32.mrb[31].mxu1  ;;  %v5577_v59 = vsel %vm5576_vm9, %v5575_v33, %v5272_v6  ;;  %v7378_v34 = vld [vmem:[%s9988_s1 + $0x20] ss:$8 sps:$4 sm:$0xff]  }
 0x1a5   : > { %v5289_v11 = vor.u32 %v5001_v2, %v7985_v31  ;;  %v4695_v22 = vsel %vm4119_vm10, %v4407_v21, %v3543_v28  ;;  %v3562_v20 = vsub.f32 %v8265_v50, %v8149_v12  ;;  %2824 = vmatmul.mubr.bf16.gmra.mrb[72].mxu0 %v7378_v34  ;;  %v7249_v35 = vld [vmem:[%s7469_s20 + $0x734] ss:$8 sps:$4 sm:$0xff]   ;;  %vm4136_vm14 = vcmp.lt.s32.totalorder %v3560_v25, 0  ;;  %v8322_v21 = vpop.permute.xlu1 %3383 }
 0x1a6   : > { %vm5461_vm12 = vcmp.lt.s32.totalorder %v5460_v49, %v5287_v37  ;;  %v5000_v17 = vand.u32 4294967168, %v4695_v22  ;;  %v4697_v58 = vsel %vm4121_vm11, %v4409_v55, %v3545_v15  ;;  %2937 = vmatmul.mubr.bf16.gmra.mrb[72].mxu1 %v7378_v34  ;;  %v4424_v33 = vxor.u32 2147483647, %v3560_v25  ;;  %3002 = vmatpush1.bf16.xpose.msra.mxu0 %v7245_v45  ;;  %v7379_v12 = vld [vmem:[%s9988_s1 + $0x34] ss:$8 sps:$4 sm:$0xff]   ;;  %10147 = vst [vmem:[#allocation27_spill] sm:$0xff] %v8322_v21 }
 0x1a7   : > { %vm5539_vm13 = vcmp.lt.s32.totalorder %v5538_v26, %v5289_v11  ;;  %v5002_v28 = vand.u32 4294967168, %v4697_v58  ;;  %3115 = vmatpush1.bf16.xpose.msra.mxu1 %v7246_v16  ;;  %v5462_v22 = vsel %vm5461_vm12, %v5460_v49, %v5287_v37  ;;  %vm4138_vm15 = vcmp.lt.s32.totalorder %v3562_v20, 0  ;;  %6768 = vmatprep.mubr.msk.bf16.mxu0 %vm1862_vm0, %v7379_v12  ;;  %v7251_v37 = vld [vmem:[%s7469_s20 + $0x630] ss:$8 sps:$4 sm:$0xff]  }
 0x1a8   : > { %v5288_v62 = vor.u32 %v5000_v17, %v7985_v31  ;;  %v4426_v6 = vxor.u32 2147483647, %v3562_v20  ;;  %6792 = vmatprep.mubr.msk.bf16.mxu1 %vm1862_vm0, %v7379_v12  ;;  %v4712_v15 = vsel %vm4136_vm14, %v4424_v33, %v3560_v25  ;;  %v5540_v45 = vsel %vm5539_vm13, %v5538_v26, %v5289_v11  ;;  %6800 = vmatprep.subr.msk.bf16.mxu0 %vm1862_vm0, %v7247_v13  ;;  %v7252_v55 = vld [vmem:[%s7469_s20 + $0x730] ss:$8 sps:$4 sm:$0xff]  }
 0x1a9   : > { %v5290_v58 = vor.u32 %v5002_v28, %v7985_v31  ;;  %v3561_v17 = vsub.f32 %v8265_v50, %v8154_v9  ;;  %v5017_v49 = vand.u32 4294967168, %v4712_v15  ;;  %v3563_v2 = vsub.f32 %v8265_v50, %v8156_v3  ;;  %6824 = vmatprep.subr.msk.bf16.mxu1 %vm1862_vm0, %v7249_v35  ;;  %v7253_v35 = vld [vmem:[%s7469_s20 + $0x644] ss:$8 sps:$4 sm:$0xff]  }
 0x1aa   : > { %vm5500_vm1 = vcmp.lt.s32.totalorder %v5499_v46, %v5288_v62  ;;  %v4714_v16 = vsel %vm4138_vm15, %v4426_v6, %v3562_v20  ;;  %v3578_v28 = vsub.f32 %v8322_v21, %v8159_v48  ;;  %v3580_v12 = vsub.f32 %v8322_v21, %v8161_v51  ;;  %v7381_v51 = vld [vmem:[%s9988_s1 + $0x44] ss:$8 sps:$4 sm:$0xff]  }
 0x1ab   : > { %vm5578_vm2 = vcmp.lt.s32.totalorder %v5577_v59, %v5290_v58  ;;  %v5019_v25 = vand.u32 4294967168, %v4714_v16  ;;  %vm4137_vm3 = vcmp.lt.s32.totalorder %v3561_v17, 0  ;;  %v4425_v26 = vxor.u32 2147483647, %v3561_v17 }
 0x1ac   : > { %v5305_v9 = vor.u32 %v5017_v49, %v7990_v39  ;;  %v5501_v13 = vsel %vm5500_vm1, %v5499_v46, %v5288_v62  ;;  %vm4139_vm4 = vcmp.lt.s32.totalorder %v3563_v2, 0  ;;  %v4427_v11 = vxor.u32 2147483647, %v3563_v2  ;;  %v7380_v46 = vld [vmem:[%s9988_s1 + $0x30] ss:$8 sps:$4 sm:$0xff]  }
 0x1ad   : > { %v5307_v20 = vor.u32 %v5019_v25, %v7990_v39  ;;  %v4713_v3 = vsel %vm4137_vm3, %v4425_v26, %v3561_v17  ;;  %v5579_v34 = vsel %vm5578_vm2, %v5577_v59, %v5290_v58  ;;  %2834 = vmatmul.mubr.bf16.gmra.mrb[76].mxu0 %v7380_v46  ;;  %v7255_v62 = vld [vmem:[%s7469_s20 + $0x744] ss:$8 sps:$4 sm:$0xff]   ;;  %vm4154_vm7 = vcmp.lt.s32.totalorder %v3578_v28, 0 }
 0x1ae   : > { %vm5463_vm5 = vcmp.lt.s32.totalorder %v5462_v22, %v5305_v9  ;;  %v5018_v33 = vand.u32 4294967168, %v4713_v3  ;;  %v4715_v6 = vsel %vm4139_vm4, %v4427_v11, %v3563_v2  ;;  %2947 = vmatmul.mubr.bf16.gmra.mrb[76].mxu1 %v7380_v46  ;;  %v4442_v59 = vxor.u32 2147483647, %v3578_v28  ;;  %3004 = vmatpush1.bf16.xpose.msra.mxu0 %v7251_v37 }
 0x1af   : > { %vm5541_vm6 = vcmp.lt.s32.totalorder %v5540_v45, %v5307_v20  ;;  %v5020_v15 = vand.u32 4294967168, %v4715_v6  ;;  %3117 = vmatpush1.bf16.xpose.msra.mxu1 %v7252_v55  ;;  %v5464_v58 = vsel %vm5463_vm5, %v5462_v22, %v5305_v9  ;;  %vm4156_vm8 = vcmp.lt.s32.totalorder %v3580_v12, 0  ;;  %6769 = vmatprep.mubr.msk.bf16.mxu0 %vm1862_vm0, %v7381_v51  ;;  %v8350_v55 = vpop.permute.xlu0 %3388  ;;  %v7257_v9 = vld [vmem:[%s7469_s20 + $0x640] ss:$8 sps:$4 sm:$0xff]  }
 0x1b0   : > { %v5306_v48 = vor.u32 %v5018_v33, %v7990_v39  ;;  %v4444_v17 = vxor.u32 2147483647, %v3580_v12  ;;  %6793 = vmatprep.mubr.msk.bf16.mxu1 %vm1862_vm0, %v7381_v51  ;;  %v4730_v16 = vsel %vm4154_vm7, %v4442_v59, %v3578_v28  ;;  %v5542_v2 = vsel %vm5541_vm6, %v5540_v45, %v5307_v20  ;;  %6801 = vmatprep.subr.msk.bf16.mxu0 %vm1862_vm0, %v7253_v35  ;;  %v7258_v20 = vld [vmem:[%s7469_s20 + $0x740] ss:$8 sps:$4 sm:$0xff]   ;;  %v7261_v59 = vld [vmem:[%s7469_s20 + $0x754] ss:$8 sps:$4 sm:$0xff]  }
 0x1b1   : > { %v5308_v49 = vor.u32 %v5020_v15, %v7990_v39  ;;  %v3579_v37 = vsub.f32 %v8322_v21, %v8164_v41  ;;  %v5035_v22 = vand.u32 4294967168, %v4730_v16  ;;  %v3581_v26 = vsub.f32 %v8322_v21, %v8166_v44  ;;  %10148 = vst [vmem:[#allocation28_spill] sm:$0xff] %v8350_v55  ;;  %6825 = vmatprep.subr.msk.bf16.mxu1 %vm1862_vm0, %v7255_v62 }
 0x1b2   : > { %vm5502_vm9 = vcmp.lt.s32.totalorder %v5501_v13, %v5306_v48  ;;  %v4732_v25 = vsel %vm4156_vm8, %v4444_v17, %v3580_v12  ;;  %v3596_v6 = vsub.f32 %v8350_v55, %v8181_v38  ;;  %v7259_v12 = vld [vmem:[%s7469_s20 + $0x654] ss:$8 sps:$4 sm:$0xff]   ;;  %v3598_v15 = vsub.f32 %v8350_v55, %v8183_v19 }
 0x1b3   : > { %vm5580_vm10 = vcmp.lt.s32.totalorder %v5579_v34, %v5308_v49  ;;  %v5037_v11 = vand.u32 4294967168, %v4732_v25  ;;  %vm4155_vm11 = vcmp.lt.s32.totalorder %v3579_v37, 0  ;;  %v4443_v45 = vxor.u32 2147483647, %v3579_v37  ;;  %v7383_v19 = vld [vmem:[%s9988_s1 + $0x54] ss:$8 sps:$4 sm:$0xff]  }
 0x1b4   : > { %v5323_v41 = vor.u32 %v5035_v22, %v7993_v40  ;;  %v5503_v3 = vsel %vm5502_vm9, %v5501_v13, %v5306_v48  ;;  %vm4157_vm12 = vcmp.lt.s32.totalorder %v3581_v26, 0  ;;  %v4445_v28 = vxor.u32 2147483647, %v3581_v26  ;;  %v7382_v13 = vld [vmem:[%s9988_s1 + $0x40] ss:$8 sps:$4 sm:$0xff]  }
 0x1b5   : > { %v5325_v35 = vor.u32 %v5037_v11, %v7993_v40  ;;  %v4731_v44 = vsel %vm4155_vm11, %v4443_v45, %v3579_v37  ;;  %v5581_v33 = vsel %vm5580_vm10, %v5579_v34, %v5308_v49  ;;  %2844 = vmatmul.mubr.bf16.gmra.mrb[80].mxu0 %v7382_v13  ;;  %vm4172_vm15 = vcmp.lt.s32.totalorder %v3596_v6, 0  ;;  %v7263_v11 = vld [vmem:[%s7469_s20 + $0x650] ss:$8 sps:$4 sm:$0xff]  }
 0x1b6   : > { %vm5465_vm13 = vcmp.lt.s32.totalorder %v5464_v58, %v5323_v41  ;;  %v5036_v46 = vand.u32 4294967168, %v4731_v44  ;;  %v4733_v62 = vsel %vm4157_vm12, %v4445_v28, %v3581_v26  ;;  %2957 = vmatmul.mubr.bf16.gmra.mrb[80].mxu1 %v7382_v13  ;;  %v4460_v34 = vxor.u32 2147483647, %v3596_v6  ;;  %3006 = vmatpush1.bf16.xpose.msra.mxu0 %v7257_v9  ;;  %v8378_v9 = vpop.permute.xlu1 %3393  ;;  %v7267_v13 = vld [vmem:[%s7469_s20 + $0x764] ss:$8 sps:$4 sm:$0xff]  }
 0x1b7   : > { %vm5543_vm14 = vcmp.lt.s32.totalorder %v5542_v2, %v5325_v35  ;;  %v5038_v48 = vand.u32 4294967168, %v4733_v62  ;;  %3119 = vmatpush1.bf16.xpose.msra.mxu1 %v7258_v20  ;;  %v5466_v17 = vsel %vm5465_vm13, %v5464_v58, %v5323_v41  ;;  %vm4174_vm1 = vcmp.lt.s32.totalorder %v3598_v15, 0  ;;  %6770 = vmatprep.mubr.msk.bf16.mxu0 %vm1862_vm0, %v7383_v19  ;;  %10149 = vst [vmem:[#allocation29_spill] sm:$0xff] %v8378_v9  ;;  %v7264_v20 = vld [vmem:[%s7469_s20 + $0x750] ss:$8 sps:$4 sm:$0xff]  }
 0x1b8   : > { %v5324_v38 = vor.u32 %v5036_v46, %v7993_v40  ;;  %v4462_v51 = vxor.u32 2147483647, %v3598_v15  ;;  %6794 = vmatprep.mubr.msk.bf16.mxu1 %vm1862_vm0, %v7383_v19  ;;  %v4748_v16 = vsel %vm4172_vm15, %v4460_v34, %v3596_v6  ;;  %v5544_v37 = vsel %vm5543_vm14, %v5542_v2, %v5325_v35  ;;  %6802 = vmatprep.subr.msk.bf16.mxu0 %vm1862_vm0, %v7259_v12  ;;  %v7265_v12 = vld [vmem:[%s7469_s20 + $0x664] ss:$8 sps:$4 sm:$0xff]  }
 0x1b9   : > { %v5326_v49 = vor.u32 %v5038_v48, %v7993_v40  ;;  %v3597_v22 = vsub.f32 %v8350_v55, %v8188_v8  ;;  %v5053_v58 = vand.u32 4294967168, %v4748_v16  ;;  %v3599_v26 = vsub.f32 %v8350_v55, %v8190_v0  ;;  %6826 = vmatprep.subr.msk.bf16.mxu1 %vm1862_vm0, %v7261_v59 }
 0x1ba   : > { %vm5504_vm2 = vcmp.lt.s32.totalorder %v5503_v3, %v5324_v38  ;;  %v4750_v25 = vsel %vm4174_vm1, %v4462_v51, %v3598_v15  ;;  %v3614_v6 = vsub.f32 %v8378_v9, %v8194_v24  ;;  %v3616_v15 = vsub.f32 %v8378_v9, %v8196_v32  ;;  %v7385_v32 = vld [vmem:[%s9988_s1 + $0x64] ss:$8 sps:$4 sm:$0xff]  }
 0x1bb   : > { %vm5582_vm3 = vcmp.lt.s32.totalorder %v5581_v33, %v5326_v49  ;;  %v5055_v45 = vand.u32 4294967168, %v4750_v25  ;;  %vm4173_vm4 = vcmp.lt.s32.totalorder %v3597_v22, 0  ;;  %v4461_v2 = vxor.u32 2147483647, %v3597_v22  ;;  %v7269_v25 = vld [vmem:[%s7469_s20 + $0x660] ss:$8 sps:$4 sm:$0xff]  }
 0x1bc   : > { %v5341_v8 = vor.u32 %v5053_v58, %v7996_v42  ;;  %v5505_v41 = vsel %vm5504_vm2, %v5503_v3, %v5324_v38  ;;  %vm4175_vm5 = vcmp.lt.s32.totalorder %v3599_v26, 0  ;;  %v4463_v28 = vxor.u32 2147483647, %v3599_v26  ;;  %v7384_v3 = vld [vmem:[%s9988_s1 + $0x50] ss:$8 sps:$4 sm:$0xff]   ;;  %v8406_v58 = vpop.permute.xlu0 %3398 }
 0x1bd   : > { %v5343_v35 = vor.u32 %v5055_v45, %v7996_v42  ;;  %v4749_v0 = vsel %vm4173_vm4, %v4461_v2, %v3597_v22  ;;  %v5583_v44 = vsel %vm5582_vm3, %v5581_v33, %v5326_v49  ;;  %2854 = vmatmul.mubr.bf16.gmra.mrb[84].mxu0 %v7384_v3  ;;  %vm4190_vm8 = vcmp.lt.s32.totalorder %v3614_v6, 0  ;;  %10150 = vst [vmem:[#allocation30_spill] sm:$0xff] %v8406_v58 }
 0x1be   : > { %vm5467_vm6 = vcmp.lt.s32.totalorder %v5466_v17, %v5341_v8  ;;  %v5054_v46 = vand.u32 4294967168, %v4749_v0  ;;  %v4751_v62 = vsel %vm4175_vm5, %v4463_v28, %v3599_v26  ;;  %2967 = vmatmul.mubr.bf16.gmra.mrb[84].mxu1 %v7384_v3  ;;  %v4478_v33 = vxor.u32 2147483647, %v3614_v6  ;;  %3008 = vmatpush1.bf16.xpose.msra.mxu0 %v7263_v11  ;;  %v7270_v11 = vld [vmem:[%s7469_s20 + $0x760] ss:$8 sps:$4 sm:$0xff]  }
 0x1bf   : > { %vm5545_vm7 = vcmp.lt.s32.totalorder %v5544_v37, %v5343_v35  ;;  %v5056_v59 = vand.u32 4294967168, %v4751_v62  ;;  %3121 = vmatpush1.bf16.xpose.msra.mxu1 %v7264_v20  ;;  %v5468_v48 = vsel %vm5467_vm6, %v5466_v17, %v5341_v8  ;;  %vm4192_vm9 = vcmp.lt.s32.totalorder %v3616_v15, 0  ;;  %6771 = vmatprep.mubr.msk.bf16.mxu0 %vm1862_vm0, %v7385_v32 }
 0x1c0   : > { %v5342_v24 = vor.u32 %v5054_v46, %v7996_v42  ;;  %v4480_v34 = vxor.u32 2147483647, %v3616_v15  ;;  %6795 = vmatprep.mubr.msk.bf16.mxu1 %vm1862_vm0, %v7385_v32  ;;  %v4766_v51 = vsel %vm4190_vm8, %v4478_v33, %v3614_v6  ;;  %v5546_v19 = vsel %vm5545_vm7, %v5544_v37, %v5343_v35  ;;  %6803 = vmatprep.subr.msk.bf16.mxu0 %vm1862_vm0, %v7265_v12  ;;  %v7271_v35 = vld [vmem:[%s7469_s20 + $0x674] ss:$8 sps:$4 sm:$0xff]  }
 0x1c1   : > { %v5344_v38 = vor.u32 %v5056_v59, %v7996_v42  ;;  %v3615_v49 = vsub.f32 %v8378_v9, %v8200_v7  ;;  %v5071_v17 = vand.u32 4294967168, %v4766_v51  ;;  %v3617_v22 = vsub.f32 %v8378_v9, %v8202_v47  ;;  %6827 = vmatprep.subr.msk.bf16.mxu1 %vm1862_vm0, %v7267_v13  ;;  %v7273_v46 = vld [vmem:[%s7469_s20 + $0x774] ss:$8 sps:$4 sm:$0xff]   ;;  %v7275_v51 = vld [vmem:[%s7469_s20 + $0x670] ss:$8 sps:$4 sm:$0xff]  }
 0x1c2   : > { %vm5506_vm10 = vcmp.lt.s32.totalorder %v5505_v41, %v5342_v24  ;;  %v4768_v16 = vsel %vm4192_vm9, %v4480_v34, %v3616_v15  ;;  %v3632_v28 = vsub.f32 %v8406_v58, %v8230_v4  ;;  %v3634_v12 = vsub.f32 %v8406_v58, %v8232_v61  ;;  %v7387_v61 = vld [vmem:[%s9988_s1 + $0x74] ss:$8 sps:$4 sm:$0xff]  }
 0x1c3   : > { %vm5584_vm11 = vcmp.lt.s32.totalorder %v5583_v44, %v5344_v38  ;;  %v5073_v26 = vand.u32 4294967168, %v4768_v16  ;;  %vm4191_vm12 = vcmp.lt.s32.totalorder %v3615_v49, 0  ;;  %v4479_v37 = vxor.u32 2147483647, %v3615_v49 }
 0x1c4   : > { %v5359_v7 = vor.u32 %v5071_v17, %v7999_v43  ;;  %v5507_v45 = vsel %vm5506_vm10, %v5505_v41, %v5342_v24  ;;  %vm4193_vm13 = vcmp.lt.s32.totalorder %v3617_v22, 0  ;;  %v4481_v2 = vxor.u32 2147483647, %v3617_v22  ;;  %v7386_v41 = vld [vmem:[%s9988_s1 + $0x60] ss:$8 sps:$4 sm:$0xff]  }
 0x1c5   : > { %v5361_v20 = vor.u32 %v5073_v26, %v7999_v43  ;;  %v4767_v47 = vsel %vm4191_vm12, %v4479_v37, %v3615_v49  ;;  %v5585_v8 = vsel %vm5584_vm11, %v5583_v44, %v5344_v38  ;;  %2864 = vmatmul.mubr.bf16.gmra.mrb[88].mxu0 %v7386_v41  ;;  %vm4208_vm1 = vcmp.lt.s32.totalorder %v3632_v28, 0  ;;  %v8434_v38 = vpop.permute.xlu1 %3403  ;;  %v7276_v49 = vld [vmem:[%s7469_s20 + $0x770] ss:$8 sps:$4 sm:$0xff]   ;;  %v7279_v26 = vld [vmem:[%s7469_s20 + $0x784] ss:$8 sps:$4 sm:$0xff]  }
 0x1c6   : > { %vm5469_vm14 = vcmp.lt.s32.totalorder %v5468_v48, %v5359_v7  ;;  %v5072_v0 = vand.u32 4294967168, %v4767_v47  ;;  %v4769_v6 = vsel %vm4193_vm13, %v4481_v2, %v3617_v22  ;;  %2977 = vmatmul.mubr.bf16.gmra.mrb[88].mxu1 %v7386_v41  ;;  %v4496_v44 = vxor.u32 2147483647, %v3632_v28  ;;  %3010 = vmatpush1.bf16.xpose.msra.mxu0 %v7269_v25  ;;  %10151 = vst [vmem:[#allocation31_spill] sm:$0xff] %v8434_v38 }
 0x1c7   : > { %vm5547_vm15 = vcmp.lt.s32.totalorder %v5546_v19, %v5361_v20  ;;  %v5074_v62 = vand.u32 4294967168, %v4769_v6  ;;  %3123 = vmatpush1.bf16.xpose.msra.mxu1 %v7270_v11  ;;  %v5470_v15 = vsel %vm5469_vm14, %v5468_v48, %v5359_v7  ;;  %vm4210_vm2 = vcmp.lt.s32.totalorder %v3634_v12, 0  ;;  %6772 = vmatprep.mubr.msk.bf16.mxu0 %vm1862_vm0, %v7387_v61 }
 0x1c8   : > { %v5360_v4 = vor.u32 %v5072_v0, %v7999_v43  ;;  %v4498_v3 = vxor.u32 2147483647, %v3634_v12  ;;  %6796 = vmatprep.mubr.msk.bf16.mxu1 %vm1862_vm0, %v7387_v61  ;;  %v4784_v59 = vsel %vm4208_vm1, %v4496_v44, %v3632_v28  ;;  %v5548_v33 = vsel %vm5547_vm15, %v5546_v19, %v5361_v20  ;;  %6804 = vmatprep.subr.msk.bf16.mxu0 %vm1862_vm0, %v7271_v35  ;;  %v7282_v61 = vld [vmem:[%s7469_s20 + $0x780] ss:$8 sps:$4 sm:$0xff]  }
 0x1c9   : > { %v5362_v13 = vor.u32 %v5074_v62, %v7999_v43  ;;  %v3633_v24 = vsub.f32 %v8406_v58, %v8237_v57  ;;  %v5089_v48 = vand.u32 4294967168, %v4784_v59  ;;  %v3635_v32 = vsub.f32 %v8406_v58, %v8239_v14  ;;  %6828 = vmatprep.subr.msk.bf16.mxu1 %vm1862_vm0, %v7273_v46  ;;  %v7277_v57 = vld [vmem:[%s7469_s20 + $0x684] ss:$8 sps:$4 sm:$0xff]   ;;  %v7283_v59 = vld [vmem:[%s7469_s20 + $0x694] ss:$8 sps:$4 sm:$0xff]  }
 0x1ca   : > { %vm5508_vm3 = vcmp.lt.s32.totalorder %v5507_v45, %v5360_v4  ;;  %v4786_v34 = vsel %vm4210_vm2, %v4498_v3, %v3634_v12  ;;  %v3650_v7 = vsub.f32 %v8434_v38, %v8243_v5  ;;  %v3652_v47 = vsub.f32 %v8434_v38, %v8245_v60  ;;  %v7389_v46 = vld [vmem:[%s9988_s1 + $0x4] ss:$8 sps:$4 sm:$0xff]   ;;  %v7281_v3 = vld [vmem:[%s7469_s20 + $0x680] ss:$8 sps:$4 sm:$0xff]  }
 0x1cb   : > { %vm5586_vm4 = vcmp.lt.s32.totalorder %v5585_v8, %v5362_v13  ;;  %v5091_v19 = vand.u32 4294967168, %v4786_v34  ;;  %vm4209_vm5 = vcmp.lt.s32.totalorder %v3633_v24, 0  ;;  %v4497_v17 = vxor.u32 2147483647, %v3633_v24  ;;  %v7285_v34 = vld [vmem:[%s7469_s20 + $0x794] ss:$8 sps:$4 sm:$0xff]  }
 0x1cc   : > { %v5377_v16 = vor.u32 %v5089_v48, %v8005_v52  ;;  %v5509_v22 = vsel %vm5508_vm3, %v5507_v45, %v5360_v4  ;;  %vm4211_vm6 = vcmp.lt.s32.totalorder %v3635_v32, 0  ;;  %v4499_v25 = vxor.u32 2147483647, %v3635_v32  ;;  %v7388_v45 = vld [vmem:[%s9988_s1 + $0x70] ss:$8 sps:$4 sm:$0xff]  }
 0x1cd   : > { %v5379_v37 = vor.u32 %v5091_v19, %v8005_v52  ;;  %v4785_v14 = vsel %vm4209_vm5, %v4497_v17, %v3633_v24  ;;  %v5587_v11 = vsel %vm5586_vm4, %v5585_v8, %v5362_v13  ;;  %2874 = vmatmul.mubr.bf16.gmra.mrb[92].mxu0 %v7388_v45  ;;  %vm4226_vm9 = vcmp.lt.s32.totalorder %v3650_v7, 0 }
 0x1ce   : > { %vm5471_vm7 = vcmp.lt.s32.totalorder %v5470_v15, %v5377_v16  ;;  %v5090_v2 = vand.u32 4294967168, %v4785_v14  ;;  %v4787_v20 = vsel %vm4211_vm6, %v4499_v25, %v3635_v32  ;;  %2987 = vmatmul.mubr.bf16.gmra.mrb[92].mxu1 %v7388_v45  ;;  %v4514_v35 = vxor.u32 2147483647, %v3650_v7  ;;  %3012 = vmatpush1.bf16.xpose.msra.mxu0 %v7275_v51  ;;  %v7287_v45 = vld [vmem:[%s7469_s20 + $0x690] ss:$8 sps:$4 sm:$0xff]  }
 0x1cf   : > { %vm5549_vm8 = vcmp.lt.s32.totalorder %v5548_v33, %v5379_v37  ;;  %v5092_v28 = vand.u32 4294967168, %v4787_v20  ;;  %3125 = vmatpush1.bf16.xpose.msra.mxu1 %v7276_v49  ;;  %v5472_v8 = vsel %vm5471_vm7, %v5470_v15, %v5377_v16  ;;  %vm4228_vm10 = vcmp.lt.s32.totalorder %v3652_v47, 0  ;;  %6805 = vmatprep.subr.msk.bf16.mxu0 %vm1862_vm0, %v7277_v57  ;;  %v8462_v15 = vpop.permute.xlu0 %3408 }
 0x1d0   : > { %v5378_v5 = vor.u32 %v5090_v2, %v8005_v52  ;;  %v4516_v0 = vxor.u32 2147483647, %v3652_v47  ;;  %6829 = vmatprep.subr.msk.bf16.mxu1 %vm1862_vm0, %v7279_v26  ;;  %v4802_v6 = vsel %vm4226_vm9, %v4514_v35, %v3650_v7  ;;  %v5550_v12 = vsel %vm5549_vm8, %v5548_v33, %v5379_v37  ;;  %6813 = vmatprep.mubr.msk.bf16.mxu0 %vm1862_vm0, %v7389_v46 }
 0x1d1   : > { %v5380_v60 = vor.u32 %v5092_v28, %v8005_v52  ;;  %v3651_v41 = vsub.f32 %v8434_v38, %v8248_v10  ;;  %v5107_v62 = vand.u32 4294967168, %v4802_v6  ;;  %v3653_v4 = vsub.f32 %v8434_v38, %v8250_v53  ;;  %10152 = vst [vmem:[#allocation32_spill] sm:$0xff] %v8462_v15  ;;  %6837 = vmatprep.mubr.msk.bf16.mxu1 %vm1862_vm0, %v7389_v46  ;;  %v7288_v28 = vld [vmem:[%s7469_s20 + $0x790] ss:$8 sps:$4 sm:$0xff]   ;;  %v7291_v6 = vld [vmem:[%s7469_s20 + $0x7a4] ss:$8 sps:$4 sm:$0xff]  }
 0x1d2   : > { %vm5510_vm11 = vcmp.lt.s32.totalorder %v5509_v22, %v5378_v5  ;;  %v4804_v44 = vsel %vm4228_vm10, %v4516_v0, %v3652_v47  ;;  %v3668_v49 = vsub.f32 %v8462_v15, %v8276_v36  ;;  %v3670_v57 = vsub.f32 %v8462_v15, %v8278_v23  ;;  %v8483_v47 = vpop.permute.xlu1 %3413 }
 0x1d3   : > { %vm5588_vm12 = vcmp.lt.s32.totalorder %v5587_v11, %v5380_v60  ;;  %v5109_v10 = vand.u32 4294967168, %v4804_v44  ;;  %vm4227_vm13 = vcmp.lt.s32.totalorder %v3651_v41, 0  ;;  %v4515_v13 = vxor.u32 2147483647, %v3651_v41  ;;  %10153 = vst [vmem:[#allocation33_spill] sm:$0xff] %v8483_v47 }
 0x1d4   : > { %v5395_v33 = vor.u32 %v5107_v62, %v8008_v54  ;;  %v5511_v24 = vsel %vm5510_vm11, %v5509_v22, %v5378_v5  ;;  %vm4229_vm14 = vcmp.lt.s32.totalorder %v3653_v4, 0  ;;  %v4517_v48 = vxor.u32 2147483647, %v3653_v4 }
 0x1d5   : > { %v5397_v32 = vor.u32 %v5109_v10, %v8008_v54  ;;  %v4803_v53 = vsel %vm4227_vm13, %v4515_v13, %v3651_v41  ;;  %v5589_v51 = vsel %vm5588_vm12, %v5587_v11, %v5380_v60  ;;  %vm4244_vm2 = vcmp.lt.s32.totalorder %v3668_v49, 0 }
 0x1d6   : > { %vm5473_vm15 = vcmp.lt.s32.totalorder %v5472_v8, %v5395_v33  ;;  %v5108_v19 = vand.u32 4294967168, %v4803_v53  ;;  %v4805_v17 = vsel %vm4229_vm14, %v4517_v48, %v3653_v4  ;;  %v4532_v22 = vxor.u32 2147483647, %v3668_v49  ;;  %3014 = vmatpush1.bf16.xpose.msra.mxu0 %v7281_v3 }
 0x1d7   : > { %vm5551_vm1 = vcmp.lt.s32.totalorder %v5550_v12, %v5397_v32  ;;  %v5110_v16 = vand.u32 4294967168, %v4805_v17  ;;  %3127 = vmatpush1.bf16.xpose.msra.mxu1 %v7282_v61  ;;  %v5474_v26 = vsel %vm5473_vm15, %v5472_v8, %v5395_v33  ;;  %vm4246_vm3 = vcmp.lt.s32.totalorder %v3670_v57, 0  ;;  %6806 = vmatprep.subr.msk.bf16.mxu0 %vm1862_vm0, %v7283_v59  ;;  %v7289_v8 = vld [vmem:[%s7469_s20 + $0x6a4] ss:$8 sps:$4 sm:$0xff]  }
 0x1d8   : > { %v5396_v25 = vor.u32 %v5108_v19, %v8008_v54  ;;  %v4534_v37 = vxor.u32 2147483647, %v3670_v57  ;;  %6830 = vmatprep.subr.msk.bf16.mxu1 %vm1862_vm0, %v7285_v34  ;;  %v4820_v23 = vsel %vm4244_vm2, %v4532_v22, %v3668_v49  ;;  %v5552_v14 = vsel %vm5551_vm1, %v5550_v12, %v5397_v32  ;;  %v7293_v32 = vld [vmem:[%s7469_s20 + $0x6a0] ss:$8 sps:$4 sm:$0xff]  }
 0x1d9   : > { %v5398_v36 = vor.u32 %v5110_v16, %v8008_v54  ;;  %v3669_v11 = vsub.f32 %v8462_v15, %v8285_v29  ;;  %v5125_v7 = vand.u32 4294967168, %v4820_v23  ;;  %v3671_v20 = vsub.f32 %v8462_v15, %v8287_v18  ;;  %v7294_v49 = vld [vmem:[%s7469_s20 + $0x7a0] ss:$8 sps:$4 sm:$0xff]  }
 0x1da   : > { %vm5512_vm4 = vcmp.lt.s32.totalorder %v5511_v24, %v5396_v25  ;;  %v4822_v2 = vsel %vm4246_vm3, %v4534_v37, %v3670_v57  ;;  %v3686_v18 = vsub.f32 %v8483_v47, %v8291_v56  ;;  %v3688_v4 = vsub.f32 %v8483_v47, %v8293_v63  ;;  %v10154_v19 = vld [vmem:[#allocation20_spill] sm:$0xff] }
 0x1db   : > { %vm5590_vm5 = vcmp.lt.s32.totalorder %v5589_v51, %v5398_v36  ;;  %v5127_v35 = vand.u32 4294967168, %v4822_v2  ;;  %vm4245_vm6 = vcmp.lt.s32.totalorder %v3669_v11, 0  ;;  %v4533_v5 = vxor.u32 2147483647, %v3669_v11 }
 0x1dc   : > { %v5413_v0 = vor.u32 %v5125_v7, %v8016_v27  ;;  %v5513_v60 = vsel %vm5512_vm4, %v5511_v24, %v5396_v25  ;;  %vm4247_vm7 = vcmp.lt.s32.totalorder %v3671_v20, 0  ;;  %v4535_v29 = vxor.u32 2147483647, %v3671_v20 }
 0x1dd   : > { %v5415_v12 = vor.u32 %v5127_v35, %v8016_v27  ;;  %v4821_v41 = vsel %vm4245_vm6, %v4533_v5, %v3669_v11  ;;  %v5591_v46 = vsel %vm5590_vm5, %v5589_v51, %v5398_v36  ;;  %vm4262_vm10 = vcmp.lt.s32.totalorder %v3686_v18, 0  ;;  %v10155_v35 = vld [vmem:[#allocation3_spill] sm:$0xff] }
 0x1de   : > { %vm5475_vm8 = vcmp.lt.s32.totalorder %v5474_v26, %v5413_v0  ;;  %v5126_v62 = vand.u32 4294967168, %v4821_v41  ;;  %v4823_v44 = vsel %vm4247_vm7, %v4535_v29, %v3671_v20  ;;  %v4550_v61 = vxor.u32 2147483647, %v3686_v18  ;;  %3016 = vmatpush1.bf16.xpose.msra.mxu0 %v7287_v45 }
 0x1df   : > { %vm5553_vm9 = vcmp.lt.s32.totalorder %v5552_v14, %v5415_v12  ;;  %v5128_v3 = vand.u32 4294967168, %v4823_v44  ;;  %3129 = vmatpush1.bf16.xpose.msra.mxu1 %v7288_v28  ;;  %v5476_v13 = vsel %vm5475_vm8, %v5474_v26, %v5413_v0  ;;  %vm4264_vm11 = vcmp.lt.s32.totalorder %v3688_v4, 0  ;;  %6807 = vmatprep.subr.msk.bf16.mxu0 %vm1862_vm0, %v7289_v8  ;;  %v7295_v26 = vld [vmem:[%s7469_s20 + $0x6b4] ss:$8 sps:$4 sm:$0xff]  }
 0x1e0   : > { %v5414_v10 = vor.u32 %v5126_v62, %v8016_v27  ;;  %v4552_v59 = vxor.u32 2147483647, %v3688_v4  ;;  %6831 = vmatprep.subr.msk.bf16.mxu1 %vm1862_vm0, %v7291_v6  ;;  %v4838_v63 = vsel %vm4262_vm10, %v4550_v61, %v3686_v18  ;;  %v5554_v33 = vsel %vm5553_vm9, %v5552_v14, %v5415_v12  ;;  %v10157_v6 = vld [vmem:[#allocation2_spill] sm:$0xff] }
 0x1e1   : > { %v5416_v56 = vor.u32 %v5128_v3, %v8016_v27  ;;  %v3687_v24 = vsub.f32 %v8483_v47, %v8296_v1  ;;  %v5143_v48 = vand.u32 4294967168, %v4838_v63  ;;  %v7429_v16 = vmov 1966171168   ;;  %v7297_v1 = vld [vmem:[%s7469_s20 + $0x7b4] ss:$8 sps:$4 sm:$0xff]  }
 0x1e2   : > { %vm5514_vm12 = vcmp.lt.s32.totalorder %v5513_v60, %v5414_v10  ;;  %v4840_v34 = vsel %vm4264_vm11, %v4552_v59, %v3688_v4  ;;  %v6174_v22 = vunpack.c.l.s4 %v7429_v16  ;;  %v3689_v25 = vsub.f32 %v8483_v47, %v8298_v30  ;;  %v7300_v61 = vld [vmem:[%s7469_s20 + $0x7b0] ss:$8 sps:$4 sm:$0xff]  }
 0x1e3   : > { %vm5592_vm13 = vcmp.lt.s32.totalorder %v5591_v46, %v5416_v56  ;;  %v5145_v53 = vand.u32 4294967168, %v4840_v34  ;;  %vm4263_vm14 = vcmp.lt.s32.totalorder %v3687_v24, 0  ;;  %v4551_v51 = vxor.u32 2147483647, %v3687_v24  ;;  %v7303_v34 = vld [vmem:[%s7469_s20 + $0x7c4] ss:$8 sps:$4 sm:$0xff]  }
 0x1e4   : > { %v5431_v17 = vor.u32 %v5143_v48, %v10154_v19  ;;  %v5515_v57 = vsel %vm5514_vm12, %v5513_v60, %v5414_v10  ;;  %v5593_v23 = vsel %vm5592_vm13, %v5591_v46, %v5416_v56  ;;  %v6175_v11 = vunpack.c.0.s8 %v6174_v22  ;;  %v7299_v46 = vld [vmem:[%s7469_s20 + $0x6b0] ss:$8 sps:$4 sm:$0xff]  }
 0x1e5   : > { %v5433_v37 = vor.u32 %v5145_v53, %v10154_v19  ;;  %v4839_v36 = vsel %vm4263_vm14, %v4551_v51, %v3687_v24  ;;  %vm4265_vm1 = vcmp.lt.s32.totalorder %v3689_v25, 0  ;;  %v4553_v2 = vxor.u32 2147483647, %v3689_v25 }
 0x1e6   : > { %vm5477_vm15 = vcmp.lt.s32.totalorder %v5476_v13, %v5431_v17  ;;  %v5144_v14 = vand.u32 4294967168, %v4839_v36  ;;  %3018 = vmatpush1.bf16.xpose.msra.mxu0 %v7293_v32  ;;  %v8513_v5 = vsub.s32 %v6175_v11, %v10155_v35 }
 0x1e7   : > { %v5478_v7 = vsel %vm5477_vm15, %v5476_v13, %v5431_v17  ;;  %vm5555_vm2 = vcmp.lt.s32.totalorder %v5554_v33, %v5433_v37  ;;  %3131 = vmatpush1.bf16.xpose.msra.mxu1 %v7294_v49  ;;  %6808 = vmatprep.subr.msk.bf16.mxu0 %vm1862_vm0, %v7295_v26  ;;  %v4841_v8 = vsel %vm4265_vm1, %v4553_v2, %v3689_v25  ;;  %v7301_v13 = vld [vmem:[%s7469_s20 + $0x6c4] ss:$8 sps:$4 sm:$0xff]  }
 0x1e8   : > { %v5479_v20 = vrot.slane %v5478_v7, 4  ;;  %v5556_v45 = vsel %vm5555_vm2, %v5554_v33, %v5433_v37  ;;  %v5432_v30 = vor.u32 %v5144_v14, %v10154_v19  ;;  %6832 = vmatprep.subr.msk.bf16.mxu1 %vm1862_vm0, %v7297_v1  ;;  %10156 = vst [vmem:[#allocation34_spill] sm:$0xff] %v8513_v5  ;;  %v2579_v0 = vpop.f32.mrb[32].mxu0  ;;  %v5146_v29 = vand.u32 4294967168, %v4841_v8  ;;  %v10158_v14 = vld [vmem:[#allocation7_spill] sm:$0xff] }
 0x1e9   : > { %v5557_v28 = vrot.slane %v5556_v45, 4  ;;  %v8515_v60 = vpop.f32.mrb[32].mxu1  ;;  %v3420_v12 = vsub.f32 %v10157_v6, %v2579_v0  ;;  %v2581_v41 = vpop.f32.mrb[33].mxu0 }
 0x1ea   : > { %vm5480_vm3 = vcmp.lt.s32.totalorder %v5478_v7, %v5479_v20  ;;  %vm5516_vm4 = vcmp.lt.s32.totalorder %v5515_v57, %v5432_v30  ;;  %v8519_v18 = vpop.f32.mrb[33].mxu1  ;;  %v3421_v4 = vsub.f32 %v10157_v6, %v2581_v41  ;;  %v2583_v3 = vpop.f32.mrb[34].mxu0  ;;  %v5434_v33 = vor.u32 %v5146_v29, %v10154_v19  ;;  %v7306_v41 = vld [vmem:[%s7469_s20 + $0x7c0] ss:$8 sps:$4 sm:$0xff]  }
 0x1eb   : > { %v5481_v62 = vsel %vm5480_vm3, %v5478_v7, %v5479_v20  ;;  %vm5558_vm5 = vcmp.lt.s32.totalorder %v5556_v45, %v5557_v28  ;;  %v5517_v44 = vsel %vm5516_vm4, %v5515_v57, %v5432_v30  ;;  %v8523_v10 = vpop.f32.mrb[34].mxu1  ;;  %v2585_v24 = vpop.f32.mrb[35].mxu0  ;;  %vm3996_vm6 = vcmp.lt.s32.totalorder %v3420_v12, 0  ;;  %v7305_v30 = vld [vmem:[%s7469_s20 + $0x6c0] ss:$8 sps:$4 sm:$0xff]  }
 0x1ec   : > { %v5482_v59 = vrot.slane %v5481_v62, 2  ;;  %v5559_v56 = vsel %vm5558_vm5, %v5556_v45, %v5557_v28  ;;  %v5518_v63 = vrot.slane %v5517_v44, 4  ;;  %v8527_v48 = vpop.f32.mrb[35].mxu1  ;;  %v4284_v53 = vxor.u32 2147483647, %v3420_v12 }
 0x1ed   : > { %v5560_v32 = vrot.slane %v5559_v56, 2  ;;  %vm3997_vm7 = vcmp.lt.s32.totalorder %v3421_v4, 0  ;;  %vm5594_vm10 = vcmp.lt.s32.totalorder %v5593_v23, %v5434_v33  ;;  %v4285_v51 = vxor.u32 2147483647, %v3421_v4 }
 0x1ee   : > { %vm5483_vm8 = vcmp.lt.s32.totalorder %v5481_v62, %v5482_v59  ;;  %vm5519_vm9 = vcmp.lt.s32.totalorder %v5517_v44, %v5518_v63  ;;  %v5595_v57 = vsel %vm5594_vm10, %v5593_v23, %v5434_v33  ;;  %3020 = vmatpush1.bf16.xpose.msra.mxu0 %v7299_v46  ;;  %v4572_v37 = vsel %vm3996_vm6, %v4284_v53, %v3420_v12  ;;  %v7307_v46 = vld [vmem:[%s7469_s20 + $0x6d4] ss:$8 sps:$4 sm:$0xff]  }
 0x1ef   : > { %v5484_v49 = vsel %vm5483_vm8, %v5481_v62, %v5482_v59  ;;  %vm5561_vm11 = vcmp.lt.s32.totalorder %v5559_v56, %v5560_v32  ;;  %v5520_v17 = vsel %vm5519_vm9, %v5517_v44, %v5518_v63  ;;  %v5596_v26 = vrot.slane %v5595_v57, 4  ;;  %3133 = vmatpush1.bf16.xpose.msra.mxu1 %v7300_v61  ;;  %6809 = vmatprep.subr.msk.bf16.mxu0 %vm1862_vm0, %v7301_v13  ;;  %v7309_v33 = vld [vmem:[%s7469_s20 + $0x7d4] ss:$8 sps:$4 sm:$0xff]  }
 0x1f0   : > { %v5485_v16 = vrot.slane %v5484_v49, 1  ;;  %v5562_v22 = vsel %vm5561_vm11, %v5559_v56, %v5560_v32  ;;  %v5521_v25 = vrot.slane %v5520_v17, 2  ;;  %v4573_v36 = vsel %vm3997_vm7, %v4285_v51, %v3421_v4  ;;  %v2589_v7 = vpop.f32.mrb[36].mxu0  ;;  %6833 = vmatprep.subr.msk.bf16.mxu1 %vm1862_vm0, %v7303_v34 }
 0x1f1   : > { %v5563_v1 = vrot.slane %v5562_v22, 1  ;;  %v3438_v11 = vsub.f32 %v10158_v14, %v2583_v3  ;;  %v8534_v2 = vpop.f32.mrb[36].mxu1  ;;  %vm5597_vm14 = vcmp.lt.s32.totalorder %v5595_v57, %v5596_v26  ;;  %v4877_v23 = vand.u32 4294967168, %v4572_v37  ;;  %v2591_v20 = vpop.f32.mrb[37].mxu0 }
 0x1f2   : > { %vm5486_vm12 = vcmp.lt.s32.totalorder %v5484_v49, %v5485_v16  ;;  %vm5522_vm13 = vcmp.lt.s32.totalorder %v5520_v17, %v5521_v25  ;;  %v8537_v45 = vpop.f32.mrb[37].mxu1  ;;  %v5598_v0 = vsel %vm5597_vm14, %v5595_v57, %v5596_v26  ;;  %v8540_v29 = vpop.f32.mrb[38].mxu0  ;;  %v4878_v63 = vand.u32 4294967168, %v4573_v36 }
 0x1f3   : > { %v5487_v28 = vsel %vm5486_vm12, %v5484_v49, %v5485_v16  ;;  %vm5564_vm15 = vcmp.lt.s32.totalorder %v5562_v22, %v5563_v1  ;;  %v5523_v8 = vsel %vm5522_vm13, %v5520_v17, %v5521_v25  ;;  %v8542_v12 = vpop.f32.mrb[38].mxu1  ;;  %v5599_v3 = vrot.slane %v5598_v0, 2  ;;  %v8546_v61 = vpop.f32.mrb[39].mxu0  ;;  %v10159_v17 = vld [vmem:[#allocation8_spill] sm:$0xff] }
 0x1f4   : > { %v6151_v62 = vand.u32 127, %v5487_v28  ;;  %v5565_v44 = vsel %vm5564_vm15, %v5562_v22, %v5563_v1  ;;  %v5524_v4 = vrot.slane %v5523_v8, 1  ;;  %v8548_v13 = vpop.f32.mrb[39].mxu1  ;;  %v5165_v56 = vor.u32 %v4877_v23, %v10155_v35  ;;  %v7312_v28 = vld [vmem:[%s7469_s20 + $0x7d0] ss:$8 sps:$4 sm:$0xff]  }
 0x1f5   : > { %v6153_v59 = vand.u32 127, %v5565_v44  ;;  %vm4014_vm1 = vcmp.lt.s32.totalorder %v3438_v11, 0  ;;  %vm5600_vm3 = vcmp.lt.s32.totalorder %v5598_v0, %v5599_v3  ;;  %v4302_v34 = vxor.u32 2147483647, %v3438_v11 }
 0x1f6   : > { %vm5525_vm2 = vcmp.lt.s32.totalorder %v5523_v8, %v5524_v4  ;;  %v3439_v32 = vsub.f32 %v10158_v14, %v2585_v24  ;;  %v5601_v51 = vsel %vm5600_vm3, %v5598_v0, %v5599_v3  ;;  %v5166_v49 = vor.u32 %v4878_v63, %v10155_v35  ;;  %3022 = vmatpush1.bf16.xpose.msra.mxu0 %v7305_v30  ;;  %v7311_v30 = vld [vmem:[%s7469_s20 + $0x6d0] ss:$8 sps:$4 sm:$0xff]   ;;  %v10160_v0 = vld [vmem:[#allocation4_spill] sm:$0xff] }
 0x1f7   : > { %v5526_v53 = vsel %vm5525_vm2, %v5523_v8, %v5524_v4  ;;  %v3456_v57 = vsub.f32 %v10159_v17, %v2589_v7  ;;  %v5602_v22 = vrot.slane %v5601_v51, 1  ;;  %v4590_v25 = vsel %vm4014_vm1, %v4302_v34, %v3438_v11  ;;  %3135 = vmatpush1.bf16.xpose.msra.mxu1 %v7306_v41  ;;  %6810 = vmatprep.subr.msk.bf16.mxu0 %vm1862_vm0, %v7307_v46  ;;  %v7313_v3 = vld [vmem:[%s7469_s20 + $0x6e4] ss:$8 sps:$4 sm:$0xff]  }
 0x1f8   : > { %v6152_v16 = vand.u32 127, %v5526_v53  ;;  %vm4015_vm4 = vcmp.lt.s32.totalorder %v3439_v32, 0  ;;  %v4895_v26 = vand.u32 4294967168, %v4590_v25  ;;  %v4303_v1 = vxor.u32 2147483647, %v3439_v32  ;;  %6834 = vmatprep.subr.msk.bf16.mxu1 %vm1862_vm0, %v7309_v33  ;;  %v8560_v7 = vpop.f32.mrb[40].mxu0 }
 0x1f9   : > { %vm4032_vm5 = vcmp.lt.s32.totalorder %v3456_v57, 0  ;;  %v4320_v24 = vxor.u32 2147483647, %v3456_v57  ;;  %vm5603_vm6 = vcmp.lt.s32.totalorder %v5601_v51, %v5602_v22  ;;  %v3422_v36 = vsub.f32 %v10157_v6, %v8515_v60  ;;  %v8562_v23 = vpop.f32.mrb[40].mxu1  ;;  %v8568_v4 = vpop.f32.mrb[41].mxu0 }
 0x1fa   : > { %v6169_v37 = vcombine.low %v6151_v62, %v6152_v16  ;;  %v3457_v11 = vsub.f32 %v10159_v17, %v2591_v20  ;;  %v5604_v8 = vsel %vm5603_vm6, %v5601_v51, %v5602_v22  ;;  %v5183_v41 = vor.u32 %v4895_v26, %v10160_v0  ;;  %v8570_v62 = vpop.f32.mrb[41].mxu1  ;;  %v7315_v60 = vld [vmem:[%s7469_s20 + $0x7e4] ss:$8 sps:$4 sm:$0xff]   ;;  %v8575_v53 = vpop.f32.mrb[42].mxu0 }
 0x1fb   : > { %v4591_v46 = vsel %vm4015_vm4, %v4303_v1, %v3439_v32  ;;  %v4608_v44 = vsel %vm4032_vm5, %v4320_v24, %v3456_v57  ;;  %v6154_v63 = vand.u32 127, %v5604_v8  ;;  %v8577_v16 = vpop.f32.mrb[42].mxu1  ;;  %vm3998_vm8 = vcmp.lt.s32.totalorder %v3422_v36, 0  ;;  %v8579_v32 = vpop.f32.mrb[43].mxu0  ;;  %v10161_v26 = vld [vmem:[#allocation5_spill] sm:$0xff] }
 0x1fc   : > { %v6179_v20 = vrot.slane %v6169_v37, %v8513_v5  ;;  %v4896_v33 = vand.u32 4294967168, %v4591_v46  ;;  %v4913_v34 = vand.u32 4294967168, %v4608_v44  ;;  %vm5605_vm7 = vcmp.lt.s32.totalorder %v5165_v56, %v5183_v41  ;;  %v8581_v57 = vpop.f32.mrb[43].mxu1  ;;  %v10162_v44 = vld [vmem:[#allocation21_spill] sm:$0xff] }
 0x1fd   : > { %v4286_v51 = vxor.u32 2147483647, %v3422_v36  ;;  %vm4033_vm9 = vcmp.lt.s32.totalorder %v3457_v11, 0  ;;  %v6170_v22 = vcombine.low %v6153_v59, %v6154_v63  ;;  %v5606_v24 = vsel %vm5605_vm7, %v5165_v56, %v5183_v41 }
 0x1fe   : > { %v5184_v25 = vor.u32 %v4896_v33, %v10160_v0  ;;  %v5201_v1 = vor.u32 %v4913_v34, %v10161_v26  ;;  %v4321_v8 = vxor.u32 2147483647, %v3457_v11  ;;  %v3423_v46 = vsub.f32 %v10157_v6, %v8519_v18  ;;  %3024 = vmatpush1.bf16.xpose.msra.mxu0 %v7311_v30 }
 0x1ff   : > { %v4574_v37 = vsel %vm3998_vm8, %v4286_v51, %v3422_v36  ;;  %v3474_v19 = vsub.f32 %v10162_v44, %v8540_v29  ;;  %v6186_v47 = vrot.slane %v6170_v22, %v8513_v5  ;;  %3137 = vmatpush1.bf16.xpose.msra.mxu1 %v7312_v28  ;;  %6811 = vmatprep.subr.msk.bf16.mxu0 %vm1862_vm0, %v7313_v3  ;;  %v10164_v5 = vld [vmem:[#allocation6_spill] sm:$0xff] }
 0x200   : > { %vm5644_vm10 = vcmp.lt.s32.totalorder %v5166_v49, %v5184_v25  ;;  %vm5607_vm11 = vcmp.lt.s32.totalorder %v5606_v24, %v5201_v1  ;;  %v4879_v27 = vand.u32 4294967168, %v4574_v37  ;;  %v4609_v59 = vsel %vm4033_vm9, %v4321_v8, %v3457_v11  ;;  %v8592_v41 = vpop.f32.mrb[44].mxu0  ;;  %6835 = vmatprep.subr.msk.bf16.mxu1 %vm1862_vm0, %v7315_v60  ;;  %v7317_v11 = vld [vmem:[%s7469_s20 + $0x6e0] ss:$8 sps:$4 sm:$0xff]   ;;  %v7319_v8 = vld [vmem:[%s7469_s20 + $0x6f4] ss:$8 sps:$4 sm:$0xff]  }
 0x201   : > { %v5645_v56 = vsel %vm5644_vm10, %v5166_v49, %v5184_v25  ;;  %vm3999_vm12 = vcmp.lt.s32.totalorder %v3423_v46, 0  ;;  %v4287_v36 = vxor.u32 2147483647, %v3423_v46  ;;  %v8594_v18 = vpop.f32.mrb[44].mxu1  ;;  %v8597_v29 = vcombine.low %v6179_v20, %v6186_v47  ;;  %v8602_v3 = vpop.f32.mrb[45].mxu0 }
 0x202   : > { %v8600_v30 = vor.u32 %v4879_v27, %v10155_v35  ;;  %v4914_v28 = vand.u32 4294967168, %v4609_v59  ;;  %vm4050_vm13 = vcmp.lt.s32.totalorder %v3474_v19, 0  ;;  %v8604_v49 = vpop.f32.mrb[45].mxu1  ;;  %v4338_v33 = vxor.u32 2147483647, %v3474_v19  ;;  %v8612_v60 = vpop.f32.mrb[46].mxu0 }
 0x203   : > { %10163 = vst [vmem:[#allocation35_spill] sm:$0xff] %v8597_v29  ;;  %v4575_v63 = vsel %vm3999_vm12, %v4287_v36, %v3423_v46  ;;  %v8608_v34 = vsel %vm5607_vm11, %v5606_v24, %v5201_v1  ;;  %v3440_v47 = vsub.f32 %v10158_v14, %v8523_v10  ;;  %v8614_v27 = vpop.f32.mrb[46].mxu1  ;;  %v7318_v20 = vld [vmem:[%s7469_s20 + $0x7e0] ss:$8 sps:$4 sm:$0xff]   ;;  %v3475_v37 = vsub.f32 %v10162_v44, %v8546_v61  ;;  %v8622_v1 = vpop.f32.mrb[47].mxu0 }
 0x204   : > { %v5202_v22 = vor.u32 %v4914_v28, %v10161_v26  ;;  %v4880_v25 = vand.u32 4294967168, %v4575_v63  ;;  %v8624_v24 = vpop.f32.mrb[47].mxu1  ;;  %v4626_v10 = vsel %vm4050_vm13, %v4338_v33, %v3474_v19  ;;  %v3441_v59 = vsub.f32 %v10158_v14, %v8527_v48  ;;  %v7321_v36 = vld [vmem:[%s7469_s20 + $0x7f4] ss:$8 sps:$4 sm:$0xff]  }
 0x205   : > { %vm4016_vm14 = vcmp.lt.s32.totalorder %v3440_v47, 0  ;;  %v4304_v46 = vxor.u32 2147483647, %v3440_v47  ;;  %v4931_v63 = vand.u32 4294967168, %v4626_v10  ;;  %vm4051_vm1 = vcmp.lt.s32.totalorder %v3475_v37, 0 }
 0x206   : > { %vm5646_vm15 = vcmp.lt.s32.totalorder %v5645_v56, %v5202_v22  ;;  %v5168_v28 = vor.u32 %v4880_v25, %v10155_v35  ;;  %v4339_v61 = vxor.u32 2147483647, %v3475_v37  ;;  %vm4017_vm2 = vcmp.lt.s32.totalorder %v3441_v59, 0  ;;  %3026 = vmatpush1.bf16.xpose.msra.mxu0 %v7317_v11  ;;  %v7324_v10 = vld [vmem:[%s7469_s20 + $0x7f0] ss:$8 sps:$4 sm:$0xff]  }
 0x207   : > { %v4592_v51 = vsel %vm4016_vm14, %v4304_v46, %v3440_v47  ;;  %v8632_v29 = vsel %vm5646_vm15, %v5645_v56, %v5202_v22  ;;  %v5219_v19 = vor.u32 %v4931_v63, %v10164_v5  ;;  %v4305_v6 = vxor.u32 2147483647, %v3441_v59  ;;  %3139 = vmatpush1.bf16.xpose.msra.mxu1 %v7318_v20  ;;  %6812 = vmatprep.subr.msk.bf16.mxu0 %vm1862_vm0, %v7319_v8 }
 0x208   : > { %v4897_v33 = vand.u32 4294967168, %v4592_v51  ;;  %v3458_v48 = vsub.f32 %v10159_v17, %v8534_v2  ;;  %v4627_v25 = vsel %vm4051_vm1, %v4339_v61, %v3475_v37  ;;  %v3459_v56 = vsub.f32 %v10159_v17, %v8537_v45  ;;  %v8644_v51 = vpop.f32.mrb[48].mxu0  ;;  %6836 = vmatprep.subr.msk.bf16.mxu1 %vm1862_vm0, %v7321_v36  ;;  %v7323_v2 = vld [vmem:[%s7469_s20 + $0x6f0] ss:$8 sps:$4 sm:$0xff]  }
 0x209   : > { %v3476_v47 = vsub.f32 %v10162_v44, %v8542_v12  ;;  %v3477_v11 = vsub.f32 %v10162_v44, %v8548_v13  ;;  %v8646_v22 = vpop.f32.mrb[48].mxu1  ;;  %vm5609_vm3 = vcmp.lt.s32.totalorder %v8608_v34, %v5219_v19  ;;  %v4932_v37 = vand.u32 4294967168, %v4627_v25  ;;  %v8653_v8 = vpop.f32.mrb[49].mxu0  ;;  %v7325_v13 = vld [vmem:[%s7469_s20 + $0x804] ss:$8 sps:$4 sm:$0xff]  }
 0x20a   : > { %v5185_v20 = vor.u32 %v4897_v33, %v10160_v0  ;;  %v4593_v45 = vsel %vm4017_vm2, %v4305_v6, %v3441_v59  ;;  %v8655_v12 = vpop.f32.mrb[49].mxu1  ;;  %vm4034_vm4 = vcmp.lt.s32.totalorder %v3458_v48, 0  ;;  %v4322_v63 = vxor.u32 2147483647, %v3458_v48  ;;  %v8659_v61 = vpop.f32.mrb[50].mxu0 }
 0x20b   : > { %v4898_v46 = vand.u32 4294967168, %v4593_v45  ;;  %vm4035_vm5 = vcmp.lt.s32.totalorder %v3459_v56, 0  ;;  %v5220_v36 = vor.u32 %v4932_v37, %v10164_v5  ;;  %v4323_v33 = vxor.u32 2147483647, %v3459_v56  ;;  %v8663_v25 = vpop.f32.mrb[50].mxu1  ;;  %v8665_v6 = vpop.f32.mrb[51].mxu0 }
 0x20c   : > { %vm5683_vm6 = vcmp.lt.s32.totalorder %v8600_v30, %v5185_v20  ;;  %vm4052_vm7 = vcmp.lt.s32.totalorder %v3476_v47, 0  ;;  %v4610_v44 = vsel %vm4034_vm4, %v4322_v63, %v3458_v48  ;;  %v4340_v17 = vxor.u32 2147483647, %v3476_v47  ;;  %v8669_v35 = vpop.f32.mrb[51].mxu1  ;;  %v10165_v48 = vld [vmem:[#allocation22_spill] sm:$0xff] }
 0x20d   : > { %v5186_v59 = vor.u32 %v4898_v46, %v10160_v0  ;;  %v5684_v45 = vsel %vm5683_vm6, %v8600_v30, %v5185_v20  ;;  %vm5648_vm8 = vcmp.lt.s32.totalorder %v8632_v29, %v5220_v36  ;;  %v4915_v14 = vand.u32 4294967168, %v4610_v44 }
 0x20e   : > { %v4611_v54 = vsel %vm4035_vm5, %v4323_v33, %v3459_v56  ;;  %vm4053_vm9 = vcmp.lt.s32.totalorder %v3477_v11, 0  ;;  %v4628_v15 = vsel %vm4052_vm7, %v4340_v17, %v3476_v47  ;;  %v4341_v52 = vxor.u32 2147483647, %v3477_v11  ;;  %3028 = vmatpush1.bf16.xpose.msra.mxu0 %v7323_v2 }
 0x20f   : > { %vm5722_vm10 = vcmp.lt.s32.totalorder %v5168_v28, %v5186_v59  ;;  %v4916_v37 = vand.u32 4294967168, %v4611_v54  ;;  %v5203_v38 = vor.u32 %v4915_v14, %v10161_v26  ;;  %v4933_v46 = vand.u32 4294967168, %v4628_v15  ;;  %3141 = vmatpush1.bf16.xpose.msra.mxu1 %v7324_v10  ;;  %6845 = vmatprep.subr.msk.bf16.mxu0 %vm1862_vm0, %v7325_v13 }
 0x210   : > { %v5723_v58 = vsel %vm5722_vm10, %v5168_v28, %v5186_v59  ;;  %v3492_v30 = vsub.f32 %v10165_v48, %v8560_v7  ;;  %v4629_v56 = vsel %vm4053_vm9, %v4341_v52, %v3477_v11  ;;  %v8680_v54 = vsel %vm5609_vm3, %v8608_v34, %v5219_v19  ;;  %v8684_v17 = vpop.f32.mrb[52].mxu0  ;;  %6872 = vmatprep.subr.msk.bf16.mxu1 %vm1862_vm0, %v7325_v13  ;;  %v7327_v34 = vld [vmem:[%s7469_s20 + $0x800] ss:$8 sps:$4 sm:$0xff]  }
 0x211   : > { %v5204_v44 = vor.u32 %v4916_v37, %v10161_v26  ;;  %v3494_v14 = vsub.f32 %v10165_v48, %v8562_v23  ;;  %v8686_v15 = vpop.f32.mrb[52].mxu1  ;;  %vm5685_vm11 = vcmp.lt.s32.totalorder %v5684_v45, %v5203_v38  ;;  %v5221_v7 = vor.u32 %v4933_v46, %v10164_v5  ;;  %v8690_v52 = vpop.f32.mrb[53].mxu0 }
 0x212   : > { %v4934_v28 = vand.u32 4294967168, %v4629_v56  ;;  %vm4068_vm12 = vcmp.lt.s32.totalorder %v3492_v30, 0  ;;  %v8692_v47 = vpop.f32.mrb[53].mxu1  ;;  %v5686_v19 = vsel %vm5685_vm11, %v5684_v45, %v5203_v38  ;;  %v4356_v11 = vxor.u32 2147483647, %v3492_v30  ;;  %v8695_v23 = vpop.f32.mrb[54].mxu0 }
 0x213   : > { %vm5724_vm13 = vcmp.lt.s32.totalorder %v5723_v58, %v5204_v44  ;;  %vm4070_vm14 = vcmp.lt.s32.totalorder %v3494_v14, 0  ;;  %v8697_v2 = vpop.f32.mrb[54].mxu1  ;;  %vm5687_vm15 = vcmp.lt.s32.totalorder %v5686_v19, %v5221_v7  ;;  %v4358_v13 = vxor.u32 2147483647, %v3494_v14  ;;  %v8700_v63 = vpop.f32.mrb[55].mxu0 }
 0x214   : > { %v5222_v20 = vor.u32 %v4934_v28, %v10164_v5  ;;  %v5725_v10 = vsel %vm5724_vm13, %v5723_v58, %v5204_v44  ;;  %v8702_v33 = vpop.f32.mrb[55].mxu1  ;;  %v4644_v59 = vsel %vm4068_vm12, %v4356_v11, %v3492_v30  ;;  %v5688_v37 = vsel %vm5687_vm15, %v5686_v19, %v5221_v7  ;;  %v7390_v44 = vld [vmem:[%s9988_s1] ss:$8 sps:$4 sm:$0xff]   ;;  %v7328_v30 = vld [vmem:[%s7469_s20 + $0x814] ss:$8 sps:$4 sm:$0xff]  }
 0x215   : > { %v3493_v38 = vsub.f32 %v10165_v48, %v8568_v4  ;;  %v8710_v45 = vsel %vm5648_vm8, %v8632_v29, %v5220_v36  ;;  %v4949_v46 = vand.u32 4294967168, %v4644_v59  ;;  %v4646_v56 = vsel %vm4070_vm14, %v4358_v13, %v3494_v14  ;;  %3030 = vmatmul.mubr.bf16.vlgmr.msra.gmra.mrb[96].mxu0 %v7390_v44  ;;  %v10166_v29 = vld [vmem:[#allocation9_spill] sm:$0xff]  ;;  %v10167_v19 = vld [vmem:[#allocation23_spill] sm:$0xff] }
 0x216   : > { %vm5726_vm1 = vcmp.lt.s32.totalorder %v5725_v10, %v5222_v20  ;;  %v3495_v58 = vsub.f32 %v10165_v48, %v8570_v62  ;;  %v4951_v7 = vand.u32 4294967168, %v4646_v56  ;;  %3143 = vmatmul.mubr.bf16.vlgmr.msra.gmra.mrb[96].mxu1 %v7390_v44  ;;  %3224 = vmatpush1.bf16.xpose.msra.mxu0 %v7327_v34  ;;  %v3510_v62 = vsub.f32 %v10167_v19, %v8575_v53  ;;  %v7391_v11 = vld [vmem:[%s9988_s1 + $0x14] ss:$8 sps:$4 sm:$0xff]  }
 0x217   : > { %vm4069_vm2 = vcmp.lt.s32.totalorder %v3493_v38, 0  ;;  %v4357_v4 = vxor.u32 2147483647, %v3493_v38  ;;  %v8718_v28 = vsel %vm5726_vm1, %v5725_v10, %v5222_v20  ;;  %v5237_v36 = vor.u32 %v4949_v46, %v10166_v29  ;;  %6888 = vmatpush1.bf16.xpose.msra.mxu1 %v7327_v34  ;;  %6814 = vmatprep.mubr.msk.bf16.mxu0 %vm1862_vm0, %v7391_v11 }
 0x218   : > { %vm4071_vm3 = vcmp.lt.s32.totalorder %v3495_v58, 0  ;;  %v4359_v14 = vxor.u32 2147483647, %v3495_v58  ;;  %v5239_v20 = vor.u32 %v4951_v7, %v10166_v29  ;;  %v3512_v13 = vsub.f32 %v10167_v19, %v8577_v16  ;;  %v8732_v46 = vpop.f32.mrb[56].mxu0  ;;  %6838 = vmatprep.mubr.msk.bf16.mxu1 %vm1862_vm0, %v7391_v11  ;;  %6846 = vmatprep.subr.msk.bf16.mxu0 %vm1862_vm0, %v7328_v30  ;;  %v7330_v16 = vld [vmem:[%s7469_s20 + $0x810] ss:$8 sps:$4 sm:$0xff]  }
 0x219   : > { %v4645_v10 = vsel %vm4069_vm2, %v4357_v4, %v3493_v38  ;;  %v3511_v59 = vsub.f32 %v10167_v19, %v8579_v32  ;;  %v8734_v53 = vpop.f32.mrb[56].mxu1  ;;  %vm5611_vm4 = vcmp.lt.s32.totalorder %v8680_v54, %v5237_v36  ;;  %vm4086_vm5 = vcmp.lt.s32.totalorder %v3510_v62, 0  ;;  %v8738_v44 = vpop.f32.mrb[57].mxu0  ;;  %6873 = vmatprep.subr.msk.bf16.mxu1 %vm1862_vm0, %v7328_v30 }
 0x21a   : > { %v4950_v34 = vand.u32 4294967168, %v4645_v10  ;;  %v4647_v56 = vsel %vm4071_vm3, %v4359_v14, %v3495_v58  ;;  %v8740_v38 = vpop.f32.mrb[57].mxu1  ;;  %vm5689_vm6 = vcmp.lt.s32.totalorder %v5688_v37, %v5239_v20  ;;  %v4374_v7 = vxor.u32 2147483647, %v3510_v62  ;;  %v8746_v11 = vpop.f32.mrb[58].mxu0 }
 0x21b   : > { %v4952_v32 = vand.u32 4294967168, %v4647_v56  ;;  %v5612_v4 = vsel %vm5611_vm4, %v8680_v54, %v5237_v36  ;;  %v8748_v48 = vpop.f32.mrb[58].mxu1  ;;  %vm4088_vm7 = vcmp.lt.s32.totalorder %v3512_v13, 0  ;;  %v4376_v14 = vxor.u32 2147483647, %v3512_v13  ;;  %v8751_v5 = vpop.f32.mrb[59].mxu0 }
 0x21c   : > { %v5238_v58 = vor.u32 %v4950_v34, %v10166_v29  ;;  %v5690_v10 = vsel %vm5689_vm6, %v5688_v37, %v5239_v20  ;;  %v8753_v26 = vpop.f32.mrb[59].mxu1  ;;  %v4662_v56 = vsel %vm4086_vm5, %v4374_v7, %v3510_v62  ;;  %vm4087_vm8 = vcmp.lt.s32.totalorder %v3511_v59, 0  ;;  %v7392_v37 = vld [vmem:[%s9988_s1 + $0x10] ss:$8 sps:$4 sm:$0xff]   ;;  %v7331_v20 = vld [vmem:[%s7469_s20 + $0x824] ss:$8 sps:$4 sm:$0xff]  }
 0x21d   : > { %10168 = vst [vmem:[#allocation36_spill] sm:$0xff] %v8753_v26  ;;  %v5240_v30 = vor.u32 %v4952_v32, %v10166_v29  ;;  %v4375_v54 = vxor.u32 2147483647, %v3511_v59  ;;  %v4967_v36 = vand.u32 4294967168, %v4662_v56  ;;  %v4664_v0 = vsel %vm4088_vm7, %v4376_v14, %v3512_v13  ;;  %3040 = vmatmul.mubr.bf16.gmra.mrb[100].mxu0 %v7392_v37  ;;  %v10169_v7 = vld [vmem:[#allocation10_spill] sm:$0xff] }
 0x21e   : > { %vm5650_vm9 = vcmp.lt.s32.totalorder %v8710_v45, %v5238_v58  ;;  %v3513_v34 = vsub.f32 %v10167_v19, %v8581_v57  ;;  %v4969_v32 = vand.u32 4294967168, %v4664_v0  ;;  %3153 = vmatmul.mubr.bf16.gmra.mrb[100].mxu1 %v7392_v37  ;;  %3226 = vmatpush1.bf16.xpose.msra.mxu0 %v7330_v16  ;;  %v7393_v57 = vld [vmem:[%s9988_s1 + $0x24] ss:$8 sps:$4 sm:$0xff]  }
 0x21f   : > { %vm5728_vm10 = vcmp.lt.s32.totalorder %v8718_v28, %v5240_v30  ;;  %v4663_v29 = vsel %vm4087_vm8, %v4375_v54, %v3511_v59  ;;  %v5651_v62 = vsel %vm5650_vm9, %v8710_v45, %v5238_v58  ;;  %v5255_v56 = vor.u32 %v4967_v36, %v10169_v7  ;;  %6889 = vmatpush1.bf16.xpose.msra.mxu1 %v7330_v16  ;;  %v10170_v45 = vld [vmem:[#allocation24_spill] sm:$0xff] }
 0x220   : > { %v4968_v13 = vand.u32 4294967168, %v4663_v29  ;;  %vm4089_vm11 = vcmp.lt.s32.totalorder %v3513_v34, 0  ;;  %v4377_v14 = vxor.u32 2147483647, %v3513_v34  ;;  %6815 = vmatprep.mubr.msk.bf16.mxu0 %vm1862_vm0, %v7393_v57  ;;  %v5257_v0 = vor.u32 %v4969_v32, %v10169_v7  ;;  %v8777_v54 = vpop.f32.mrb[60].mxu0  ;;  %6839 = vmatprep.mubr.msk.bf16.mxu1 %vm1862_vm0, %v7393_v57 }
 0x221   : > { %v5729_v59 = vsel %vm5728_vm10, %v8718_v28, %v5240_v30  ;;  %v3528_v58 = vsub.f32 %v10170_v45, %v8592_v41  ;;  %v3530_v29 = vsub.f32 %v10170_v45, %v8594_v18  ;;  %10171 = vst [vmem:[#allocation10_spill] sm:$0xff] %v8777_v54  ;;  %v8779_v16 = vpop.f32.mrb[60].mxu1  ;;  %vm5613_vm12 = vcmp.lt.s32.totalorder %v5612_v4, %v5255_v56  ;;  %v8785_v28 = vpop.f32.mrb[61].mxu0  ;;  %v7333_v41 = vld [vmem:[%s7469_s20 + $0x820] ss:$8 sps:$4 sm:$0xff]  }
 0x222   : > { %10172 = vst [vmem:[#allocation24_spill] sm:$0xff] %v8779_v16  ;;  %v5256_v36 = vor.u32 %v4968_v13, %v10169_v7  ;;  %v4665_v37 = vsel %vm4089_vm11, %v4377_v14, %v3513_v34  ;;  %v3529_v32 = vsub.f32 %v10170_v45, %v8602_v3  ;;  %10173 = vst [vmem:[#allocation37_spill] sm:$0xff] %v8785_v28  ;;  %v8787_v30 = vpop.f32.mrb[61].mxu1  ;;  %6847 = vmatprep.subr.msk.bf16.mxu0 %vm1862_vm0, %v7331_v20  ;;  %v8791_v16 = vpop.f32.mrb[62].mxu0 }
 0x223   : > { %10174 = vst [vmem:[#allocation38_spill] sm:$0xff] %v8787_v30  ;;  %vm5691_vm13 = vcmp.lt.s32.totalorder %v5690_v10, %v5257_v0  ;;  %v4970_v18 = vand.u32 4294967168, %v4665_v37  ;;  %vm4104_vm14 = vcmp.lt.s32.totalorder %v3528_v58, 0  ;;  %v4392_v19 = vxor.u32 2147483647, %v3528_v58  ;;  %10175 = vst [vmem:[#allocation39_spill] sm:$0xff] %v8791_v16  ;;  %6874 = vmatprep.subr.msk.bf16.mxu1 %vm1862_vm0, %v7331_v20 }
 0x224   : > { %v8793_v57 = vpop.f32.mrb[62].mxu1  ;;  %vm5652_vm15 = vcmp.lt.s32.totalorder %v5651_v62, %v5256_v36  ;;  %v5614_v3 = vsel %vm5613_vm12, %v5612_v4, %v5255_v56  ;;  %vm4106_vm1 = vcmp.lt.s32.totalorder %v3530_v29, 0  ;;  %v4394_v34 = vxor.u32 2147483647, %v3530_v29  ;;  %v8797_v13 = vpop.f32.mrb[63].mxu0 }
 0x225   : > { %10176 = vst [vmem:[#allocation40_spill] sm:$0xff] %v8793_v57  ;;  %v8799_v14 = vpop.f32.mrb[63].mxu1  ;;  %v5258_v37 = vor.u32 %v4970_v18, %v10169_v7  ;;  %v4680_v30 = vsel %vm4104_vm14, %v4392_v19, %v3528_v58  ;;  %v5692_v28 = vsel %vm5691_vm13, %v5690_v10, %v5257_v0  ;;  %vm4105_vm2 = vcmp.lt.s32.totalorder %v3529_v32, 0  ;;  %v7394_v20 = vld [vmem:[%s9988_s1 + $0x20] ss:$8 sps:$4 sm:$0xff]   ;;  %v10179_v10 = vld [vmem:[#allocation11_spill] sm:$0xff] }
 0x226   : > { %10177 = vst [vmem:[#allocation41_spill] sm:$0xff] %v8799_v14  ;;  %v4985_v16 = vand.u32 4294967168, %v4680_v30  ;;  %v4682_v54 = vsel %vm4106_vm1, %v4394_v34, %v3530_v29  ;;  %v4393_v57 = vxor.u32 2147483647, %v3529_v32  ;;  %v5653_v26 = vsel %vm5652_vm15, %v5651_v62, %v5256_v36  ;;  %3050 = vmatmul.mubr.bf16.gmra.mrb[104].mxu0 %v7394_v20  ;;  %v7334_v4 = vld [vmem:[%s7469_s20 + $0x834] ss:$8 sps:$4 sm:$0xff]   ;;  %3163 = vmatmul.mubr.bf16.gmra.mrb[104].mxu1 %v7394_v20 }
 0x227   : > { %vm5730_vm3 = vcmp.lt.s32.totalorder %v5729_v59, %v5258_v37  ;;  %v4987_v56 = vand.u32 4294967168, %v4682_v54  ;;  %v3531_v14 = vsub.f32 %v10170_v45, %v8604_v49  ;;  %v10178_v18 = vld [vmem:[#allocation25_spill] sm:$0xff]  ;;  %3228 = vmatpush1.bf16.xpose.msra.mxu0 %v7333_v41  ;;  %6890 = vmatpush1.bf16.xpose.msra.mxu1 %v7333_v41  ;;  %v7395_v49 = vld [vmem:[%s9988_s1 + $0x34] ss:$8 sps:$4 sm:$0xff]  }
 0x228   : > { %v3546_v19 = vsub.f32 %v10178_v18, %v8612_v60  ;;  %v5273_v0 = vor.u32 %v4985_v16, %v10179_v10  ;;  %v4681_v58 = vsel %vm4105_vm2, %v4393_v57, %v3529_v32  ;;  %v5731_v62 = vsel %vm5730_vm3, %v5729_v59, %v5258_v37  ;;  %6816 = vmatprep.mubr.msk.bf16.mxu0 %vm1862_vm0, %v7395_v49  ;;  %v7336_v32 = vld [vmem:[%s7469_s20 + $0x830] ss:$8 sps:$4 sm:$0xff]  }
 0x229   : > { %v3548_v29 = vsub.f32 %v10178_v18, %v8614_v27  ;;  %v5275_v36 = vor.u32 %v4987_v56, %v10179_v10  ;;  %v4986_v30 = vand.u32 4294967168, %v4681_v58  ;;  %vm4107_vm4 = vcmp.lt.s32.totalorder %v3531_v14, 0  ;;  %6840 = vmatprep.mubr.msk.bf16.mxu1 %vm1862_vm0, %v7395_v49  ;;  %6848 = vmatprep.subr.msk.bf16.mxu0 %vm1862_vm0, %v7334_v4 }
 0x22a   : > { %v4395_v54 = vxor.u32 2147483647, %v3531_v14  ;;  %vm5615_vm5 = vcmp.lt.s32.totalorder %v5614_v3, %v5273_v0  ;;  %vm4122_vm6 = vcmp.lt.s32.totalorder %v3546_v19, 0  ;;  %v4410_v60 = vxor.u32 2147483647, %v3546_v19  ;;  %6875 = vmatprep.subr.msk.bf16.mxu1 %vm1862_vm0, %v7334_v4 }
 0x22b   : > { %vm4124_vm7 = vcmp.lt.s32.totalorder %v3548_v29, 0  ;;  %vm5693_vm8 = vcmp.lt.s32.totalorder %v5692_v28, %v5275_v36  ;;  %v5274_v27 = vor.u32 %v4986_v30, %v10179_v10  ;;  %v5616_v16 = vsel %vm5615_vm5, %v5614_v3, %v5273_v0 }
 0x22c   : > { %v4683_v59 = vsel %vm4107_vm4, %v4395_v54, %v3531_v14  ;;  %v4698_v57 = vsel %vm4122_vm6, %v4410_v60, %v3546_v19  ;;  %v4412_v34 = vxor.u32 2147483647, %v3548_v29  ;;  %v5694_v37 = vsel %vm5693_vm8, %v5692_v28, %v5275_v36  ;;  %v7396_v28 = vld [vmem:[%s9988_s1 + $0x30] ss:$8 sps:$4 sm:$0xff]   ;;  %v7337_v19 = vld [vmem:[%s7469_s20 + $0x844] ss:$8 sps:$4 sm:$0xff]  }
 0x22d   : > { %v4988_v41 = vand.u32 4294967168, %v4683_v59  ;;  %vm5654_vm9 = vcmp.lt.s32.totalorder %v5653_v26, %v5274_v27  ;;  %v5003_v20 = vand.u32 4294967168, %v4698_v57  ;;  %v3547_v56 = vsub.f32 %v10178_v18, %v8622_v1 }
 0x22e   : > { %v3549_v58 = vsub.f32 %v10178_v18, %v8624_v24  ;;  %v4700_v30 = vsel %vm4124_vm7, %v4412_v34, %v3548_v29  ;;  %v5655_v14 = vsel %vm5654_vm9, %v5653_v26, %v5274_v27  ;;  %v3564_v3 = vsub.f32 %v8265_v50, %v8644_v51  ;;  %3060 = vmatmul.mubr.bf16.gmra.mrb[108].mxu0 %v7396_v28  ;;  %v8839_v26 = vld [vmem:[%s9988_s1 + $0x44] ss:$8 sps:$4 sm:$0xff]  }
 0x22f   : > { %v5276_v4 = vor.u32 %v4988_v41, %v10179_v10  ;;  %v5291_v0 = vor.u32 %v5003_v20, %v7985_v31  ;;  %v5005_v1 = vand.u32 4294967168, %v4700_v30  ;;  %vm4123_vm10 = vcmp.lt.s32.totalorder %v3547_v56, 0  ;;  %3173 = vmatmul.mubr.bf16.gmra.mrb[108].mxu1 %v7396_v28  ;;  %3230 = vmatpush1.bf16.xpose.msra.mxu0 %v7336_v32 }
 0x230   : > { %v4411_v36 = vxor.u32 2147483647, %v3547_v56  ;;  %vm4125_vm12 = vcmp.lt.s32.totalorder %v3549_v58, 0  ;;  %v4413_v24 = vxor.u32 2147483647, %v3549_v58  ;;  %vm4140_vm13 = vcmp.lt.s32.totalorder %v3564_v3, 0  ;;  %6891 = vmatpush1.bf16.xpose.msra.mxu1 %v7336_v32  ;;  %6817 = vmatprep.mubr.msk.bf16.mxu0 %vm1862_vm0, %v8839_v26 }
 0x231   : > { %vm5732_vm11 = vcmp.lt.s32.totalorder %v5731_v62, %v5276_v4  ;;  %vm5617_vm14 = vcmp.lt.s32.totalorder %v5616_v16, %v5291_v0  ;;  %v5293_v51 = vor.u32 %v5005_v1, %v7985_v31  ;;  %6841 = vmatprep.mubr.msk.bf16.mxu1 %vm1862_vm0, %v8839_v26  ;;  %v4428_v27 = vxor.u32 2147483647, %v3564_v3  ;;  %6849 = vmatprep.subr.msk.bf16.mxu0 %vm1862_vm0, %v7337_v19 }
 0x232   : > { %v4699_v29 = vsel %vm4123_vm10, %v4411_v36, %v3547_v56  ;;  %v5733_v54 = vsel %vm5732_vm11, %v5731_v62, %v5276_v4  ;;  %v4701_v60 = vsel %vm4125_vm12, %v4413_v24, %v3549_v58  ;;  %v5618_v59 = vsel %vm5617_vm14, %v5616_v16, %v5291_v0  ;;  %6876 = vmatprep.subr.msk.bf16.mxu1 %vm1862_vm0, %v7337_v19  ;;  %v7339_v56 = vld [vmem:[%s7469_s20 + $0x840] ss:$8 sps:$4 sm:$0xff]  }
 0x233   : > { %v5004_v49 = vand.u32 4294967168, %v4699_v29  ;;  %vm5695_vm15 = vcmp.lt.s32.totalorder %v5694_v37, %v5293_v51  ;;  %v5006_v32 = vand.u32 4294967168, %v4701_v60  ;;  %v3566_v41 = vsub.f32 %v8265_v50, %v8646_v22 }
 0x234   : > { %v3565_v62 = vsub.f32 %v8265_v50, %v8653_v8  ;;  %v4716_v34 = vsel %vm4140_vm13, %v4428_v27, %v3564_v3  ;;  %v5696_v20 = vsel %vm5695_vm15, %v5694_v37, %v5293_v51  ;;  %v3567_v16 = vsub.f32 %v8265_v50, %v8655_v12  ;;  %v7398_v8 = vld [vmem:[%s9988_s1 + $0x40] ss:$8 sps:$4 sm:$0xff]   ;;  %v7340_v3 = vld [vmem:[%s7469_s20 + $0x854] ss:$8 sps:$4 sm:$0xff]  }
 0x235   : > { %v5292_v57 = vor.u32 %v5004_v49, %v7985_v31  ;;  %v5294_v58 = vor.u32 %v5006_v32, %v7985_v31  ;;  %v5021_v4 = vand.u32 4294967168, %v4716_v34  ;;  %vm4142_vm1 = vcmp.lt.s32.totalorder %v3566_v41, 0  ;;  %v7399_v49 = vld [vmem:[%s9988_s1 + $0x54] ss:$8 sps:$4 sm:$0xff]  }
 0x236   : > { %v4430_v30 = vxor.u32 2147483647, %v3566_v41  ;;  %vm4141_vm3 = vcmp.lt.s32.totalorder %v3565_v62, 0  ;;  %v4429_v22 = vxor.u32 2147483647, %v3565_v62  ;;  %vm4143_vm4 = vcmp.lt.s32.totalorder %v3567_v16, 0  ;;  %3070 = vmatmul.mubr.bf16.gmra.mrb[112].mxu0 %v7398_v8 }
 0x237   : > { %vm5656_vm2 = vcmp.lt.s32.totalorder %v5655_v14, %v5292_v57  ;;  %vm5734_vm5 = vcmp.lt.s32.totalorder %v5733_v54, %v5294_v58  ;;  %v5309_v37 = vor.u32 %v5021_v4, %v7990_v39  ;;  %3183 = vmatmul.mubr.bf16.gmra.mrb[112].mxu1 %v7398_v8  ;;  %v4431_v1 = vxor.u32 2147483647, %v3567_v16  ;;  %3232 = vmatpush1.bf16.xpose.msra.mxu0 %v7339_v56  ;;  %v7400_v4 = vld [vmem:[%s9988_s1 + $0x50] ss:$8 sps:$4 sm:$0xff]  }
 0x238   : > { %v4718_v12 = vsel %vm4142_vm1, %v4430_v30, %v3566_v41  ;;  %v5657_v28 = vsel %vm5656_vm2, %v5655_v14, %v5292_v57  ;;  %v4717_v0 = vsel %vm4141_vm3, %v4429_v22, %v3565_v62  ;;  %v5735_v36 = vsel %vm5734_vm5, %v5733_v54, %v5294_v58  ;;  %6892 = vmatpush1.bf16.xpose.msra.mxu1 %v7339_v56  ;;  %v7342_v62 = vld [vmem:[%s7469_s20 + $0x850] ss:$8 sps:$4 sm:$0xff]   ;;  %v7343_v30 = vld [vmem:[%s7469_s20 + $0x864] ss:$8 sps:$4 sm:$0xff]  }
 0x239   : > { %v5023_v19 = vand.u32 4294967168, %v4718_v12  ;;  %vm5619_vm6 = vcmp.lt.s32.totalorder %v5618_v59, %v5309_v37  ;;  %v5022_v24 = vand.u32 4294967168, %v4717_v0  ;;  %v3582_v51 = vsub.f32 %v8322_v21, %v8659_v61  ;;  %6818 = vmatprep.mubr.msk.bf16.mxu0 %vm1862_vm0, %v7399_v49  ;;  %6842 = vmatprep.mubr.msk.bf16.mxu1 %vm1862_vm0, %v7399_v49 }
 0x23a   : > { %v3584_v29 = vsub.f32 %v8322_v21, %v8663_v25  ;;  %v4719_v54 = vsel %vm4143_vm4, %v4431_v1, %v3567_v16  ;;  %v5620_v60 = vsel %vm5619_vm6, %v5618_v59, %v5309_v37  ;;  %v3583_v61 = vsub.f32 %v8322_v21, %v8665_v6  ;;  %6850 = vmatprep.subr.msk.bf16.mxu0 %vm1862_vm0, %v7340_v3 }
 0x23b   : > { %v5311_v14 = vor.u32 %v5023_v19, %v7990_v39  ;;  %v5310_v25 = vor.u32 %v5022_v24, %v7990_v39  ;;  %v5024_v27 = vand.u32 4294967168, %v4719_v54  ;;  %vm4158_vm7 = vcmp.lt.s32.totalorder %v3582_v51, 0  ;;  %6877 = vmatprep.subr.msk.bf16.mxu1 %vm1862_vm0, %v7340_v3  ;;  %v7345_v54 = vld [vmem:[%s7469_s20 + $0x860] ss:$8 sps:$4 sm:$0xff]  }
 0x23c   : > { %v4446_v32 = vxor.u32 2147483647, %v3582_v51  ;;  %vm4160_vm9 = vcmp.lt.s32.totalorder %v3584_v29, 0  ;;  %v4448_v41 = vxor.u32 2147483647, %v3584_v29  ;;  %vm4159_vm10 = vcmp.lt.s32.totalorder %v3583_v61, 0 }
 0x23d   : > { %vm5697_vm8 = vcmp.lt.s32.totalorder %v5696_v20, %v5311_v14  ;;  %vm5658_vm11 = vcmp.lt.s32.totalorder %v5657_v28, %v5310_v25  ;;  %v5312_v59 = vor.u32 %v5024_v27, %v7990_v39  ;;  %v4447_v56 = vxor.u32 2147483647, %v3583_v61 }
 0x23e   : > { %v4734_v57 = vsel %vm4158_vm7, %v4446_v32, %v3582_v51  ;;  %v5698_v6 = vsel %vm5697_vm8, %v5696_v20, %v5311_v14  ;;  %v4736_v16 = vsel %vm4160_vm9, %v4448_v41, %v3584_v29  ;;  %v5659_v58 = vsel %vm5658_vm11, %v5657_v28, %v5310_v25  ;;  %3080 = vmatmul.mubr.bf16.gmra.mrb[116].mxu0 %v7400_v4  ;;  %v7401_v20 = vld [vmem:[%s9988_s1 + $0x64] ss:$8 sps:$4 sm:$0xff]  }
 0x23f   : > { %v5039_v34 = vand.u32 4294967168, %v4734_v57  ;;  %vm5736_vm12 = vcmp.lt.s32.totalorder %v5735_v36, %v5312_v59  ;;  %v5041_v22 = vand.u32 4294967168, %v4736_v16  ;;  %v3585_v8 = vsub.f32 %v8322_v21, %v8669_v35  ;;  %3193 = vmatmul.mubr.bf16.gmra.mrb[116].mxu1 %v7400_v4  ;;  %6819 = vmatprep.mubr.msk.bf16.mxu0 %vm1862_vm0, %v7401_v20  ;;  %v7346_v57 = vld [vmem:[%s7469_s20 + $0x874] ss:$8 sps:$4 sm:$0xff]  }
 0x240   : > { %v3600_v3 = vsub.f32 %v8350_v55, %v8684_v17  ;;  %v4735_v12 = vsel %vm4159_vm10, %v4447_v56, %v3583_v61  ;;  %v5737_v28 = vsel %vm5736_vm12, %v5735_v36, %v5312_v59  ;;  %v3602_v19 = vsub.f32 %v8350_v55, %v8686_v15  ;;  %3234 = vmatpush1.bf16.xpose.msra.mxu0 %v7342_v62  ;;  %v7402_v59 = vld [vmem:[%s9988_s1 + $0x60] ss:$8 sps:$4 sm:$0xff]  }
 0x241   : > { %v5327_v37 = vor.u32 %v5039_v34, %v7993_v40  ;;  %v5329_v35 = vor.u32 %v5041_v22, %v7993_v40  ;;  %v5040_v0 = vand.u32 4294967168, %v4735_v12  ;;  %vm4161_vm13 = vcmp.lt.s32.totalorder %v3585_v8, 0  ;;  %6893 = vmatpush1.bf16.xpose.msra.mxu1 %v7342_v62  ;;  %6843 = vmatprep.mubr.msk.bf16.mxu1 %vm1862_vm0, %v7401_v20 }
 0x242   : > { %v4449_v17 = vxor.u32 2147483647, %v3585_v8  ;;  %vm4176_vm15 = vcmp.lt.s32.totalorder %v3600_v3, 0  ;;  %v4464_v1 = vxor.u32 2147483647, %v3600_v3  ;;  %vm4178_vm1 = vcmp.lt.s32.totalorder %v3602_v19, 0  ;;  %6851 = vmatprep.subr.msk.bf16.mxu0 %vm1862_vm0, %v7343_v30  ;;  %6878 = vmatprep.subr.msk.bf16.mxu1 %vm1862_vm0, %v7343_v30 }
 0x243   : > { %vm5621_vm14 = vcmp.lt.s32.totalorder %v5620_v60, %v5327_v37  ;;  %vm5699_vm2 = vcmp.lt.s32.totalorder %v5698_v6, %v5329_v35  ;;  %v5328_v15 = vor.u32 %v5040_v0, %v7993_v40  ;;  %v4466_v49 = vxor.u32 2147483647, %v3602_v19  ;;  %v7348_v0 = vld [vmem:[%s7469_s20 + $0x870] ss:$8 sps:$4 sm:$0xff]  }
 0x244   : > { %v4737_v36 = vsel %vm4161_vm13, %v4449_v17, %v3585_v8  ;;  %v5622_v24 = vsel %vm5621_vm14, %v5620_v60, %v5327_v37  ;;  %v4752_v29 = vsel %vm4176_vm15, %v4464_v1, %v3600_v3  ;;  %v5700_v14 = vsel %vm5699_vm2, %v5698_v6, %v5329_v35 }
 0x245   : > { %v5042_v51 = vand.u32 4294967168, %v4737_v36  ;;  %vm5660_vm3 = vcmp.lt.s32.totalorder %v5659_v58, %v5328_v15  ;;  %v5057_v61 = vand.u32 4294967168, %v4752_v29  ;;  %v3601_v25 = vsub.f32 %v8350_v55, %v8690_v52  ;;  %v7349_v36 = vld [vmem:[%s7469_s20 + $0x884] ss:$8 sps:$4 sm:$0xff]  }
 0x246   : > { %v3603_v27 = vsub.f32 %v8350_v55, %v8692_v47  ;;  %v4754_v41 = vsel %vm4178_vm1, %v4466_v49, %v3602_v19  ;;  %v5661_v62 = vsel %vm5660_vm3, %v5659_v58, %v5328_v15  ;;  %v3618_v60 = vsub.f32 %v8378_v9, %v8695_v23  ;;  %3090 = vmatmul.mubr.bf16.gmra.mrb[120].mxu0 %v7402_v59  ;;  %v7403_v47 = vld [vmem:[%s9988_s1 + $0x74] ss:$8 sps:$4 sm:$0xff]  }
 0x247   : > { %v5330_v32 = vor.u32 %v5042_v51, %v7993_v40  ;;  %v5345_v6 = vor.u32 %v5057_v61, %v7996_v42  ;;  %v5059_v52 = vand.u32 4294967168, %v4754_v41  ;;  %vm4177_vm4 = vcmp.lt.s32.totalorder %v3601_v25, 0  ;;  %3203 = vmatmul.mubr.bf16.gmra.mrb[120].mxu1 %v7402_v59  ;;  %6820 = vmatprep.mubr.msk.bf16.mxu0 %vm1862_vm0, %v7403_v47  ;;  %v7405_v61 = vld [vmem:[%s9988_s1 + $0x4] ss:$8 sps:$4 sm:$0xff]   ;;  %v10201_v40 = vld [vmem:[#allocation34_spill] sm:$0xff] }
 0x248   : > { %v4465_v34 = vxor.u32 2147483647, %v3601_v25  ;;  %vm4179_vm6 = vcmp.lt.s32.totalorder %v3603_v27, 0  ;;  %v4467_v23 = vxor.u32 2147483647, %v3603_v27  ;;  %vm4194_vm7 = vcmp.lt.s32.totalorder %v3618_v60, 0  ;;  %3236 = vmatpush1.bf16.xpose.msra.mxu0 %v7345_v54  ;;  %6844 = vmatprep.mubr.msk.bf16.mxu1 %vm1862_vm0, %v7403_v47 }
 0x249   : > { %vm5738_vm5 = vcmp.lt.s32.totalorder %v5737_v28, %v5330_v32  ;;  %vm5623_vm8 = vcmp.lt.s32.totalorder %v5622_v24, %v5345_v6  ;;  %v5347_v16 = vor.u32 %v5059_v52, %v7996_v42  ;;  %6894 = vmatpush1.bf16.xpose.msra.mxu1 %v7345_v54  ;;  %v4482_v22 = vxor.u32 2147483647, %v3618_v60  ;;  %6852 = vmatprep.subr.msk.bf16.mxu0 %vm1862_vm0, %v7346_v57 }
 0x24a   : > { %v4753_v56 = vsel %vm4177_vm4, %v4465_v34, %v3601_v25  ;;  %v5739_v58 = vsel %vm5738_vm5, %v5737_v28, %v5330_v32  ;;  %v4755_v30 = vsel %vm4179_vm6, %v4467_v23, %v3603_v27  ;;  %v5624_v8 = vsel %vm5623_vm8, %v5622_v24, %v5345_v6  ;;  %6879 = vmatprep.subr.msk.bf16.mxu1 %vm1862_vm0, %v7346_v57  ;;  %v10180_v27 = vld [vmem:[#allocation30_spill] sm:$0xff]  ;;  %v7351_v34 = vld [vmem:[%s7469_s20 + $0x880] ss:$8 sps:$4 sm:$0xff]  }
 0x24b   : > { %v5058_v4 = vand.u32 4294967168, %v4753_v56  ;;  %vm5701_vm9 = vcmp.lt.s32.totalorder %v5700_v14, %v5347_v16  ;;  %v5060_v3 = vand.u32 4294967168, %v4755_v30  ;;  %v3620_v20 = vsub.f32 %v8378_v9, %v8697_v2 }
 0x24c   : > { %v3619_v37 = vsub.f32 %v8378_v9, %v8700_v63  ;;  %v4770_v28 = vsel %vm4194_vm7, %v4482_v22, %v3618_v60  ;;  %v5702_v19 = vsel %vm5701_vm9, %v5700_v14, %v5347_v16  ;;  %v3621_v35 = vsub.f32 %v8378_v9, %v8702_v33  ;;  %v7404_v63 = vld [vmem:[%s9988_s1 + $0x70] ss:$8 sps:$4 sm:$0xff]   ;;  %v7352_v16 = vld [vmem:[%s7469_s20 + $0x894] ss:$8 sps:$4 sm:$0xff]  }
 0x24d   : > { %v5346_v12 = vor.u32 %v5058_v4, %v7996_v42  ;;  %v5348_v17 = vor.u32 %v5060_v3, %v7996_v42  ;;  %v5075_v1 = vand.u32 4294967168, %v4770_v28  ;;  %vm4196_vm10 = vcmp.lt.s32.totalorder %v3620_v20, 0 }
 0x24e   : > { %v4484_v15 = vxor.u32 2147483647, %v3620_v20  ;;  %vm4195_vm12 = vcmp.lt.s32.totalorder %v3619_v37, 0  ;;  %v4483_v2 = vxor.u32 2147483647, %v3619_v37  ;;  %vm4197_vm13 = vcmp.lt.s32.totalorder %v3621_v35, 0  ;;  %3100 = vmatmul.mubr.bf16.gmra.mrb[124].mxu0 %v7404_v63 }
 0x24f   : > { %vm5662_vm11 = vcmp.lt.s32.totalorder %v5661_v62, %v5346_v12  ;;  %vm5740_vm14 = vcmp.lt.s32.totalorder %v5739_v58, %v5348_v17  ;;  %v5363_v24 = vor.u32 %v5075_v1, %v7999_v43  ;;  %3213 = vmatmul.mubr.bf16.gmra.mrb[124].mxu1 %v7404_v63  ;;  %v4485_v14 = vxor.u32 2147483647, %v3621_v35  ;;  %6861 = vmatprep.mubr.msk.bf16.mxu0 %vm1862_vm0, %v7405_v61 }
 0x250   : > { %v4772_v33 = vsel %vm4196_vm10, %v4484_v15, %v3620_v20  ;;  %v5663_v51 = vsel %vm5662_vm11, %v5661_v62, %v5346_v12  ;;  %v4771_v49 = vsel %vm4195_vm12, %v4483_v2, %v3619_v37  ;;  %v5741_v54 = vsel %vm5740_vm14, %v5739_v58, %v5348_v17  ;;  %3238 = vmatpush1.bf16.xpose.msra.mxu0 %v7348_v0  ;;  %v10182_v20 = vld [vmem:[#allocation17_spill] sm:$0xff] }
 0x251   : > { %v5077_v29 = vand.u32 4294967168, %v4772_v33  ;;  %vm5625_vm15 = vcmp.lt.s32.totalorder %v5624_v8, %v5363_v24  ;;  %v5076_v25 = vand.u32 4294967168, %v4771_v49  ;;  %v3636_v32 = vsub.f32 %v10180_v27, %v8732_v46  ;;  %6895 = vmatpush1.bf16.xpose.msra.mxu1 %v7348_v0  ;;  %6853 = vmatprep.subr.msk.bf16.mxu0 %vm1862_vm0, %v7349_v36 }
 0x252   : > { %v3638_v41 = vsub.f32 %v10180_v27, %v8734_v53  ;;  %v4773_v60 = vsel %vm4197_vm13, %v4485_v14, %v3621_v35  ;;  %v5626_v59 = vsel %vm5625_vm15, %v5624_v8, %v5363_v24  ;;  %v3637_v57 = vsub.f32 %v10180_v27, %v8738_v44  ;;  %6880 = vmatprep.subr.msk.bf16.mxu1 %vm1862_vm0, %v7349_v36  ;;  %v10181_v8 = vld [vmem:[#allocation31_spill] sm:$0xff] }
 0x253   : > { %v5365_v62 = vor.u32 %v5077_v29, %v7999_v43  ;;  %v5364_v46 = vor.u32 %v5076_v25, %v7999_v43  ;;  %v5078_v6 = vand.u32 4294967168, %v4773_v60  ;;  %vm4212_vm1 = vcmp.lt.s32.totalorder %v3636_v32, 0  ;;  %6865 = vmatprep.mubr.msk.bf16.mxu1 %vm1862_vm0, %v8839_v26  ;;  %v7354_v24 = vld [vmem:[%s7469_s20 + $0x890] ss:$8 sps:$4 sm:$0xff]   ;;  %v10183_v29 = vld [vmem:[#allocation36_spill] sm:$0xff] }
 0x254   : > { %v4500_v53 = vxor.u32 2147483647, %v3636_v32  ;;  %vm4214_vm3 = vcmp.lt.s32.totalorder %v3638_v41, 0  ;;  %v4502_v52 = vxor.u32 2147483647, %v3638_v41  ;;  %vm4213_vm4 = vcmp.lt.s32.totalorder %v3637_v57, 0 }
 0x255   : > { %vm5703_vm2 = vcmp.lt.s32.totalorder %v5702_v19, %v5365_v62  ;;  %vm5664_vm5 = vcmp.lt.s32.totalorder %v5663_v51, %v5364_v46  ;;  %v5366_v47 = vor.u32 %v5078_v6, %v7999_v43  ;;  %v4501_v4 = vxor.u32 2147483647, %v3637_v57  ;;  %v10184_v25 = vld [vmem:[#allocation10_spill] sm:$0xff] }
 0x256   : > { %v4788_v44 = vsel %vm4212_vm1, %v4500_v53, %v3636_v32  ;;  %v5704_v23 = vsel %vm5703_vm2, %v5702_v19, %v5365_v62  ;;  %v4790_v58 = vsel %vm4214_vm3, %v4502_v52, %v3638_v41  ;;  %v5665_v30 = vsel %vm5664_vm5, %v5663_v51, %v5364_v46  ;;  %v10185_v32 = vld [vmem:[#allocation32_spill] sm:$0xff]  ;;  %v10186_v60 = vld [vmem:[#allocation18_spill] sm:$0xff] }
 0x257   : > { %v5093_v56 = vand.u32 4294967168, %v4788_v44  ;;  %vm5742_vm6 = vcmp.lt.s32.totalorder %v5741_v54, %v5366_v47  ;;  %v5095_v22 = vand.u32 4294967168, %v4790_v58  ;;  %v3639_v26 = vsub.f32 %v10180_v27, %v8740_v38  ;;  %v7355_v62 = vld [vmem:[%s7469_s20 + $0x8a4] ss:$8 sps:$4 sm:$0xff]   ;;  %v7370_v27 = vld [vmem:[%s7469_s20 + $0x8f4] ss:$8 sps:$4 sm:$0xff]  }
 0x258   : > { %v3654_v3 = vsub.f32 %v10181_v8, %v8746_v11  ;;  %v4789_v12 = vsel %vm4213_vm4, %v4501_v4, %v3637_v57  ;;  %v5743_v28 = vsel %vm5742_vm6, %v5741_v54, %v5366_v47  ;;  %v3656_v19 = vsub.f32 %v10181_v8, %v8748_v48  ;;  %3240 = vmatpush1.bf16.xpose.msra.mxu0 %v7351_v34  ;;  %v10188_v4 = vld [vmem:[#allocation37_spill] sm:$0xff] }
 0x259   : > { %v5381_v37 = vor.u32 %v5093_v56, %v10182_v20  ;;  %v5383_v35 = vor.u32 %v5095_v22, %v10182_v20  ;;  %v5094_v0 = vand.u32 4294967168, %v4789_v12  ;;  %vm4215_vm7 = vcmp.lt.s32.totalorder %v3639_v26, 0  ;;  %6896 = vmatpush1.bf16.xpose.msra.mxu1 %v7351_v34  ;;  %6854 = vmatprep.subr.msk.bf16.mxu0 %vm1862_vm0, %v7352_v16  ;;  %v10187_v56 = vld [vmem:[#allocation24_spill] sm:$0xff] }
 0x25a   : > { %v4503_v17 = vxor.u32 2147483647, %v3639_v26  ;;  %vm4230_vm9 = vcmp.lt.s32.totalorder %v3654_v3, 0  ;;  %v4518_v38 = vxor.u32 2147483647, %v3654_v3  ;;  %vm4232_vm10 = vcmp.lt.s32.totalorder %v3656_v19, 0  ;;  %6881 = vmatprep.subr.msk.bf16.mxu1 %vm1862_vm0, %v7352_v16 }
 0x25b   : > { %vm5627_vm8 = vcmp.lt.s32.totalorder %v5626_v59, %v5381_v37  ;;  %vm5705_vm11 = vcmp.lt.s32.totalorder %v5704_v23, %v5383_v35  ;;  %v5382_v11 = vor.u32 %v5094_v0, %v10182_v20  ;;  %v4520_v2 = vxor.u32 2147483647, %v3656_v19 }
 0x25c   : > { %v4791_v48 = vsel %vm4215_vm7, %v4503_v17, %v3639_v26  ;;  %v5628_v1 = vsel %vm5627_vm8, %v5626_v59, %v5381_v37  ;;  %v4806_v36 = vsel %vm4230_vm9, %v4518_v38, %v3654_v3  ;;  %v5706_v63 = vsel %vm5705_vm11, %v5704_v23, %v5383_v35  ;;  %v10189_v37 = vld [vmem:[#allocation38_spill] sm:$0xff] }
 0x25d   : > { %v5096_v15 = vand.u32 4294967168, %v4791_v48  ;;  %vm5666_vm12 = vcmp.lt.s32.totalorder %v5665_v30, %v5382_v11  ;;  %v5111_v33 = vand.u32 4294967168, %v4806_v36  ;;  %v3655_v51 = vsub.f32 %v10181_v8, %v8751_v5  ;;  %v7358_v17 = vld [vmem:[%s7469_s20 + $0x8b4] ss:$8 sps:$4 sm:$0xff]  }
 0x25e   : > { %v3657_v49 = vsub.f32 %v10181_v8, %v10183_v29  ;;  %v4808_v54 = vsel %vm4232_vm10, %v4520_v2, %v3656_v19  ;;  %v5667_v61 = vsel %vm5666_vm12, %v5665_v30, %v5382_v11  ;;  %v3672_v41 = vsub.f32 %v10185_v32, %v10184_v25  ;;  %v10190_v11 = vld [vmem:[#allocation19_spill] sm:$0xff]  ;;  %v10192_v29 = vld [vmem:[#allocation33_spill] sm:$0xff] }
 0x25f   : > { %v5384_v14 = vor.u32 %v5096_v15, %v10182_v20  ;;  %v5399_v59 = vor.u32 %v5111_v33, %v10186_v60  ;;  %v5113_v57 = vand.u32 4294967168, %v4808_v54  ;;  %vm4231_vm13 = vcmp.lt.s32.totalorder %v3655_v51, 0 }
 0x260   : > { %v4519_v46 = vxor.u32 2147483647, %v3655_v51  ;;  %vm4233_vm15 = vcmp.lt.s32.totalorder %v3657_v49, 0  ;;  %v4521_v5 = vxor.u32 2147483647, %v3657_v49  ;;  %vm4248_vm1 = vcmp.lt.s32.totalorder %v3672_v41, 0  ;;  %3242 = vmatpush1.bf16.xpose.msra.mxu0 %v7354_v24 }
 0x261   : > { %vm5744_vm14 = vcmp.lt.s32.totalorder %v5743_v28, %v5384_v14  ;;  %vm5629_vm2 = vcmp.lt.s32.totalorder %v5628_v1, %v5399_v59  ;;  %v5401_v6 = vor.u32 %v5113_v57, %v10186_v60  ;;  %6897 = vmatpush1.bf16.xpose.msra.mxu1 %v7354_v24  ;;  %v4536_v44 = vxor.u32 2147483647, %v3672_v41  ;;  %6855 = vmatprep.subr.msk.bf16.mxu0 %vm1862_vm0, %v7355_v62 }
 0x262   : > { %v4807_v53 = vsel %vm4231_vm13, %v4519_v46, %v3655_v51  ;;  %v5745_v52 = vsel %vm5744_vm14, %v5743_v28, %v5384_v14  ;;  %v4809_v47 = vsel %vm4233_vm15, %v4521_v5, %v3657_v49  ;;  %v5630_v23 = vsel %vm5629_vm2, %v5628_v1, %v5399_v59  ;;  %6882 = vmatprep.subr.msk.bf16.mxu1 %vm1862_vm0, %v7355_v62  ;;  %v7357_v28 = vld [vmem:[%s7469_s20 + $0x8a0] ss:$8 sps:$4 sm:$0xff]   ;;  %v10191_v51 = vld [vmem:[#allocation39_spill] sm:$0xff] }
 0x263   : > { %v5112_v34 = vand.u32 4294967168, %v4807_v53  ;;  %vm5707_vm3 = vcmp.lt.s32.totalorder %v5706_v63, %v5401_v6  ;;  %v5114_v16 = vand.u32 4294967168, %v4809_v47  ;;  %v3674_v58 = vsub.f32 %v10185_v32, %v10187_v56  ;;  %v10193_v14 = vld [vmem:[#allocation40_spill] sm:$0xff]  ;;  %v7360_v5 = vld [vmem:[%s7469_s20 + $0x8b0] ss:$8 sps:$4 sm:$0xff]  }
 0x264   : > { %v3673_v30 = vsub.f32 %v10185_v32, %v10188_v4  ;;  %v4824_v26 = vsel %vm4248_vm1, %v4536_v44, %v3672_v41  ;;  %v5708_v3 = vsel %vm5707_vm3, %v5706_v63, %v5401_v6  ;;  %v3675_v12 = vsub.f32 %v10185_v32, %v10189_v37 }
 0x265   : > { %v5400_v22 = vor.u32 %v5112_v34, %v10186_v60  ;;  %v5402_v19 = vor.u32 %v5114_v16, %v10186_v60  ;;  %v5129_v35 = vand.u32 4294967168, %v4824_v26  ;;  %vm4250_vm4 = vcmp.lt.s32.totalorder %v3674_v58, 0 }
 0x266   : > { %v4538_v0 = vxor.u32 2147483647, %v3674_v58  ;;  %vm4249_vm6 = vcmp.lt.s32.totalorder %v3673_v30, 0  ;;  %v4537_v38 = vxor.u32 2147483647, %v3673_v30  ;;  %vm4251_vm7 = vcmp.lt.s32.totalorder %v3675_v12, 0 }
 0x267   : > { %vm5668_vm5 = vcmp.lt.s32.totalorder %v5667_v61, %v5400_v22  ;;  %vm5746_vm8 = vcmp.lt.s32.totalorder %v5745_v52, %v5402_v19  ;;  %v5417_v48 = vor.u32 %v5129_v35, %v10190_v11  ;;  %v4539_v63 = vxor.u32 2147483647, %v3675_v12 }
 0x268   : > { %v4826_v1 = vsel %vm4250_vm4, %v4538_v0, %v3674_v58  ;;  %v5669_v15 = vsel %vm5668_vm5, %v5667_v61, %v5400_v22  ;;  %v4825_v2 = vsel %vm4249_vm6, %v4537_v38, %v3673_v30  ;;  %v5747_v24 = vsel %vm5746_vm8, %v5745_v52, %v5402_v19  ;;  %3244 = vmatpush1.bf16.xpose.msra.mxu0 %v7357_v28  ;;  %v2805_v25 = vpop.f32.mrb[64].mxu0  ;;  %v7361_v30 = vld [vmem:[%s7469_s20 + $0x8c4] ss:$8 sps:$4 sm:$0xff]   ;;  %v10195_v0 = vld [vmem:[#allocation2_spill] sm:$0xff] }
 0x269   : > { %v5131_v36 = vand.u32 4294967168, %v4826_v1  ;;  %vm5631_vm9 = vcmp.lt.s32.totalorder %v5630_v23, %v5417_v48  ;;  %v5130_v33 = vand.u32 4294967168, %v4825_v2  ;;  %v3690_v49 = vsub.f32 %v10192_v29, %v10191_v51  ;;  %6898 = vmatpush1.bf16.xpose.msra.mxu1 %v7357_v28  ;;  %6856 = vmatprep.subr.msk.bf16.mxu0 %vm1862_vm0, %v7358_v17  ;;  %v9002_v41 = vpop.f32.mrb[64].mxu1  ;;  %v2807_v46 = vpop.f32.mrb[65].mxu0  ;;  %v10194_v19 = vld [vmem:[#allocation41_spill] sm:$0xff]  ;;  %v10196_v38 = vld [vmem:[#allocation20_spill] sm:$0xff] }
 0x26a   : > { %v3692_v54 = vsub.f32 %v10192_v29, %v10193_v14  ;;  %v4827_v62 = vsel %vm4251_vm7, %v4539_v63, %v3675_v12  ;;  %v5632_v59 = vsel %vm5631_vm9, %v5630_v23, %v5417_v48  ;;  %v3691_v57 = vsub.f32 %v10192_v29, %v8797_v13  ;;  %6883 = vmatprep.subr.msk.bf16.mxu1 %vm1862_vm0, %v7358_v17  ;;  %v9010_v6 = vpop.f32.mrb[65].mxu1  ;;  %v2809_v47 = vpop.f32.mrb[66].mxu0 }
 0x26b   : > { %v5419_v61 = vor.u32 %v5131_v36, %v10190_v11  ;;  %v5418_v53 = vor.u32 %v5130_v33, %v10190_v11  ;;  %v5132_v52 = vand.u32 4294967168, %v4827_v62  ;;  %vm4266_vm10 = vcmp.lt.s32.totalorder %v3690_v49, 0  ;;  %v9013_v44 = vpop.f32.mrb[66].mxu1  ;;  %v9015_v13 = vpop.f32.mrb[67].mxu0 }
 0x26c   : > { %v4554_v34 = vxor.u32 2147483647, %v3690_v49  ;;  %vm4268_vm12 = vcmp.lt.s32.totalorder %v3692_v54, 0  ;;  %v4556_v23 = vxor.u32 2147483647, %v3692_v54  ;;  %vm4267_vm13 = vcmp.lt.s32.totalorder %v3691_v57, 0 }
 0x26d   : > { %vm5709_vm11 = vcmp.lt.s32.totalorder %v5708_v3, %v5419_v61  ;;  %v9017_v16 = vpop.f32.mrb[67].mxu1  ;;  %vm5670_vm14 = vcmp.lt.s32.totalorder %v5669_v15, %v5418_v53  ;;  %v5420_v56 = vor.u32 %v5132_v52, %v10190_v11  ;;  %v4555_v37 = vxor.u32 2147483647, %v3691_v57 }
 0x26e   : > { %v4842_v58 = vsel %vm4266_vm10, %v4554_v34, %v3690_v49  ;;  %v5710_v4 = vsel %vm5709_vm11, %v5708_v3, %v5419_v61  ;;  %v4844_v26 = vsel %vm4268_vm12, %v4556_v23, %v3692_v54  ;;  %v5671_v12 = vsel %vm5670_vm14, %v5669_v15, %v5418_v53  ;;  %v7363_v23 = vld [vmem:[%s7469_s20 + $0x8c0] ss:$8 sps:$4 sm:$0xff]  }
 0x26f   : > { %v5147_v22 = vand.u32 4294967168, %v4842_v58  ;;  %vm5748_vm15 = vcmp.lt.s32.totalorder %v5747_v24, %v5420_v56  ;;  %v5149_v28 = vand.u32 4294967168, %v4844_v26  ;;  %v3693_v35 = vsub.f32 %v10192_v29, %v10194_v19 }
 0x270   : > { %v3424_v17 = vsub.f32 %v10195_v0, %v2805_v25  ;;  %v4843_v1 = vsel %vm4267_vm13, %v4555_v37, %v3691_v57  ;;  %v5749_v36 = vsel %vm5748_vm15, %v5747_v24, %v5420_v56  ;;  %v3425_v2 = vsub.f32 %v10195_v0, %v2807_v46  ;;  %3246 = vmatpush1.bf16.xpose.msra.mxu0 %v7360_v5  ;;  %v9028_v33 = vpop.f32.mrb[68].mxu0 }
 0x271   : > { %v5435_v48 = vor.u32 %v5147_v22, %v10196_v38  ;;  %v5437_v3 = vor.u32 %v5149_v28, %v10196_v38  ;;  %v5148_v63 = vand.u32 4294967168, %v4843_v1  ;;  %vm4269_vm1 = vcmp.lt.s32.totalorder %v3693_v35, 0  ;;  %6899 = vmatpush1.bf16.xpose.msra.mxu1 %v7360_v5  ;;  %v9030_v51 = vpop.f32.mrb[68].mxu1  ;;  %6857 = vmatprep.subr.msk.bf16.mxu0 %vm1862_vm0, %v7361_v30  ;;  %v9033_v24 = vpop.f32.mrb[69].mxu0  ;;  %v7364_v22 = vld [vmem:[%s7469_s20 + $0x8d4] ss:$8 sps:$4 sm:$0xff]  }
 0x272   : > { %v4557_v15 = vxor.u32 2147483647, %v3693_v35  ;;  %vm4000_vm3 = vcmp.lt.s32.totalorder %v3424_v17, 0  ;;  %v4288_v49 = vxor.u32 2147483647, %v3424_v17  ;;  %vm4001_vm4 = vcmp.lt.s32.totalorder %v3425_v2, 0  ;;  %6884 = vmatprep.subr.msk.bf16.mxu1 %vm1862_vm0, %v7361_v30 }
 0x273   : > { %vm5633_vm2 = vcmp.lt.s32.totalorder %v5632_v59, %v5435_v48  ;;  %v9035_v14 = vpop.f32.mrb[69].mxu1  ;;  %vm5711_vm5 = vcmp.lt.s32.totalorder %v5710_v4, %v5437_v3  ;;  %v5436_v25 = vor.u32 %v5148_v63, %v10196_v38  ;;  %v9040_v62 = vpop.f32.mrb[70].mxu0  ;;  %v4289_v30 = vxor.u32 2147483647, %v3425_v2  ;;  %v10197_v28 = vld [vmem:[#allocation7_spill] sm:$0xff] }
 0x274   : > { %v5634_v54 = vsel %vm5633_vm2, %v5632_v59, %v5435_v48  ;;  %v4845_v61 = vsel %vm4269_vm1, %v4557_v15, %v3693_v35  ;;  %v9042_v57 = vpop.f32.mrb[70].mxu1  ;;  %v5712_v5 = vsel %vm5711_vm5, %v5710_v4, %v5437_v3  ;;  %v4576_v52 = vsel %vm4000_vm3, %v4288_v49, %v3424_v17  ;;  %v9044_v34 = vpop.f32.mrb[71].mxu0  ;;  %v10198_v17 = vld [vmem:[#allocation3_spill] sm:$0xff] }
 0x275   : > { %v5635_v46 = vrot.slane %v5634_v54, 4  ;;  %v5150_v53 = vand.u32 4294967168, %v4845_v61  ;;  %v9047_v56 = vpop.f32.mrb[71].mxu1  ;;  %v5713_v59 = vrot.slane %v5712_v5, 4  ;;  %vm5672_vm6 = vcmp.lt.s32.totalorder %v5671_v12, %v5436_v25 }
 0x276   : > { %v4881_v58 = vand.u32 4294967168, %v4576_v52  ;;  %v5673_v26 = vsel %vm5672_vm6, %v5671_v12, %v5436_v25  ;;  %v3442_v19 = vsub.f32 %v10197_v28, %v2809_v47  ;;  %v4577_v63 = vsel %vm4001_vm4, %v4289_v30, %v3425_v2 }
 0x277   : > { %vm5636_vm7 = vcmp.lt.s32.totalorder %v5634_v54, %v5635_v46  ;;  %v5438_v37 = vor.u32 %v5150_v53, %v10196_v38  ;;  %vm5714_vm8 = vcmp.lt.s32.totalorder %v5712_v5, %v5713_v59  ;;  %v5674_v4 = vrot.slane %v5673_v26, 4 }
 0x278   : > { %v5637_v35 = vsel %vm5636_vm7, %v5634_v54, %v5635_v46  ;;  %v9053_v48 = vor.u32 %v4881_v58, %v10198_v17  ;;  %v5715_v3 = vsel %vm5714_vm8, %v5712_v5, %v5713_v59  ;;  %3248 = vmatpush1.bf16.xpose.msra.mxu0 %v7363_v23  ;;  %v4882_v12 = vand.u32 4294967168, %v4577_v63  ;;  %v9056_v25 = vpop.f32.mrb[72].mxu0  ;;  %v7366_v59 = vld [vmem:[%s7469_s20 + $0x8d0] ss:$8 sps:$4 sm:$0xff]   ;;  %v7367_v63 = vld [vmem:[%s7469_s20 + $0x8e4] ss:$8 sps:$4 sm:$0xff]  }
 0x279   : > { %v5638_v1 = vrot.slane %v5637_v35, 2  ;;  %vm5750_vm9 = vcmp.lt.s32.totalorder %v5749_v36, %v5438_v37  ;;  %v5716_v15 = vrot.slane %v5715_v3, 2  ;;  %vm5675_vm10 = vcmp.lt.s32.totalorder %v5673_v26, %v5674_v4  ;;  %6900 = vmatpush1.bf16.xpose.msra.mxu1 %v7363_v23  ;;  %v9058_v47 = vpop.f32.mrb[72].mxu1  ;;  %6858 = vmatprep.subr.msk.bf16.mxu0 %vm1862_vm0, %v7364_v22  ;;  %v9061_v46 = vpop.f32.mrb[73].mxu0 }
 0x27a   : > { %v5751_v49 = vsel %vm5750_vm9, %v5749_v36, %v5438_v37  ;;  %v5676_v54 = vsel %vm5675_vm10, %v5673_v26, %v5674_v4  ;;  %vm4018_vm12 = vcmp.lt.s32.totalorder %v3442_v19, 0  ;;  %v9063_v2 = vpop.f32.mrb[73].mxu1  ;;  %6885 = vmatprep.subr.msk.bf16.mxu1 %vm1862_vm0, %v7364_v22  ;;  %v9067_v53 = vor.u32 %v4882_v12, %v10198_v17  ;;  %v9069_v52 = vpop.f32.mrb[74].mxu0 }
 0x27b   : > { %vm5639_vm11 = vcmp.lt.s32.totalorder %v5637_v35, %v5638_v1  ;;  %v5752_v61 = vrot.slane %v5751_v49, 4  ;;  %vm5717_vm13 = vcmp.lt.s32.totalorder %v5715_v3, %v5716_v15  ;;  %v5677_v5 = vrot.slane %v5676_v54, 2  ;;  %v9071_v23 = vpop.f32.mrb[74].mxu1  ;;  %v9074_v37 = vpop.f32.mrb[75].mxu0 }
 0x27c   : > { %v5640_v36 = vsel %vm5639_vm11, %v5637_v35, %v5638_v1  ;;  %v5718_v30 = vsel %vm5717_vm13, %v5715_v3, %v5716_v15  ;;  %v4306_v26 = vxor.u32 2147483647, %v3442_v19  ;;  %v9076_v4 = vpop.f32.mrb[75].mxu1  ;;  %v3443_v1 = vsub.f32 %v10197_v28, %v9015_v13  ;;  %v10199_v13 = vld [vmem:[#allocation4_spill] sm:$0xff] }
 0x27d   : > { %v5641_v58 = vrot.slane %v5640_v36, 1  ;;  %vm5753_vm14 = vcmp.lt.s32.totalorder %v5751_v49, %v5752_v61  ;;  %v5719_v22 = vrot.slane %v5718_v30, 1  ;;  %vm5678_vm15 = vcmp.lt.s32.totalorder %v5676_v54, %v5677_v5 }
 0x27e   : > { %v5754_v35 = vsel %vm5753_vm14, %v5751_v49, %v5752_v61  ;;  %v5679_v12 = vsel %vm5678_vm15, %v5676_v54, %v5677_v5  ;;  %v4594_v29 = vsel %vm4018_vm12, %v4306_v26, %v3442_v19  ;;  %vm4019_vm4 = vcmp.lt.s32.totalorder %v3443_v1, 0 }
 0x27f   : > { %vm5642_vm1 = vcmp.lt.s32.totalorder %v5640_v36, %v5641_v58  ;;  %v5755_v38 = vrot.slane %v5754_v35, 2  ;;  %vm5720_vm2 = vcmp.lt.s32.totalorder %v5718_v30, %v5719_v22  ;;  %v5680_v3 = vrot.slane %v5679_v12, 1 }
 0x280   : > { %v5643_v11 = vsel %vm5642_vm1, %v5640_v36, %v5641_v58  ;;  %v4899_v15 = vand.u32 4294967168, %v4594_v29  ;;  %v5721_v60 = vsel %vm5720_vm2, %v5718_v30, %v5719_v22  ;;  %3250 = vmatpush1.bf16.xpose.msra.mxu0 %v7366_v59  ;;  %v9083_v54 = vpop.f32.mrb[76].mxu0  ;;  %v4307_v19 = vxor.u32 2147483647, %v3443_v1  ;;  %v10200_v36 = vld [vmem:[#allocation8_spill] sm:$0xff] }
 0x281   : > { %v6155_v32 = vand.u32 127, %v5643_v11  ;;  %vm5756_vm3 = vcmp.lt.s32.totalorder %v5754_v35, %v5755_v38  ;;  %v6157_v20 = vand.u32 127, %v5721_v60  ;;  %vm5681_vm5 = vcmp.lt.s32.totalorder %v5679_v12, %v5680_v3  ;;  %6901 = vmatpush1.bf16.xpose.msra.mxu1 %v7366_v59  ;;  %v9085_v5 = vpop.f32.mrb[76].mxu1  ;;  %6859 = vmatprep.subr.msk.bf16.mxu0 %vm1862_vm0, %v7367_v63  ;;  %v9090_v60 = vpop.f32.mrb[77].mxu0 }
 0x282   : > { %v5757_v49 = vsel %vm5756_vm3, %v5754_v35, %v5755_v38  ;;  %v5187_v61 = vor.u32 %v4899_v15, %v10199_v13  ;;  %v5682_v29 = vsel %vm5681_vm5, %v5679_v12, %v5680_v3  ;;  %v3460_v58 = vsub.f32 %v10200_v36, %v9028_v33  ;;  %v9092_v30 = vpop.f32.mrb[77].mxu1  ;;  %6886 = vmatprep.subr.msk.bf16.mxu1 %vm1862_vm0, %v7367_v63  ;;  %v9101_v22 = vpop.f32.mrb[78].mxu0  ;;  %v7369_v35 = vld [vmem:[%s7469_s20 + $0x8e0] ss:$8 sps:$4 sm:$0xff]  }
 0x283   : > { %v5758_v11 = vrot.slane %v5757_v49, 1  ;;  %v6156_v38 = vand.u32 127, %v5682_v29  ;;  %v3426_v59 = vsub.f32 %v10195_v0, %v9002_v41  ;;  %v3461_v26 = vsub.f32 %v10200_v36, %v9033_v24  ;;  %v9103_v33 = vpop.f32.mrb[78].mxu1  ;;  %v9107_v3 = vpop.f32.mrb[79].mxu0 }
 0x284   : > { %vm5761_vm6 = vcmp.lt.s32.totalorder %v9053_v48, %v5187_v61  ;;  %v4595_v63 = vsel %vm4019_vm4, %v4307_v19, %v3443_v1  ;;  %vm4036_vm8 = vcmp.lt.s32.totalorder %v3460_v58, 0  ;;  %v4324_v12 = vxor.u32 2147483647, %v3460_v58  ;;  %v9109_v15 = vpop.f32.mrb[79].mxu1 }
 0x285   : > { %vm5759_vm7 = vcmp.lt.s32.totalorder %v5757_v49, %v5758_v11  ;;  %v6171_v41 = vcombine.low %v6155_v32, %v6156_v38  ;;  %v4900_v8 = vand.u32 4294967168, %v4595_v63  ;;  %v5762_v24 = vsel %vm5761_vm6, %v9053_v48, %v5187_v61  ;;  %v10202_v61 = vld [vmem:[#allocation5_spill] sm:$0xff] }
 0x286   : > { %v5760_v29 = vsel %vm5759_vm7, %v5757_v49, %v5758_v11  ;;  %v4612_v9 = vsel %vm4036_vm8, %v4324_v12, %v3460_v58  ;;  %vm4002_vm9 = vcmp.lt.s32.totalorder %v3426_v59, 0  ;;  %v4290_v42 = vxor.u32 2147483647, %v3426_v59  ;;  %v10203_v38 = vld [vmem:[#allocation21_spill] sm:$0xff] }
 0x287   : > { %v6158_v43 = vand.u32 127, %v5760_v29  ;;  %v6193_v55 = vrot.slane %v6171_v41, %v10201_v40  ;;  %v5188_v1 = vor.u32 %v4900_v8, %v10199_v13  ;;  %v4917_v19 = vand.u32 4294967168, %v4612_v9 }
 0x288   : > { %vm4037_vm10 = vcmp.lt.s32.totalorder %v3461_v26, 0  ;;  %v4578_v32 = vsel %vm4002_vm9, %v4290_v42, %v3426_v59  ;;  %v4325_v49 = vxor.u32 2147483647, %v3461_v26  ;;  %v3427_v48 = vsub.f32 %v10195_v0, %v9010_v6  ;;  %3252 = vmatpush1.bf16.xpose.msra.mxu0 %v7369_v35  ;;  %v9126_v9 = vpop.f32.mrb[80].mxu0 }
 0x289   : > { %v6172_v21 = vcombine.low %v6157_v20, %v6158_v43  ;;  %vm5800_vm11 = vcmp.lt.s32.totalorder %v9067_v53, %v5188_v1  ;;  %v5205_v11 = vor.u32 %v4917_v19, %v10202_v61  ;;  %v4883_v58 = vand.u32 4294967168, %v4578_v32  ;;  %6902 = vmatpush1.bf16.xpose.msra.mxu1 %v7369_v35  ;;  %v9128_v43 = vpop.f32.mrb[80].mxu1  ;;  %6860 = vmatprep.subr.msk.bf16.mxu0 %vm1862_vm0, %v7370_v27  ;;  %v9133_v6 = vpop.f32.mrb[81].mxu0 }
 0x28a   : > { %v3478_v63 = vsub.f32 %v10203_v38, %v9040_v62  ;;  %v4613_v8 = vsel %vm4037_vm10, %v4325_v49, %v3461_v26  ;;  %v5801_v20 = vsel %vm5800_vm11, %v9067_v53, %v5188_v1  ;;  %vm4003_vm12 = vcmp.lt.s32.totalorder %v3427_v48, 0  ;;  %v9135_v59 = vpop.f32.mrb[81].mxu1  ;;  %6887 = vmatprep.subr.msk.bf16.mxu1 %vm1862_vm0, %v7370_v27  ;;  %v7372_v62 = vld [vmem:[%s7469_s20 + $0x8f0] ss:$8 sps:$4 sm:$0xff]   ;;  %v9143_v29 = vpop.f32.mrb[82].mxu0 }
 0x28b   : > { %v6200_v42 = vrot.slane %v6172_v21, %v10201_v40  ;;  %vm5763_vm13 = vcmp.lt.s32.totalorder %v5762_v24, %v5205_v11  ;;  %v9141_v35 = vor.u32 %v4883_v58, %v10198_v17  ;;  %v4918_v12 = vand.u32 4294967168, %v4613_v8  ;;  %v9145_v21 = vpop.f32.mrb[82].mxu1  ;;  %v9149_v19 = vpop.f32.mrb[83].mxu0 }
 0x28c   : > { %v4291_v41 = vxor.u32 2147483647, %v3427_v48  ;;  %vm4054_vm14 = vcmp.lt.s32.totalorder %v3478_v63, 0  ;;  %v4342_v26 = vxor.u32 2147483647, %v3478_v63  ;;  %v9147_v1 = vsel %vm5763_vm13, %v5762_v24, %v5205_v11  ;;  %v9151_v27 = vpop.f32.mrb[83].mxu1 }
 0x28d   : > { %v6202_v53 = vcombine.low %v6193_v55, %v6200_v42  ;;  %v5206_v32 = vor.u32 %v4918_v12, %v10202_v61  ;;  %v3444_v58 = vsub.f32 %v10197_v28, %v9013_v44  ;;  %v3479_v8 = vsub.f32 %v10203_v38, %v9044_v34  ;;  %v10204_v11 = vld [vmem:[#allocation35_spill] sm:$0xff] }
 0x28e   : > { %v4579_v49 = vsel %vm4003_vm12, %v4291_v41, %v3427_v48  ;;  %v4630_v0 = vsel %vm4054_vm14, %v4342_v26, %v3478_v63  ;;  %v3445_v24 = vsub.f32 %v10197_v28, %v9017_v16  ;;  %v10205_v34 = vrot.slane %v10204_v11, %v10201_v40  ;;  %v10206_v16 = vld [vmem:[#allocation6_spill] sm:$0xff] }
 0x28f   : > { %v6216_v55 = vrot.slane %v6202_v53, %v10201_v40  ;;  %v4884_v42 = vand.u32 4294967168, %v4579_v49  ;;  %vm5802_vm15 = vcmp.lt.s32.totalorder %v5801_v20, %v5206_v32  ;;  %v4935_v48 = vand.u32 4294967168, %v4630_v0 }
 0x290   : > { %vm4020_vm1 = vcmp.lt.s32.totalorder %v3444_v58, 0  ;;  %v4308_v44 = vxor.u32 2147483647, %v3444_v58  ;;  %vm4055_vm2 = vcmp.lt.s32.totalorder %v3479_v8, 0  ;;  %v4343_v63 = vxor.u32 2147483647, %v3479_v8  ;;  %3254 = vmatpush1.bf16.xpose.msra.mxu0 %v7372_v62 }
 0x291   : > { %v6217_v12 = vcombine.low %v10205_v34, %v6216_v55  ;;  %v5172_v41 = vor.u32 %v4884_v42, %v10198_v17  ;;  %v9172_v53 = vor.u32 %v4935_v48, %v10206_v16  ;;  %v9174_v49 = vsel %vm5802_vm15, %v5801_v20, %v5206_v32  ;;  %6903 = vmatpush1.bf16.xpose.msra.mxu1 %v7372_v62  ;;  %v9176_v0 = vpop.f32.mrb[84].mxu0  ;;  %v9178_v28 = vpop.f32.mrb[84].mxu1 }
 0x292   : > { %v4596_v26 = vsel %vm4020_vm1, %v4308_v44, %v3444_v58  ;;  %vm4021_vm3 = vcmp.lt.s32.totalorder %v3445_v24, 0  ;;  %v4631_v55 = vsel %vm4055_vm2, %v4343_v63, %v3479_v8  ;;  %v4309_v34 = vxor.u32 2147483647, %v3445_v24  ;;  %v9183_v40 = vpop.f32.mrb[85].mxu0  ;;  %v9185_v48 = vpop.f32.mrb[85].mxu1 }
 0x293   : > { %6282 = vst [vmem:[%s9165_s30] sm:$0xff] %v6217_v12  ;;  %v4901_v11 = vand.u32 4294967168, %v4596_v26  ;;  %v3462_v42 = vsub.f32 %v10200_v36, %v9030_v51  ;;  %vm5765_vm4 = vcmp.lt.s32.totalorder %v9147_v1, %v9172_v53  ;;  %v4936_v20 = vand.u32 4294967168, %v4631_v55  ;;  %v9193_v58 = vpop.f32.mrb[86].mxu0  ;;  %v9195_v8 = vpop.f32.mrb[86].mxu1 }
 0x294   : > { %v3463_v62 = vsub.f32 %v10200_v36, %v9035_v14  ;;  %v3480_v32 = vsub.f32 %v10203_v38, %v9042_v57  ;;  %v4597_v44 = vsel %vm4021_vm3, %v4309_v34, %v3445_v24  ;;  %v9199_v63 = vpop.f32.mrb[87].mxu0  ;;  %v9201_v26 = vpop.f32.mrb[87].mxu1 }
 0x295   : > { %v5189_v51 = vor.u32 %v4901_v11, %v10199_v13  ;;  %vm4038_vm5 = vcmp.lt.s32.totalorder %v3462_v42, 0  ;;  %v4326_v12 = vxor.u32 2147483647, %v3462_v42  ;;  %10207 = vst [vmem:[#allocation36_spill] sm:$0xff] %v9199_v63  ;;  %10208 = vst [vmem:[#allocation10_spill] sm:$0xff] %v9201_v26  ;;  %v5224_v55 = vor.u32 %v4936_v20, %v10206_v16 }
 0x296   : > { %v4902_v14 = vand.u32 4294967168, %v4597_v44  ;;  %vm4039_vm6 = vcmp.lt.s32.totalorder %v3463_v62, 0  ;;  %v4327_v36 = vxor.u32 2147483647, %v3463_v62  ;;  %vm4056_vm8 = vcmp.lt.s32.totalorder %v3480_v32, 0 }
 0x297   : > { %vm5839_vm7 = vcmp.lt.s32.totalorder %v9141_v35, %v5189_v51  ;;  %v4614_v57 = vsel %vm4038_vm5, %v4326_v12, %v3462_v42  ;;  %v4344_v17 = vxor.u32 2147483647, %v3480_v32  ;;  %vm5804_vm9 = vcmp.lt.s32.totalorder %v9174_v49, %v5224_v55  ;;  %v7406_v26 = vld [vmem:[%s9988_s1] ss:$8 sps:$4 sm:$0xff]   ;;  %v10209_v42 = vld [vmem:[#allocation22_spill] sm:$0xff] }
 0x298   : > { %v5190_v24 = vor.u32 %v4902_v14, %v10199_v13  ;;  %v4919_v11 = vand.u32 4294967168, %v4614_v57  ;;  %v5840_v34 = vsel %vm5839_vm7, %v9141_v35, %v5189_v51  ;;  %3256 = vmatmul.mubr.bf16.vlgmr.msra.gmra.mrb[128].mxu0 %v7406_v26  ;;  %v4615_v20 = vsel %vm4039_vm6, %v4327_v36, %v3463_v62  ;;  %v7407_v14 = vld [vmem:[%s9988_s1 + $0x40] ss:$8 sps:$4 sm:$0xff]   ;;  %v9219_v13 = vpop.f32.mrb[88].mxu0 }
 0x299   : > { %v4632_v44 = vsel %vm4056_vm8, %v4344_v17, %v3480_v32  ;;  %v3481_v63 = vsub.f32 %v10203_v38, %v9047_v56  ;;  %v3496_v12 = vsub.f32 %v10209_v42, %v9056_v25  ;;  %3296 = vmatmul.mubr.bf16.vlgmr.msra.gmra.mrb[128].mxu1 %v7407_v14  ;;  %v4920_v51 = vand.u32 4294967168, %v4615_v20  ;;  %v9221_v36 = vpop.f32.mrb[88].mxu1  ;;  %v7408_v56 = vld [vmem:[%s9988_s1 + $0x14] ss:$8 sps:$4 sm:$0xff]   ;;  %v9231_v32 = vpop.f32.mrb[89].mxu0 }
 0x29a   : > { %vm5878_vm10 = vcmp.lt.s32.totalorder %v5172_v41, %v5190_v24  ;;  %v5207_v35 = vor.u32 %v4919_v11, %v10202_v61  ;;  %v4937_v57 = vand.u32 4294967168, %v4632_v44  ;;  %6862 = vmatprep.mubr.msk.bf16.mxu0 %vm1862_vm0, %v7408_v56  ;;  %v7409_v17 = vld [vmem:[%s9988_s1 + $0x54] ss:$8 sps:$4 sm:$0xff]   ;;  %v9233_v26 = vpop.f32.mrb[89].mxu1  ;;  %v9237_v14 = vpop.f32.mrb[90].mxu0 }
 0x29b   : > { %6866 = vmatprep.mubr.msk.bf16.mxu1 %vm1862_vm0, %v7409_v17  ;;  %v5879_v25 = vsel %vm5878_vm10, %v5172_v41, %v5190_v24  ;;  %vm4057_vm11 = vcmp.lt.s32.totalorder %v3481_v63, 0  ;;  %v4345_v62 = vxor.u32 2147483647, %v3481_v63  ;;  %vm4072_vm12 = vcmp.lt.s32.totalorder %v3496_v12, 0  ;;  %10210 = vst [vmem:[#allocation24_spill] sm:$0xff] %v9233_v26  ;;  %v9239_v56 = vpop.f32.mrb[90].mxu1 }
 0x29c   : > { %vm5841_vm13 = vcmp.lt.s32.totalorder %v5840_v34, %v5207_v35  ;;  %v5208_v11 = vor.u32 %v4920_v51, %v10202_v61  ;;  %v5225_v20 = vor.u32 %v4937_v57, %v10206_v16  ;;  %v4360_v44 = vxor.u32 2147483647, %v3496_v12  ;;  %10211 = vst [vmem:[#allocation37_spill] sm:$0xff] %v9239_v56  ;;  %v9248_v26 = vpop.f32.mrb[91].mxu0  ;;  %v9250_v51 = vpop.f32.mrb[91].mxu1 }
 0x29d   : > { %v5842_v38 = vsel %vm5841_vm13, %v5840_v34, %v5207_v35  ;;  %v4633_v17 = vsel %vm4057_vm11, %v4345_v62, %v3481_v63  ;;  %v5766_v41 = vsel %vm5765_vm4, %v9147_v1, %v9172_v53  ;;  %v3498_v24 = vsub.f32 %v10209_v42, %v9058_v47  ;;  %v7410_v53 = vld [vmem:[%s9988_s1 + $0x10] ss:$8 sps:$4 sm:$0xff]  }
 0x29e   : > { %vm5880_vm14 = vcmp.lt.s32.totalorder %v5879_v25, %v5208_v11  ;;  %vm5843_vm15 = vcmp.lt.s32.totalorder %v5842_v38, %v5225_v20  ;;  %v4938_v57 = vand.u32 4294967168, %v4633_v17  ;;  %v4648_v61 = vsel %vm4072_vm12, %v4360_v44, %v3496_v12  ;;  %v10212_v12 = vld [vmem:[#allocation9_spill] sm:$0xff] }
 0x29f   : > { %v5881_v34 = vsel %vm5880_vm14, %v5879_v25, %v5208_v11  ;;  %v4953_v63 = vand.u32 4294967168, %v4648_v61  ;;  %vm4074_vm1 = vcmp.lt.s32.totalorder %v3498_v24, 0  ;;  %v4362_v35 = vxor.u32 2147483647, %v3498_v24 }
 0x2a0   : > { %v5226_v62 = vor.u32 %v4938_v57, %v10206_v16  ;;  %v5844_v56 = vsel %vm5843_vm15, %v5842_v38, %v5225_v20  ;;  %v3497_v1 = vsub.f32 %v10209_v42, %v9061_v46  ;;  %v5805_v47 = vsel %vm5804_vm9, %v9174_v49, %v5224_v55  ;;  %3266 = vmatmul.mubr.bf16.gmra.mrb[132].mxu0 %v7410_v53  ;;  %v10213_v38 = vld [vmem:[#allocation23_spill] sm:$0xff]  ;;  %v9270_v44 = vpop.f32.mrb[92].mxu0 }
 0x2a1   : > { %v5241_v25 = vor.u32 %v4953_v63, %v10212_v12  ;;  %v4650_v61 = vsel %vm4074_vm1, %v4362_v35, %v3498_v24  ;;  %v3499_v11 = vsub.f32 %v10209_v42, %v9063_v2  ;;  %v3514_v20 = vsub.f32 %v10213_v38, %v9069_v52  ;;  %v7411_v46 = vld [vmem:[%s9988_s1 + $0x50] ss:$8 sps:$4 sm:$0xff]   ;;  %10214 = vst [vmem:[#allocation38_spill] sm:$0xff] %v9270_v44  ;;  %v9272_v17 = vpop.f32.mrb[92].mxu1  ;;  %v7412_v2 = vld [vmem:[%s9988_s1 + $0x24] ss:$8 sps:$4 sm:$0xff]  }
 0x2a2   : > { %3306 = vmatmul.mubr.bf16.gmra.mrb[132].mxu1 %v7411_v46  ;;  %vm5882_vm2 = vcmp.lt.s32.totalorder %v5881_v34, %v5226_v62  ;;  %v4955_v49 = vand.u32 4294967168, %v4650_v61  ;;  %vm4073_vm3 = vcmp.lt.s32.totalorder %v3497_v1, 0  ;;  %v4361_v55 = vxor.u32 2147483647, %v3497_v1  ;;  %10215 = vst [vmem:[#allocation39_spill] sm:$0xff] %v9272_v17  ;;  %6863 = vmatprep.mubr.msk.bf16.mxu0 %vm1862_vm0, %v7412_v2  ;;  %v9282_v63 = vpop.f32.mrb[93].mxu0 }
 0x2a3   : > { %v7413_v52 = vld [vmem:[%s9988_s1 + $0x64] ss:$8 sps:$4 sm:$0xff]   ;;  %vm5767_vm4 = vcmp.lt.s32.totalorder %v5766_v41, %v5241_v25  ;;  %vm4075_vm5 = vcmp.lt.s32.totalorder %v3499_v11, 0  ;;  %v4363_v24 = vxor.u32 2147483647, %v3499_v11  ;;  %v5883_v57 = vsel %vm5882_vm2, %v5881_v34, %v5226_v62  ;;  %v9284_v35 = vpop.f32.mrb[93].mxu1 }
 0x2a4   : > { %6867 = vmatprep.mubr.msk.bf16.mxu1 %vm1862_vm0, %v7413_v52  ;;  %10216 = vst [vmem:[#allocation40_spill] sm:$0xff] %v9284_v35  ;;  %v5243_v53 = vor.u32 %v4955_v49, %v10212_v12  ;;  %v4649_v61 = vsel %vm4073_vm3, %v4361_v55, %v3497_v1  ;;  %vm4090_vm6 = vcmp.lt.s32.totalorder %v3514_v20, 0  ;;  %v4378_v46 = vxor.u32 2147483647, %v3514_v20  ;;  %v9287_v2 = vpop.f32.mrb[94].mxu0  ;;  %v9289_v42 = vpop.f32.mrb[94].mxu1 }
 0x2a5   : > { %10217 = vst [vmem:[#allocation41_spill] sm:$0xff] %v9287_v2  ;;  %v4954_v16 = vand.u32 4294967168, %v4649_v61  ;;  %v4651_v17 = vsel %vm4075_vm5, %v4363_v24, %v3499_v11  ;;  %v5768_v52 = vsel %vm5767_vm4, %v5766_v41, %v5241_v25  ;;  %v3516_v44 = vsub.f32 %v10213_v38, %v9071_v23  ;;  %v9293_v34 = vpop.f32.mrb[95].mxu0  ;;  %v9295_v62 = vpop.f32.mrb[95].mxu1  ;;  %v7414_v11 = vld [vmem:[%s9988_s1 + $0x20] ss:$8 sps:$4 sm:$0xff]  }
 0x2a6   : > { %vm5845_vm7 = vcmp.lt.s32.totalorder %v5844_v56, %v5243_v53  ;;  %v4956_v35 = vand.u32 4294967168, %v4651_v17  ;;  %v4666_v49 = vsel %vm4090_vm6, %v4378_v46, %v3514_v20  ;;  %v3515_v1 = vsub.f32 %v10213_v38, %v9074_v37 }
 0x2a7   : > { %v5242_v55 = vor.u32 %v4954_v16, %v10212_v12  ;;  %v4971_v2 = vand.u32 4294967168, %v4666_v49  ;;  %vm4092_vm8 = vcmp.lt.s32.totalorder %v3516_v44, 0  ;;  %v4380_v61 = vxor.u32 2147483647, %v3516_v44  ;;  %v7415_v16 = vld [vmem:[%s9988_s1 + $0x60] ss:$8 sps:$4 sm:$0xff]  }
 0x2a8   : > { %v5244_v41 = vor.u32 %v4956_v35, %v10212_v12  ;;  %v5846_v25 = vsel %vm5845_vm7, %v5844_v56, %v5243_v53  ;;  %vm4091_vm9 = vcmp.lt.s32.totalorder %v3515_v1, 0  ;;  %v4379_v23 = vxor.u32 2147483647, %v3515_v1  ;;  %3276 = vmatmul.mubr.bf16.gmra.mrb[136].mxu0 %v7414_v11  ;;  %v7416_v53 = vld [vmem:[%s9988_s1 + $0x34] ss:$8 sps:$4 sm:$0xff]  }
 0x2a9   : > { %vm5806_vm10 = vcmp.lt.s32.totalorder %v5805_v47, %v5242_v55  ;;  %v5259_v20 = vor.u32 %v4971_v2, %v10169_v7  ;;  %v4668_v17 = vsel %vm4092_vm8, %v4380_v61, %v3516_v44  ;;  %v3517_v37 = vsub.f32 %v10213_v38, %v9076_v4  ;;  %6864 = vmatprep.mubr.msk.bf16.mxu0 %vm1862_vm0, %v7416_v53  ;;  %v7417_v44 = vld [vmem:[%s9988_s1 + $0x74] ss:$8 sps:$4 sm:$0xff]  }
 0x2aa   : > { %3316 = vmatmul.mubr.bf16.gmra.mrb[136].mxu1 %v7415_v16  ;;  %vm5884_vm11 = vcmp.lt.s32.totalorder %v5883_v57, %v5244_v41  ;;  %v4973_v56 = vand.u32 4294967168, %v4668_v17  ;;  %v4667_v24 = vsel %vm4091_vm9, %v4379_v23, %v3515_v1  ;;  %v5807_v35 = vsel %vm5806_vm10, %v5805_v47, %v5242_v55 }
 0x2ab   : > { %6868 = vmatprep.mubr.msk.bf16.mxu1 %vm1862_vm0, %v7417_v44  ;;  %vm5769_vm12 = vcmp.lt.s32.totalorder %v5768_v52, %v5259_v20  ;;  %v4972_v4 = vand.u32 4294967168, %v4667_v24  ;;  %vm4093_vm13 = vcmp.lt.s32.totalorder %v3517_v37, 0  ;;  %v4381_v46 = vxor.u32 2147483647, %v3517_v37 }
 0x2ac   : > { %v5261_v2 = vor.u32 %v4973_v56, %v10169_v7  ;;  %v5885_v49 = vsel %vm5884_vm11, %v5883_v57, %v5244_v41  ;;  %v3532_v47 = vsub.f32 %v10170_v45, %v9083_v54  ;;  %v5770_v1 = vsel %vm5769_vm12, %v5768_v52, %v5259_v20 }
 0x2ad   : > { %v5260_v55 = vor.u32 %v4972_v4, %v10169_v7  ;;  %v4669_v61 = vsel %vm4093_vm13, %v4381_v46, %v3517_v37  ;;  %v3534_v23 = vsub.f32 %v10170_v45, %v9085_v5  ;;  %v3533_v11 = vsub.f32 %v10170_v45, %v9090_v60  ;;  %v7418_v5 = vld [vmem:[%s9988_s1 + $0x30] ss:$8 sps:$4 sm:$0xff]  }
 0x2ae   : > { %vm5847_vm0 = vcmp.lt.s32.totalorder %v5846_v25, %v5261_v2  ;;  %v4974_v17 = vand.u32 4294967168, %v4669_v61  ;;  %vm4108_vm14 = vcmp.lt.s32.totalorder %v3532_v47, 0  ;;  %v4396_v16 = vxor.u32 2147483647, %v3532_v47 }
 0x2af   : > { %vm5808_vm15 = vcmp.lt.s32.totalorder %v5807_v35, %v5260_v55  ;;  %vm4110_vm1 = vcmp.lt.s32.totalorder %v3534_v23, 0  ;;  %v4398_v57 = vxor.u32 2147483647, %v3534_v23  ;;  %v5848_v41 = vsel %vm5847_vm0, %v5846_v25, %v5261_v2  ;;  %v7419_v25 = vld [vmem:[%s9988_s1 + $0x70] ss:$8 sps:$4 sm:$0xff]  }
 0x2b0   : > { %v5262_v54 = vor.u32 %v4974_v17, %v10169_v7  ;;  %v4684_v52 = vsel %vm4108_vm14, %v4396_v16, %v3532_v47  ;;  %vm4109_vm2 = vcmp.lt.s32.totalorder %v3533_v11, 0  ;;  %v4397_v20 = vxor.u32 2147483647, %v3533_v11  ;;  %3286 = vmatmul.mubr.bf16.gmra.mrb[140].mxu0 %v7418_v5 }
 0x2b1   : > { %v4989_v37 = vand.u32 4294967168, %v4684_v52  ;;  %v4686_v60 = vsel %vm4110_vm1, %v4398_v57, %v3534_v23  ;;  %v5809_v56 = vsel %vm5808_vm15, %v5807_v35, %v5260_v55  ;;  %v3535_v24 = vsub.f32 %v10170_v45, %v9092_v30 }
 0x2b2   : > { %3326 = vmatmul.mubr.bf16.gmra.mrb[140].mxu1 %v7419_v25  ;;  %vm5886_vm3 = vcmp.lt.s32.totalorder %v5885_v49, %v5262_v54  ;;  %v4991_v53 = vand.u32 4294967168, %v4686_v60  ;;  %v4685_v44 = vsel %vm4109_vm2, %v4397_v20, %v3533_v11  ;;  %v3550_v4 = vsub.f32 %v10178_v18, %v9101_v22 }
 0x2b3   : > { %v5277_v46 = vor.u32 %v4989_v37, %v10179_v10  ;;  %v4990_v2 = vand.u32 4294967168, %v4685_v44  ;;  %vm4111_vm4 = vcmp.lt.s32.totalorder %v3535_v24, 0  ;;  %v4399_v47 = vxor.u32 2147483647, %v3535_v24 }
 0x2b4   : > { %v5279_v35 = vor.u32 %v4991_v53, %v10179_v10  ;;  %v5887_v55 = vsel %vm5886_vm3, %v5885_v49, %v5262_v54  ;;  %vm4126_vm5 = vcmp.lt.s32.totalorder %v3550_v4, 0  ;;  %v4414_v30 = vxor.u32 2147483647, %v3550_v4 }
 0x2b5   : > { %vm5771_vm6 = vcmp.lt.s32.totalorder %v5770_v1, %v5277_v46  ;;  %v5278_v61 = vor.u32 %v4990_v2, %v10179_v10  ;;  %v4687_v23 = vsel %vm4111_vm4, %v4399_v47, %v3535_v24  ;;  %v3552_v11 = vsub.f32 %v10178_v18, %v9103_v33 }
 0x2b6   : > { %vm5849_vm7 = vcmp.lt.s32.totalorder %v5848_v41, %v5279_v35  ;;  %v4992_v17 = vand.u32 4294967168, %v4687_v23  ;;  %v4702_v22 = vsel %vm4126_vm5, %v4414_v30, %v3550_v4  ;;  %v5772_v16 = vsel %vm5771_vm6, %v5770_v1, %v5277_v46 }
 0x2b7   : > { %vm5810_vm8 = vcmp.lt.s32.totalorder %v5809_v56, %v5278_v61  ;;  %v5007_v57 = vand.u32 4294967168, %v4702_v22  ;;  %vm4128_vm9 = vcmp.lt.s32.totalorder %v3552_v11, 0  ;;  %v4416_v52 = vxor.u32 2147483647, %v3552_v11 }
 0x2b8   : > { %v5280_v20 = vor.u32 %v4992_v17, %v10179_v10  ;;  %v5850_v49 = vsel %vm5849_vm7, %v5848_v41, %v5279_v35  ;;  %v3551_v54 = vsub.f32 %v10178_v18, %v9107_v3  ;;  %v5811_v5 = vsel %vm5810_vm8, %v5809_v56, %v5278_v61 }
 0x2b9   : > { %v5295_v37 = vor.u32 %v5007_v57, %v7985_v31  ;;  %v4704_v60 = vsel %vm4128_vm9, %v4416_v52, %v3552_v11  ;;  %v3553_v33 = vsub.f32 %v10178_v18, %v9109_v15  ;;  %v3568_v1 = vsub.f32 %v8265_v50, %v9126_v9 }
 0x2ba   : > { %vm5888_vm10 = vcmp.lt.s32.totalorder %v5887_v55, %v5280_v20  ;;  %v5009_v24 = vand.u32 4294967168, %v4704_v60  ;;  %vm4127_vm11 = vcmp.lt.s32.totalorder %v3551_v54, 0  ;;  %v4415_v25 = vxor.u32 2147483647, %v3551_v54  ;;  %v10218_v60 = vld [vmem:[#allocation27_spill] sm:$0xff] }
 0x2bb   : > { %vm5773_vm12 = vcmp.lt.s32.totalorder %v5772_v16, %v5295_v37  ;;  %vm4129_vm13 = vcmp.lt.s32.totalorder %v3553_v33, 0  ;;  %v4417_v41 = vxor.u32 2147483647, %v3553_v33  ;;  %v5889_v53 = vsel %vm5888_vm10, %v5887_v55, %v5280_v20 }
 0x2bc   : > { %v5297_v3 = vor.u32 %v5009_v24, %v7985_v31  ;;  %v4703_v56 = vsel %vm4127_vm11, %v4415_v25, %v3551_v54  ;;  %vm4144_vm0 = vcmp.lt.s32.totalorder %v3568_v1, 0  ;;  %v4432_v44 = vxor.u32 2147483647, %v3568_v1 }
 0x2bd   : > { %v5008_v4 = vand.u32 4294967168, %v4703_v56  ;;  %v4705_v46 = vsel %vm4129_vm13, %v4417_v41, %v3553_v33  ;;  %v5774_v2 = vsel %vm5773_vm12, %v5772_v16, %v5295_v37  ;;  %v3570_v15 = vsub.f32 %v8265_v50, %v9128_v43 }
 0x2be   : > { %vm5851_vm14 = vcmp.lt.s32.totalorder %v5850_v49, %v5297_v3  ;;  %v5010_v9 = vand.u32 4294967168, %v4705_v46  ;;  %v4720_v47 = vsel %vm4144_vm0, %v4432_v44, %v3568_v1  ;;  %v3569_v35 = vsub.f32 %v8265_v50, %v9133_v6 }
 0x2bf   : > { %v5296_v30 = vor.u32 %v5008_v4, %v7985_v31  ;;  %v5025_v55 = vand.u32 4294967168, %v4720_v47  ;;  %vm4146_vm15 = vcmp.lt.s32.totalorder %v3570_v15, 0  ;;  %v4434_v61 = vxor.u32 2147483647, %v3570_v15  ;;  %v10219_v47 = vld [vmem:[#allocation28_spill] sm:$0xff] }
 0x2c0   : > { %v5298_v23 = vor.u32 %v5010_v9, %v7985_v31  ;;  %v5852_v11 = vsel %vm5851_vm14, %v5850_v49, %v5297_v3  ;;  %vm4145_vm1 = vcmp.lt.s32.totalorder %v3569_v35, 0  ;;  %v4433_v17 = vxor.u32 2147483647, %v3569_v35 }
 0x2c1   : > { %vm5812_vm2 = vcmp.lt.s32.totalorder %v5811_v5, %v5296_v30  ;;  %v5313_v22 = vor.u32 %v5025_v55, %v7990_v39  ;;  %v4722_v43 = vsel %vm4146_vm15, %v4434_v61, %v3570_v15  ;;  %v3571_v16 = vsub.f32 %v8265_v50, %v9135_v59 }
 0x2c2   : > { %vm5890_vm3 = vcmp.lt.s32.totalorder %v5889_v53, %v5298_v23  ;;  %v5027_v57 = vand.u32 4294967168, %v4722_v43  ;;  %v4721_v6 = vsel %vm4145_vm1, %v4433_v17, %v3569_v35  ;;  %v5813_v52 = vsel %vm5812_vm2, %v5811_v5, %v5296_v30  ;;  %v10220_v30 = vld [vmem:[#allocation14_spill] sm:$0xff] }
 0x2c3   : > { %vm5775_vm4 = vcmp.lt.s32.totalorder %v5774_v2, %v5313_v22  ;;  %v5026_v20 = vand.u32 4294967168, %v4721_v6  ;;  %vm4147_vm5 = vcmp.lt.s32.totalorder %v3571_v16, 0  ;;  %v4435_v54 = vxor.u32 2147483647, %v3571_v16 }
 0x2c4   : > { %v5315_v37 = vor.u32 %v5027_v57, %v7990_v39  ;;  %v5891_v49 = vsel %vm5890_vm3, %v5889_v53, %v5298_v23  ;;  %v3586_v33 = vsub.f32 %v10218_v60, %v9143_v29  ;;  %v5776_v1 = vsel %vm5775_vm4, %v5774_v2, %v5313_v22 }
 0x2c5   : > { %v5314_v24 = vor.u32 %v5026_v20, %v7990_v39  ;;  %v4723_v25 = vsel %vm4147_vm5, %v4435_v54, %v3571_v16  ;;  %v3588_v59 = vsub.f32 %v10218_v60, %v9145_v21  ;;  %v3587_v5 = vsub.f32 %v10218_v60, %v9149_v19 }
 0x2c6   : > { %vm5853_vm6 = vcmp.lt.s32.totalorder %v5852_v11, %v5315_v37  ;;  %v5028_v41 = vand.u32 4294967168, %v4723_v25  ;;  %vm4162_vm7 = vcmp.lt.s32.totalorder %v3586_v33, 0  ;;  %v4450_v3 = vxor.u32 2147483647, %v3586_v33 }
 0x2c7   : > { %vm5814_vm8 = vcmp.lt.s32.totalorder %v5813_v52, %v5314_v24  ;;  %vm4164_vm9 = vcmp.lt.s32.totalorder %v3588_v59, 0  ;;  %v4452_v53 = vxor.u32 2147483647, %v3588_v59  ;;  %v5854_v56 = vsel %vm5853_vm6, %v5852_v11, %v5315_v37 }
 0x2c8   : > { %v5316_v29 = vor.u32 %v5028_v41, %v7990_v39  ;;  %v4738_v44 = vsel %vm4162_vm7, %v4450_v3, %v3586_v33  ;;  %vm4163_vm10 = vcmp.lt.s32.totalorder %v3587_v5, 0  ;;  %v4451_v4 = vxor.u32 2147483647, %v3587_v5 }
 0x2c9   : > { %v5043_v46 = vand.u32 4294967168, %v4738_v44  ;;  %v4740_v2 = vsel %vm4164_vm9, %v4452_v53, %v3588_v59  ;;  %v5815_v15 = vsel %vm5814_vm8, %v5813_v52, %v5314_v24  ;;  %v3589_v21 = vsub.f32 %v10218_v60, %v9151_v27  ;;  %v10221_v24 = vld [vmem:[#allocation15_spill] sm:$0xff] }
 0x2ca   : > { %vm5892_vm11 = vcmp.lt.s32.totalorder %v5891_v49, %v5316_v29  ;;  %v5045_v19 = vand.u32 4294967168, %v4740_v2  ;;  %v4739_v9 = vsel %vm4163_vm10, %v4451_v4, %v3587_v5  ;;  %v3604_v35 = vsub.f32 %v10219_v47, %v9176_v0  ;;  %v10222_v5 = vld [vmem:[#allocation29_spill] sm:$0xff] }
 0x2cb   : > { %v5331_v55 = vor.u32 %v5043_v46, %v10220_v30  ;;  %v5044_v61 = vand.u32 4294967168, %v4739_v9  ;;  %vm4165_vm12 = vcmp.lt.s32.totalorder %v3589_v21, 0  ;;  %v4453_v23 = vxor.u32 2147483647, %v3589_v21 }
 0x2cc   : > { %v5333_v11 = vor.u32 %v5045_v19, %v10220_v30  ;;  %v5893_v17 = vsel %vm5892_vm11, %v5891_v49, %v5316_v29  ;;  %vm4180_vm13 = vcmp.lt.s32.totalorder %v3604_v35, 0  ;;  %v4468_v22 = vxor.u32 2147483647, %v3604_v35 }
 0x2cd   : > { %vm5777_vm0 = vcmp.lt.s32.totalorder %v5776_v1, %v5331_v55  ;;  %v5332_v43 = vor.u32 %v5044_v61, %v10220_v30  ;;  %v4741_v27 = vsel %vm4165_vm12, %v4453_v23, %v3589_v21  ;;  %v3606_v16 = vsub.f32 %v10219_v47, %v9178_v28  ;;  %v10223_v21 = vld [vmem:[#allocation36_spill] sm:$0xff] }
 0x2ce   : > { %vm5855_vm14 = vcmp.lt.s32.totalorder %v5854_v56, %v5333_v11  ;;  %v5046_v57 = vand.u32 4294967168, %v4741_v27  ;;  %v4756_v0 = vsel %vm4180_vm13, %v4468_v22, %v3604_v35  ;;  %v5778_v6 = vsel %vm5777_vm0, %v5776_v1, %v5331_v55 }
 0x2cf   : > { %vm5816_vm15 = vcmp.lt.s32.totalorder %v5815_v15, %v5332_v43  ;;  %v5061_v52 = vand.u32 4294967168, %v4756_v0  ;;  %vm4182_vm1 = vcmp.lt.s32.totalorder %v3606_v16, 0  ;;  %v4470_v20 = vxor.u32 2147483647, %v3606_v16 }
 0x2d0   : > { %v5334_v54 = vor.u32 %v5046_v57, %v10220_v30  ;;  %v5856_v37 = vsel %vm5855_vm14, %v5854_v56, %v5333_v11  ;;  %v3605_v49 = vsub.f32 %v10219_v47, %v9183_v40  ;;  %v5817_v33 = vsel %vm5816_vm15, %v5815_v15, %v5332_v43  ;;  %v10225_v43 = vld [vmem:[#allocation10_spill] sm:$0xff] }
 0x2d1   : > { %v5349_v25 = vor.u32 %v5061_v52, %v10221_v24  ;;  %v4758_v59 = vsel %vm4182_vm1, %v4470_v20, %v3606_v16  ;;  %v3607_v28 = vsub.f32 %v10219_v47, %v9185_v48  ;;  %v3622_v1 = vsub.f32 %v10222_v5, %v9193_v58 }
 0x2d2   : > { %vm5894_vm2 = vcmp.lt.s32.totalorder %v5893_v17, %v5334_v54  ;;  %v5063_v41 = vand.u32 4294967168, %v4758_v59  ;;  %vm4181_vm3 = vcmp.lt.s32.totalorder %v3605_v49, 0  ;;  %v4469_v3 = vxor.u32 2147483647, %v3605_v49 }
 0x2d3   : > { %vm5779_vm4 = vcmp.lt.s32.totalorder %v5778_v6, %v5349_v25  ;;  %vm4183_vm5 = vcmp.lt.s32.totalorder %v3607_v28, 0  ;;  %v4471_v53 = vxor.u32 2147483647, %v3607_v28  ;;  %v5895_v56 = vsel %vm5894_vm2, %v5893_v17, %v5334_v54  ;;  %v10224_v17 = vld [vmem:[#allocation16_spill] sm:$0xff] }
 0x2d4   : > { %v5351_v40 = vor.u32 %v5063_v41, %v10221_v24  ;;  %v4757_v29 = vsel %vm4181_vm3, %v4469_v3, %v3605_v49  ;;  %vm4198_vm6 = vcmp.lt.s32.totalorder %v3622_v1, 0  ;;  %v4486_v44 = vxor.u32 2147483647, %v3622_v1 }
 0x2d5   : > { %v5062_v4 = vand.u32 4294967168, %v4757_v29  ;;  %v4759_v46 = vsel %vm4183_vm5, %v4471_v53, %v3607_v28  ;;  %v5780_v2 = vsel %vm5779_vm4, %v5778_v6, %v5349_v25  ;;  %v3624_v48 = vsub.f32 %v10222_v5, %v9195_v8 }
 0x2d6   : > { %vm5857_vm7 = vcmp.lt.s32.totalorder %v5856_v37, %v5351_v40  ;;  %v5064_v58 = vand.u32 4294967168, %v4759_v46  ;;  %v4774_v15 = vsel %vm4198_vm6, %v4486_v44, %v3622_v1  ;;  %v3623_v19 = vsub.f32 %v10222_v5, %v10223_v21  ;;  %v10229_v21 = vld [vmem:[#allocation17_spill] sm:$0xff] }
 0x2d7   : > { %v5350_v9 = vor.u32 %v5062_v4, %v10221_v24  ;;  %v5079_v35 = vand.u32 4294967168, %v4774_v15  ;;  %vm4200_vm8 = vcmp.lt.s32.totalorder %v3624_v48, 0  ;;  %v4488_v55 = vxor.u32 2147483647, %v3624_v48 }
 0x2d8   : > { %v5352_v61 = vor.u32 %v5064_v58, %v10221_v24  ;;  %v5858_v23 = vsel %vm5857_vm7, %v5856_v37, %v5351_v40  ;;  %vm4199_vm9 = vcmp.lt.s32.totalorder %v3623_v19, 0  ;;  %v4487_v11 = vxor.u32 2147483647, %v3623_v19  ;;  %v10226_v37 = vld [vmem:[#allocation30_spill] sm:$0xff]  ;;  %v10228_v58 = vld [vmem:[#allocation31_spill] sm:$0xff] }
 0x2d9   : > { %vm5818_vm10 = vcmp.lt.s32.totalorder %v5817_v33, %v5350_v9  ;;  %v5367_v22 = vor.u32 %v5079_v35, %v10224_v17  ;;  %v4776_v8 = vsel %vm4200_vm8, %v4488_v55, %v3624_v48  ;;  %v3625_v27 = vsub.f32 %v10222_v5, %v10225_v43 }
 0x2da   : > { %vm5896_vm11 = vcmp.lt.s32.totalorder %v5895_v56, %v5352_v61  ;;  %v5081_v16 = vand.u32 4294967168, %v4776_v8  ;;  %v4775_v57 = vsel %vm4199_vm9, %v4487_v11, %v3623_v19  ;;  %v5819_v0 = vsel %vm5818_vm10, %v5817_v33, %v5350_v9  ;;  %v10230_v8 = vld [vmem:[#allocation37_spill] sm:$0xff] }
 0x2db   : > { %vm5781_vm12 = vcmp.lt.s32.totalorder %v5780_v2, %v5367_v22  ;;  %v5080_v6 = vand.u32 4294967168, %v4775_v57  ;;  %vm4201_vm13 = vcmp.lt.s32.totalorder %v3625_v27, 0  ;;  %v4489_v52 = vxor.u32 2147483647, %v3625_v27 }
 0x2dc   : > { %v5369_v20 = vor.u32 %v5081_v16, %v10224_v17  ;;  %v5897_v54 = vsel %vm5896_vm11, %v5895_v56, %v5352_v61  ;;  %v3640_v49 = vsub.f32 %v10226_v37, %v9219_v13  ;;  %v5782_v25 = vsel %vm5781_vm12, %v5780_v2, %v5367_v22 }
 0x2dd   : > { %v5368_v59 = vor.u32 %v5080_v6, %v10224_v17  ;;  %v4777_v28 = vsel %vm4201_vm13, %v4489_v52, %v3625_v27  ;;  %v3642_v1 = vsub.f32 %v10226_v37, %v9221_v36  ;;  %v3641_v33 = vsub.f32 %v10226_v37, %v9231_v32  ;;  %v10227_v36 = vld [vmem:[#allocation24_spill] sm:$0xff] }
 0x2de   : > { %vm5859_vm0 = vcmp.lt.s32.totalorder %v5858_v23, %v5369_v20  ;;  %v5082_v41 = vand.u32 4294967168, %v4777_v28  ;;  %vm4216_vm14 = vcmp.lt.s32.totalorder %v3640_v49, 0  ;;  %v4504_v3 = vxor.u32 2147483647, %v3640_v49 }
 0x2df   : > { %vm5820_vm15 = vcmp.lt.s32.totalorder %v5819_v0, %v5368_v59  ;;  %vm4218_vm1 = vcmp.lt.s32.totalorder %v3642_v1, 0  ;;  %v4506_v53 = vxor.u32 2147483647, %v3642_v1  ;;  %v5860_v56 = vsel %vm5859_vm0, %v5858_v23, %v5369_v20 }
 0x2e0   : > { %v5370_v13 = vor.u32 %v5082_v41, %v10224_v17  ;;  %v4792_v40 = vsel %vm4216_vm14, %v4504_v3, %v3640_v49  ;;  %vm4217_vm2 = vcmp.lt.s32.totalorder %v3641_v33, 0  ;;  %v4505_v29 = vxor.u32 2147483647, %v3641_v33  ;;  %v10231_v49 = vld [vmem:[#allocation18_spill] sm:$0xff]  ;;  %v10233_v41 = vld [vmem:[#allocation32_spill] sm:$0xff] }
 0x2e1   : > { %v5097_v44 = vand.u32 4294967168, %v4792_v40  ;;  %v4794_v4 = vsel %vm4218_vm1, %v4506_v53, %v3642_v1  ;;  %v5821_v46 = vsel %vm5820_vm15, %v5819_v0, %v5368_v59  ;;  %v3643_v2 = vsub.f32 %v10226_v37, %v10227_v36 }
 0x2e2   : > { %vm5898_vm3 = vcmp.lt.s32.totalorder %v5897_v54, %v5370_v13  ;;  %v5099_v32 = vand.u32 4294967168, %v4794_v4  ;;  %v4793_v48 = vsel %vm4217_vm2, %v4505_v29, %v3641_v33  ;;  %v3658_v15 = vsub.f32 %v10228_v58, %v9237_v14  ;;  %v10232_v33 = vld [vmem:[#allocation38_spill] sm:$0xff] }
 0x2e3   : > { %v5385_v19 = vor.u32 %v5097_v44, %v10229_v21  ;;  %v5098_v9 = vand.u32 4294967168, %v4793_v48  ;;  %vm4219_vm4 = vcmp.lt.s32.totalorder %v3643_v2, 0  ;;  %v4507_v35 = vxor.u32 2147483647, %v3643_v2 }
 0x2e4   : > { %v5387_v55 = vor.u32 %v5099_v32, %v10229_v21  ;;  %v5899_v61 = vsel %vm5898_vm3, %v5897_v54, %v5370_v13  ;;  %vm4234_vm5 = vcmp.lt.s32.totalorder %v3658_v15, 0  ;;  %v4522_v23 = vxor.u32 2147483647, %v3658_v15 }
 0x2e5   : > { %vm5783_vm6 = vcmp.lt.s32.totalorder %v5782_v25, %v5385_v19  ;;  %v5386_v11 = vor.u32 %v5098_v9, %v10229_v21  ;;  %v4795_v22 = vsel %vm4219_vm4, %v4507_v35, %v3643_v2  ;;  %v3660_v43 = vsub.f32 %v10228_v58, %v10230_v8 }
 0x2e6   : > { %vm5861_vm7 = vcmp.lt.s32.totalorder %v5860_v56, %v5387_v55  ;;  %v5100_v27 = vand.u32 4294967168, %v4795_v22  ;;  %v4810_v14 = vsel %vm4234_vm5, %v4522_v23, %v3658_v15  ;;  %v5784_v16 = vsel %vm5783_vm6, %v5782_v25, %v5385_v19  ;;  %v10234_v15 = vld [vmem:[#allocation39_spill] sm:$0xff] }
 0x2e7   : > { %vm5822_vm8 = vcmp.lt.s32.totalorder %v5821_v46, %v5386_v11  ;;  %v5115_v57 = vand.u32 4294967168, %v4810_v14  ;;  %vm4236_vm9 = vcmp.lt.s32.totalorder %v3660_v43, 0  ;;  %v4524_v0 = vxor.u32 2147483647, %v3660_v43 }
 0x2e8   : > { %v5388_v6 = vor.u32 %v5100_v27, %v10229_v21  ;;  %v5862_v52 = vsel %vm5861_vm7, %v5860_v56, %v5387_v55  ;;  %v3659_v20 = vsub.f32 %v10228_v58, %v9248_v26  ;;  %v5823_v54 = vsel %vm5822_vm8, %v5821_v46, %v5386_v11  ;;  %v9422_v13 = vpop.f32.mrb[96].mxu0 }
 0x2e9   : > { %v5403_v59 = vor.u32 %v5115_v57, %v10231_v49  ;;  %v4812_v28 = vsel %vm4236_vm9, %v4524_v0, %v3660_v43  ;;  %v3661_v1 = vsub.f32 %v10228_v58, %v9250_v51  ;;  %v3676_v25 = vsub.f32 %v10233_v41, %v10232_v33  ;;  %v9424_v40 = vpop.f32.mrb[97].mxu0  ;;  %v9426_v29 = vpop.f32.mrb[96].mxu1  ;;  %v10235_v57 = vld [vmem:[#allocation19_spill] sm:$0xff] }
 0x2ea   : > { %vm5900_vm10 = vcmp.lt.s32.totalorder %v5899_v61, %v5388_v6  ;;  %v5117_v3 = vand.u32 4294967168, %v4812_v28  ;;  %vm4235_vm11 = vcmp.lt.s32.totalorder %v3659_v20, 0  ;;  %v4523_v53 = vxor.u32 2147483647, %v3659_v20  ;;  %v9429_v46 = vpop.f32.mrb[98].mxu0  ;;  %v9431_v36 = vpop.f32.mrb[97].mxu1 }
 0x2eb   : > { %vm5785_vm12 = vcmp.lt.s32.totalorder %v5784_v16, %v5403_v59  ;;  %vm4237_vm13 = vcmp.lt.s32.totalorder %v3661_v1, 0  ;;  %v4525_v56 = vxor.u32 2147483647, %v3661_v1  ;;  %v5901_v26 = vsel %vm5900_vm10, %v5899_v61, %v5388_v6  ;;  %v9435_v9 = vpop.f32.mrb[99].mxu0  ;;  %v9437_v35 = vpop.f32.mrb[98].mxu1 }
 0x2ec   : > { %v5405_v44 = vor.u32 %v5117_v3, %v10231_v49  ;;  %v4811_v51 = vsel %vm4235_vm11, %v4523_v53, %v3659_v20  ;;  %vm4252_vm0 = vcmp.lt.s32.totalorder %v3676_v25, 0  ;;  %v4540_v4 = vxor.u32 2147483647, %v3676_v25  ;;  %v9441_v11 = vpop.f32.mrb[99].mxu1  ;;  %v10236_v20 = vld [vmem:[#allocation40_spill] sm:$0xff] }
 0x2ed   : > { %v5116_v2 = vand.u32 4294967168, %v4811_v51  ;;  %v4813_v32 = vsel %vm4237_vm13, %v4525_v56, %v3661_v1  ;;  %v5786_v48 = vsel %vm5785_vm12, %v5784_v16, %v5403_v59  ;;  %v3678_v19 = vsub.f32 %v10233_v41, %v10234_v15  ;;  %v10237_v51 = vld [vmem:[#allocation41_spill] sm:$0xff] }
 0x2ee   : > { %vm5863_vm14 = vcmp.lt.s32.totalorder %v5862_v52, %v5405_v44  ;;  %v5118_v55 = vand.u32 4294967168, %v4813_v32  ;;  %v4828_v61 = vsel %vm4252_vm0, %v4540_v4, %v3676_v25  ;;  %v3677_v23 = vsub.f32 %v10233_v41, %v9282_v63  ;;  %v10238_v4 = vld [vmem:[#allocation33_spill] sm:$0xff] }
 0x2ef   : > { %v5404_v22 = vor.u32 %v5116_v2, %v10231_v49  ;;  %v5133_v8 = vand.u32 4294967168, %v4828_v61  ;;  %vm4254_vm15 = vcmp.lt.s32.totalorder %v3678_v19, 0  ;;  %v4542_v43 = vxor.u32 2147483647, %v3678_v19 }
 0x2f0   : > { %v5406_v27 = vor.u32 %v5118_v55, %v10231_v49  ;;  %v5864_v14 = vsel %vm5863_vm14, %v5862_v52, %v5405_v44  ;;  %vm4253_vm1 = vcmp.lt.s32.totalorder %v3677_v23, 0  ;;  %v4541_v16 = vxor.u32 2147483647, %v3677_v23  ;;  %v9448_v33 = vpop.f32.mrb[100].mxu0 }
 0x2f1   : > { %vm5824_vm2 = vcmp.lt.s32.totalorder %v5823_v54, %v5404_v22  ;;  %v5421_v0 = vor.u32 %v5133_v8, %v10235_v57  ;;  %v4830_v6 = vsel %vm4254_vm15, %v4542_v43, %v3678_v19  ;;  %v3679_v59 = vsub.f32 %v10233_v41, %v10236_v20  ;;  %v9450_v52 = vpop.f32.mrb[101].mxu0  ;;  %v9452_v53 = vpop.f32.mrb[100].mxu1 }
 0x2f2   : > { %vm5902_vm3 = vcmp.lt.s32.totalorder %v5901_v26, %v5406_v27  ;;  %v5135_v63 = vand.u32 4294967168, %v4830_v6  ;;  %v4829_v28 = vsel %vm4253_vm1, %v4541_v16, %v3677_v23  ;;  %v5825_v1 = vsel %vm5824_vm2, %v5823_v54, %v5404_v22  ;;  %v9457_v15 = vpop.f32.mrb[102].mxu0  ;;  %v9459_v54 = vpop.f32.mrb[101].mxu1 }
 0x2f3   : > { %vm5787_vm4 = vcmp.lt.s32.totalorder %v5786_v48, %v5421_v0  ;;  %v5134_v25 = vand.u32 4294967168, %v4829_v28  ;;  %vm4255_vm5 = vcmp.lt.s32.totalorder %v3679_v59, 0  ;;  %v4543_v3 = vxor.u32 2147483647, %v3679_v59  ;;  %v9466_v22 = vpop.f32.mrb[103].mxu0 }
 0x2f4   : > { %v5423_v56 = vor.u32 %v5135_v63, %v10235_v57  ;;  %v5903_v44 = vsel %vm5902_vm3, %v5901_v26, %v5406_v27  ;;  %v3694_v2 = vsub.f32 %v10238_v4, %v10237_v51  ;;  %v5788_v32 = vsel %vm5787_vm4, %v5786_v48, %v5421_v0  ;;  %v9468_v26 = vpop.f32.mrb[102].mxu1 }
 0x2f5   : > { %v5422_v19 = vor.u32 %v5134_v25, %v10235_v57  ;;  %v4831_v55 = vsel %vm4255_vm5, %v4543_v3, %v3679_v59  ;;  %v3696_v61 = vsub.f32 %v10238_v4, %v9289_v42  ;;  %v3695_v23 = vsub.f32 %v10238_v4, %v9293_v34  ;;  %v9470_v43 = vpop.f32.mrb[103].mxu1  ;;  %v10239_v3 = vld [vmem:[#allocation2_spill] sm:$0xff] }
 0x2f6   : > { %vm5865_vm6 = vcmp.lt.s32.totalorder %v5864_v14, %v5423_v56  ;;  %v5136_v8 = vand.u32 4294967168, %v4831_v55  ;;  %vm4270_vm7 = vcmp.lt.s32.totalorder %v3694_v2, 0  ;;  %v4558_v48 = vxor.u32 2147483647, %v3694_v2 }
 0x2f7   : > { %vm5826_vm8 = vcmp.lt.s32.totalorder %v5825_v1, %v5422_v19  ;;  %vm4272_vm9 = vcmp.lt.s32.totalorder %v3696_v61, 0  ;;  %v4560_v27 = vxor.u32 2147483647, %v3696_v61  ;;  %v5866_v16 = vsel %vm5865_vm6, %v5864_v14, %v5423_v56  ;;  %v10240_v14 = vld [vmem:[#allocation20_spill] sm:$0xff] }
 0x2f8   : > { %v5424_v0 = vor.u32 %v5136_v8, %v10235_v57  ;;  %v4846_v42 = vsel %vm4270_vm7, %v4558_v48, %v3694_v2  ;;  %vm4271_vm10 = vcmp.lt.s32.totalorder %v3695_v23, 0  ;;  %v4559_v6 = vxor.u32 2147483647, %v3695_v23 }
 0x2f9   : > { %v5151_v34 = vand.u32 4294967168, %v4846_v42  ;;  %v4848_v20 = vsel %vm4272_vm9, %v4560_v27, %v3696_v61  ;;  %v5827_v59 = vsel %vm5826_vm8, %v5825_v1, %v5422_v19  ;;  %v3697_v63 = vsub.f32 %v10238_v4, %v9295_v62  ;;  %v9477_v55 = vpop.f32.mrb[104].mxu0  ;;  %v9480_v48 = vpop.f32.mrb[104].mxu1 }
 0x2fa   : > { %vm5904_vm11 = vcmp.lt.s32.totalorder %v5903_v44, %v5424_v0  ;;  %v5153_v28 = vand.u32 4294967168, %v4848_v20  ;;  %v4847_v25 = vsel %vm4271_vm10, %v4559_v6, %v3695_v23  ;;  %v3428_v51 = vsub.f32 %v10239_v3, %v9422_v13  ;;  %v9482_v61 = vpop.f32.mrb[105].mxu0  ;;  %v9485_v23 = vpop.f32.mrb[105].mxu1 }
 0x2fb   : > { %v5439_v56 = vor.u32 %v5151_v34, %v10240_v14  ;;  %v5152_v8 = vand.u32 4294967168, %v4847_v25  ;;  %vm4273_vm12 = vcmp.lt.s32.totalorder %v3697_v63, 0  ;;  %v4561_v2 = vxor.u32 2147483647, %v3697_v63  ;;  %v9487_v27 = vpop.f32.mrb[106].mxu0  ;;  %v9492_v34 = vpop.f32.mrb[106].mxu1 }
 0x2fc   : > { %v5441_v1 = vor.u32 %v5153_v28, %v10240_v14  ;;  %v5905_v62 = vsel %vm5904_vm11, %v5903_v44, %v5424_v0  ;;  %vm4004_vm13 = vcmp.lt.s32.totalorder %v3428_v51, 0  ;;  %v4292_v19 = vxor.u32 2147483647, %v3428_v51  ;;  %v9494_v20 = vpop.f32.mrb[107].mxu0  ;;  %v9496_v28 = vpop.f32.mrb[107].mxu1 }
 0x2fd   : > { %vm5789_vm0 = vcmp.lt.s32.totalorder %v5788_v32, %v5439_v56  ;;  %v5440_v13 = vor.u32 %v5152_v8, %v10240_v14  ;;  %v4849_v42 = vsel %vm4273_vm12, %v4561_v2, %v3697_v63  ;;  %v3429_v6 = vsub.f32 %v10239_v3, %v9424_v40  ;;  %v10241_v2 = vld [vmem:[#allocation3_spill] sm:$0xff] }
 0x2fe   : > { %v5790_v25 = vsel %vm5789_vm0, %v5788_v32, %v5439_v56  ;;  %vm5867_vm14 = vcmp.lt.s32.totalorder %v5866_v16, %v5441_v1  ;;  %v5154_v44 = vand.u32 4294967168, %v4849_v42  ;;  %v4580_v0 = vsel %vm4004_vm13, %v4292_v19, %v3428_v51  ;;  %v10242_v51 = vld [vmem:[#allocation7_spill] sm:$0xff] }
 0x2ff   : > { %v5791_v4 = vrot.slane %v5790_v25, 4  ;;  %v5868_v57 = vsel %vm5867_vm14, %v5866_v16, %v5441_v1  ;;  %vm5828_vm15 = vcmp.lt.s32.totalorder %v5827_v59, %v5440_v13  ;;  %v4885_v41 = vand.u32 4294967168, %v4580_v0 }
 0x300   : > { %v5869_v49 = vrot.slane %v5868_v57, 4  ;;  %v5829_v8 = vsel %vm5828_vm15, %v5827_v59, %v5440_v13  ;;  %v5442_v63 = vor.u32 %v5154_v44, %v10240_v14  ;;  %vm4005_vm1 = vcmp.lt.s32.totalorder %v3429_v6, 0 }
 0x301   : > { %vm5792_vm2 = vcmp.lt.s32.totalorder %v5790_v25, %v5791_v4  ;;  %v5830_v40 = vrot.slane %v5829_v8, 4  ;;  %v9500_v58 = vor.u32 %v4885_v41, %v10241_v2  ;;  %v4293_v32 = vxor.u32 2147483647, %v3429_v6  ;;  %v9504_v16 = vpop.f32.mrb[108].mxu0 }
 0x302   : > { %v5793_v56 = vsel %vm5792_vm2, %v5790_v25, %v5791_v4  ;;  %vm5870_vm3 = vcmp.lt.s32.totalorder %v5868_v57, %v5869_v49  ;;  %vm5906_vm4 = vcmp.lt.s32.totalorder %v5905_v62, %v5442_v63  ;;  %v3446_v19 = vsub.f32 %v10242_v51, %v9429_v46  ;;  %v9506_v13 = vpop.f32.mrb[108].mxu1  ;;  %v9508_v44 = vpop.f32.mrb[109].mxu0 }
 0x303   : > { %v5794_v1 = vrot.slane %v5793_v56, 2  ;;  %v5871_v42 = vsel %vm5870_vm3, %v5868_v57, %v5869_v49  ;;  %vm5831_vm5 = vcmp.lt.s32.totalorder %v5829_v8, %v5830_v40  ;;  %v5907_v59 = vsel %vm5906_vm4, %v5905_v62, %v5442_v63  ;;  %v9511_v25 = vpop.f32.mrb[109].mxu1  ;;  %v9513_v21 = vpop.f32.mrb[110].mxu0 }
 0x304   : > { %v5872_v0 = vrot.slane %v5871_v42, 2  ;;  %v5832_v41 = vsel %vm5831_vm5, %v5829_v8, %v5830_v40  ;;  %v5908_v14 = vrot.slane %v5907_v59, 4  ;;  %v4581_v4 = vsel %vm4005_vm1, %v4293_v32, %v3429_v6  ;;  %v9515_v49 = vpop.f32.mrb[110].mxu1  ;;  %v9517_v57 = vpop.f32.mrb[111].mxu0 }
 0x305   : > { %vm5795_vm6 = vcmp.lt.s32.totalorder %v5793_v56, %v5794_v1  ;;  %v5833_v46 = vrot.slane %v5832_v41, 2  ;;  %v4886_v37 = vand.u32 4294967168, %v4581_v4  ;;  %vm4022_vm7 = vcmp.lt.s32.totalorder %v3446_v19, 0  ;;  %v9519_v8 = vpop.f32.mrb[111].mxu1 }
 0x306   : > { %v5796_v62 = vsel %vm5795_vm6, %v5793_v56, %v5794_v1  ;;  %vm5873_vm8 = vcmp.lt.s32.totalorder %v5871_v42, %v5872_v0  ;;  %vm5909_vm9 = vcmp.lt.s32.totalorder %v5907_v59, %v5908_v14  ;;  %v4310_v63 = vxor.u32 2147483647, %v3446_v19 }
 0x307   : > { %v5797_v40 = vrot.slane %v5796_v62, 1  ;;  %v5874_v6 = vsel %vm5873_vm8, %v5871_v42, %v5872_v0  ;;  %vm5834_vm10 = vcmp.lt.s32.totalorder %v5832_v41, %v5833_v46  ;;  %v5910_v32 = vsel %vm5909_vm9, %v5907_v59, %v5908_v14 }
 0x308   : > { %v5875_v17 = vrot.slane %v5874_v6, 1  ;;  %v5835_v5 = vsel %vm5834_vm10, %v5832_v41, %v5833_v46  ;;  %v5911_v24 = vrot.slane %v5910_v32, 2  ;;  %v9522_v4 = vor.u32 %v4886_v37, %v10241_v2 }
 0x309   : > { %vm5798_vm11 = vcmp.lt.s32.totalorder %v5796_v62, %v5797_v40  ;;  %v5836_v47 = vrot.slane %v5835_v5, 1  ;;  %v4598_v30 = vsel %vm4022_vm7, %v4310_v63, %v3446_v19  ;;  %v3447_v56 = vsub.f32 %v10242_v51, %v9435_v9  ;;  %v9527_v42 = vpop.f32.mrb[112].mxu0  ;;  %v10246_v63 = vld [vmem:[#allocation4_spill] sm:$0xff] }
 0x30a   : > { %v5799_v1 = vsel %vm5798_vm11, %v5796_v62, %v5797_v40  ;;  %vm5876_vm12 = vcmp.lt.s32.totalorder %v5874_v6, %v5875_v17  ;;  %vm5912_vm13 = vcmp.lt.s32.totalorder %v5910_v32, %v5911_v24  ;;  %v4903_v60 = vand.u32 4294967168, %v4598_v30  ;;  %10243 = vst [vmem:[#allocation35_spill] sm:$0xff] %v9527_v42  ;;  %v9529_v41 = vpop.f32.mrb[112].mxu1  ;;  %v9531_v37 = vpop.f32.mrb[113].mxu0 }
 0x30b   : > { %v6159_v14 = vand.u32 127, %v5799_v1  ;;  %v5877_v59 = vsel %vm5876_vm12, %v5874_v6, %v5875_v17  ;;  %vm5837_vm0 = vcmp.lt.s32.totalorder %v5835_v5, %v5836_v47  ;;  %v5913_v0 = vsel %vm5912_vm13, %v5910_v32, %v5911_v24  ;;  %10244 = vst [vmem:[#allocation9_spill] sm:$0xff] %v9529_v41  ;;  %10245 = vst [vmem:[#allocation23_spill] sm:$0xff] %v9531_v37  ;;  %v9534_v9 = vpop.f32.mrb[113].mxu1  ;;  %v9536_v62 = vpop.f32.mrb[114].mxu0  ;;  %v10249_v17 = vld [vmem:[#allocation8_spill] sm:$0xff] }
 0x30c   : > { %v6161_v46 = vand.u32 127, %v5877_v59  ;;  %v5838_v39 = vsel %vm5837_vm0, %v5835_v5, %v5836_v47  ;;  %v5914_v19 = vrot.slane %v5913_v0, 1  ;;  %v5191_v50 = vor.u32 %v4903_v60, %v10246_v63  ;;  %10247 = vst [vmem:[#allocation36_spill] sm:$0xff] %v9534_v9  ;;  %10248 = vst [vmem:[#allocation10_spill] sm:$0xff] %v9536_v62  ;;  %v9540_v24 = vpop.f32.mrb[114].mxu1  ;;  %v9542_v32 = vpop.f32.mrb[115].mxu0 }
 0x30d   : > { %v6160_v30 = vand.u32 127, %v5838_v39  ;;  %vm4023_vm14 = vcmp.lt.s32.totalorder %v3447_v56, 0  ;;  %v4311_v40 = vxor.u32 2147483647, %v3447_v56  ;;  %v3464_v6 = vsub.f32 %v10249_v17, %v9448_v33  ;;  %10250 = vst [vmem:[#allocation24_spill] sm:$0xff] %v9540_v24  ;;  %10251 = vst [vmem:[#allocation37_spill] sm:$0xff] %v9542_v32 }
 0x30e   : > { %vm5915_vm15 = vcmp.lt.s32.totalorder %v5913_v0, %v5914_v19  ;;  %vm5917_vm1 = vcmp.lt.s32.totalorder %v9500_v58, %v5191_v50  ;;  %v3430_v60 = vsub.f32 %v10239_v3, %v9426_v29  ;;  %v3465_v47 = vsub.f32 %v10249_v17, %v9450_v52  ;;  %v9549_v5 = vpop.f32.mrb[115].mxu1  ;;  %v10253_v9 = vld [vmem:[#allocation34_spill] sm:$0xff] }
 0x30f   : > { %10252 = vst [vmem:[#allocation38_spill] sm:$0xff] %v9549_v5  ;;  %v6218_v39 = vcombine.low %v6159_v14, %v6160_v30  ;;  %v5916_v1 = vsel %vm5915_vm15, %v5913_v0, %v5914_v19  ;;  %v4599_v59 = vsel %vm4023_vm14, %v4311_v40, %v3447_v56  ;;  %vm4040_vm2 = vcmp.lt.s32.totalorder %v3464_v6, 0  ;;  %v10254_v19 = vld [vmem:[#allocation21_spill] sm:$0xff] }
 0x310   : > { %v6162_v33 = vand.u32 127, %v5916_v1  ;;  %v4904_v62 = vand.u32 4294967168, %v4599_v59  ;;  %v4328_v24 = vxor.u32 2147483647, %v3464_v6  ;;  %v5918_v32 = vsel %vm5917_vm1, %v9500_v58, %v5191_v50 }
 0x311   : > { %v6228_v37 = vrot.slane %v6218_v39, %v10253_v9  ;;  %vm4006_vm3 = vcmp.lt.s32.totalorder %v3430_v60, 0  ;;  %v4294_v41 = vxor.u32 2147483647, %v3430_v60  ;;  %vm4041_vm4 = vcmp.lt.s32.totalorder %v3465_v47, 0  ;;  %v9554_v5 = vpop.f32.mrb[116].mxu0 }
 0x312   : > { %v6219_v29 = vcombine.low %v6161_v46, %v6162_v33  ;;  %v5192_v42 = vor.u32 %v4904_v62, %v10246_v63  ;;  %v4616_v52 = vsel %vm4040_vm2, %v4328_v24, %v3464_v6  ;;  %v4329_v31 = vxor.u32 2147483647, %v3465_v47  ;;  %v9560_v58 = vpop.f32.mrb[116].mxu1  ;;  %v9562_v30 = vpop.f32.mrb[117].mxu0 }
 0x313   : > { %v4921_v14 = vand.u32 4294967168, %v4616_v52  ;;  %v4582_v56 = vsel %vm4006_vm3, %v4294_v41, %v3430_v60  ;;  %v3431_v0 = vsub.f32 %v10239_v3, %v9431_v36  ;;  %v3482_v50 = vsub.f32 %v10254_v19, %v9457_v15  ;;  %v9566_v6 = vpop.f32.mrb[117].mxu1  ;;  %v9568_v24 = vpop.f32.mrb[118].mxu0  ;;  %v10255_v41 = vld [vmem:[#allocation5_spill] sm:$0xff] }
 0x314   : > { %v6235_v46 = vrot.slane %v6219_v29, %v10253_v9  ;;  %vm5956_vm5 = vcmp.lt.s32.totalorder %v9522_v4, %v5192_v42  ;;  %v4887_v62 = vand.u32 4294967168, %v4582_v56  ;;  %v4617_v40 = vsel %vm4041_vm4, %v4329_v31, %v3465_v47  ;;  %v9572_v15 = vpop.f32.mrb[118].mxu1  ;;  %v9574_v1 = vpop.f32.mrb[119].mxu0 }
 0x315   : > { %v5209_v60 = vor.u32 %v4921_v14, %v10255_v41  ;;  %v4922_v36 = vand.u32 4294967168, %v4617_v40  ;;  %v5957_v39 = vsel %vm5956_vm5, %v9522_v4, %v5192_v42  ;;  %vm4007_vm6 = vcmp.lt.s32.totalorder %v3431_v0, 0  ;;  %v9578_v29 = vpop.f32.mrb[119].mxu1 }
 0x316   : > { %v9576_v59 = vcombine.low %v6228_v37, %v6235_v46  ;;  %v4295_v33 = vxor.u32 2147483647, %v3431_v0  ;;  %vm4058_vm7 = vcmp.lt.s32.totalorder %v3482_v50, 0  ;;  %v4346_v47 = vxor.u32 2147483647, %v3482_v50 }
 0x317   : > { %vm5919_vm8 = vcmp.lt.s32.totalorder %v5918_v32, %v5209_v60  ;;  %v5210_v31 = vor.u32 %v4922_v36, %v10255_v41  ;;  %v3448_v52 = vsub.f32 %v10242_v51, %v9437_v35  ;;  %v5175_v4 = vor.u32 %v4887_v62, %v10241_v2 }
 0x318   : > { %10256 = vst [vmem:[#allocation39_spill] sm:$0xff] %v9576_v59  ;;  %v4583_v42 = vsel %vm4007_vm6, %v4295_v33, %v3431_v0  ;;  %v5920_v14 = vsel %vm5919_vm8, %v5918_v32, %v5209_v60  ;;  %v3483_v56 = vsub.f32 %v10254_v19, %v9466_v22  ;;  %v4634_v46 = vsel %vm4058_vm7, %v4346_v47, %v3482_v50  ;;  %v10257_v50 = vld [vmem:[#allocation6_spill] sm:$0xff] }
 0x319   : > { %vm5958_vm9 = vcmp.lt.s32.totalorder %v5957_v39, %v5210_v31  ;;  %v4888_v37 = vand.u32 4294967168, %v4583_v42  ;;  %vm4024_vm10 = vcmp.lt.s32.totalorder %v3448_v52, 0  ;;  %v4939_v40 = vand.u32 4294967168, %v4634_v46  ;;  %v9593_v0 = vpop.f32.mrb[120].mxu0 }
 0x31a   : > { %v4312_v59 = vxor.u32 2147483647, %v3448_v52  ;;  %vm4059_vm11 = vcmp.lt.s32.totalorder %v3483_v56, 0  ;;  %v4347_v9 = vxor.u32 2147483647, %v3483_v56  ;;  %v9587_v3 = vsel %vm5958_vm9, %v5957_v39, %v5210_v31  ;;  %v9595_v22 = vpop.f32.mrb[120].mxu1 }
 0x31b   : > { %v5176_v36 = vor.u32 %v4888_v37, %v10241_v2  ;;  %v3449_v35 = vsub.f32 %v10242_v51, %v9441_v11  ;;  %v3466_v32 = vsub.f32 %v10249_v17, %v9452_v53  ;;  %v5227_v62 = vor.u32 %v4939_v40, %v10257_v50  ;;  %v9600_v42 = vpop.f32.mrb[121].mxu0  ;;  %v9602_v39 = vpop.f32.mrb[121].mxu1 }
 0x31c   : > { %v4600_v60 = vsel %vm4024_vm10, %v4312_v59, %v3448_v52  ;;  %v4635_v33 = vsel %vm4059_vm11, %v4347_v9, %v3483_v56  ;;  %v3467_v47 = vsub.f32 %v10249_v17, %v9459_v54  ;;  %v9604_v53 = vpop.f32.mrb[122].mxu0  ;;  %v9606_v40 = vpop.f32.mrb[122].mxu1  ;;  %v3484_v2 = vsub.f32 %v10254_v19, %v9468_v26 }
 0x31d   : > { %v4905_v31 = vand.u32 4294967168, %v4600_v60  ;;  %v4940_v11 = vand.u32 4294967168, %v4635_v33  ;;  %vm4025_vm12 = vcmp.lt.s32.totalorder %v3449_v35, 0  ;;  %v4313_v37 = vxor.u32 2147483647, %v3449_v35  ;;  %10258 = vst [vmem:[#allocation40_spill] sm:$0xff] %v9606_v40 }
 0x31e   : > { %vm5921_vm13 = vcmp.lt.s32.totalorder %v5920_v14, %v5227_v62  ;;  %vm4042_vm0 = vcmp.lt.s32.totalorder %v3466_v32, 0  ;;  %v4330_v46 = vxor.u32 2147483647, %v3466_v32  ;;  %vm4043_vm14 = vcmp.lt.s32.totalorder %v3467_v47, 0  ;;  %v9608_v9 = vpop.f32.mrb[123].mxu0  ;;  %v9612_v60 = vpop.f32.mrb[123].mxu1 }
 0x31f   : > { %10259 = vst [vmem:[#allocation41_spill] sm:$0xff] %v9608_v9  ;;  %v5193_v54 = vor.u32 %v4905_v31, %v10246_v63  ;;  %v5228_v59 = vor.u32 %v4940_v11, %v10257_v50  ;;  %v4601_v52 = vsel %vm4025_vm12, %v4313_v37, %v3449_v35  ;;  %v4331_v56 = vxor.u32 2147483647, %v3467_v47 }
 0x320   : > { %v4906_v33 = vand.u32 4294967168, %v4601_v52  ;;  %v4618_v17 = vsel %vm4042_vm0, %v4330_v46, %v3466_v32  ;;  %v3485_v51 = vsub.f32 %v10254_v19, %v9470_v43  ;;  %vm4060_vm2 = vcmp.lt.s32.totalorder %v3484_v2, 0 }
 0x321   : > { %vm5995_vm15 = vcmp.lt.s32.totalorder %v5175_v4, %v5193_v54  ;;  %vm5960_vm1 = vcmp.lt.s32.totalorder %v9587_v3, %v5228_v59  ;;  %v4923_v9 = vand.u32 4294967168, %v4618_v17  ;;  %v4619_v40 = vsel %vm4043_vm14, %v4331_v56, %v3467_v47  ;;  %v9620_v37 = vpop.f32.mrb[124].mxu0  ;;  %v10262_v17 = vld [vmem:[#allocation22_spill] sm:$0xff] }
 0x322   : > { %v5194_v31 = vor.u32 %v4906_v33, %v10246_v63  ;;  %v5996_v11 = vsel %vm5995_vm15, %v5175_v4, %v5193_v54  ;;  %v4924_v35 = vand.u32 4294967168, %v4619_v40  ;;  %10260 = vst [vmem:[#allocation6_spill] sm:$0xff] %v9620_v37  ;;  %v4348_v46 = vxor.u32 2147483647, %v3484_v2  ;;  %v9623_v52 = vpop.f32.mrb[124].mxu1  ;;  %v9629_v4 = vpop.f32.mrb[125].mxu0 }
 0x323   : > { %v5211_v32 = vor.u32 %v4923_v9, %v10255_v41  ;;  %vm4061_vm3 = vcmp.lt.s32.totalorder %v3485_v51, 0  ;;  %v4349_v26 = vxor.u32 2147483647, %v3485_v51  ;;  %10261 = vst [vmem:[#allocation42_spill] sm:$0xff] %v9623_v52  ;;  %v3500_v47 = vsub.f32 %v10262_v17, %v9477_v55  ;;  %v9631_v40 = vpop.f32.mrb[125].mxu1  ;;  %v9633_v19 = vpop.f32.mrb[126].mxu0 }
 0x324   : > { %vm6034_vm4 = vcmp.lt.s32.totalorder %v5176_v36, %v5194_v31  ;;  %v5212_v43 = vor.u32 %v4924_v35, %v10255_v41  ;;  %v5922_v56 = vsel %vm5921_vm13, %v5920_v14, %v5227_v62  ;;  %v4636_v9 = vsel %vm4060_vm2, %v4348_v46, %v3484_v2  ;;  %v9635_v63 = vpop.f32.mrb[126].mxu1  ;;  %v9637_v37 = vpop.f32.mrb[127].mxu0 }
 0x325   : > { %vm5997_vm5 = vcmp.lt.s32.totalorder %v5996_v11, %v5211_v32  ;;  %v6035_v54 = vsel %vm6034_vm4, %v5176_v36, %v5194_v31  ;;  %v4637_v33 = vsel %vm4061_vm3, %v4349_v26, %v3485_v51  ;;  %v4941_v52 = vand.u32 4294967168, %v4636_v9  ;;  %v9639_v55 = vpop.f32.mrb[127].mxu1 }
 0x326   : > { %vm6036_vm6 = vcmp.lt.s32.totalorder %v6035_v54, %v5212_v43  ;;  %v5998_v35 = vsel %vm5997_vm5, %v5996_v11, %v5211_v32  ;;  %v4942_v41 = vand.u32 4294967168, %v4637_v33  ;;  %vm4076_vm7 = vcmp.lt.s32.totalorder %v3500_v47, 0 }
 0x327   : > { %v6037_v14 = vsel %vm6036_vm6, %v6035_v54, %v5212_v43  ;;  %v4364_v62 = vxor.u32 2147483647, %v3500_v47  ;;  %v3502_v36 = vsub.f32 %v10262_v17, %v9480_v48  ;;  %v5229_v2 = vor.u32 %v4941_v52, %v10257_v50 }
 0x328   : > { %v5230_v51 = vor.u32 %v4942_v41, %v10257_v50  ;;  %v3501_v31 = vsub.f32 %v10262_v17, %v9482_v61  ;;  %v5961_v11 = vsel %vm5960_vm1, %v9587_v3, %v5228_v59  ;;  %v3503_v26 = vsub.f32 %v10262_v17, %v9485_v23 }
 0x329   : > { %v4652_v32 = vsel %vm4076_vm7, %v4364_v62, %v3500_v47  ;;  %vm4078_vm8 = vcmp.lt.s32.totalorder %v3502_v36, 0  ;;  %v4366_v46 = vxor.u32 2147483647, %v3502_v36  ;;  %vm5999_vm9 = vcmp.lt.s32.totalorder %v5998_v35, %v5229_v2 }
 0x32a   : > { %vm6038_vm10 = vcmp.lt.s32.totalorder %v6037_v14, %v5230_v51  ;;  %v4957_v48 = vand.u32 4294967168, %v4652_v32  ;;  %vm4077_vm11 = vcmp.lt.s32.totalorder %v3501_v31, 0  ;;  %v6000_v43 = vsel %vm5999_vm9, %v5998_v35, %v5229_v2 }
 0x32b   : > { %v4654_v52 = vsel %vm4078_vm8, %v4366_v46, %v3502_v36  ;;  %v4365_v41 = vxor.u32 2147483647, %v3501_v31  ;;  %vm4079_vm12 = vcmp.lt.s32.totalorder %v3503_v26, 0  ;;  %v4367_v9 = vxor.u32 2147483647, %v3503_v26 }
 0x32c   : > { %v5245_v61 = vor.u32 %v4957_v48, %v10212_v12  ;;  %v4959_v54 = vand.u32 4294967168, %v4654_v52  ;;  %v6039_v33 = vsel %vm6038_vm10, %v6037_v14, %v5230_v51  ;;  %v3518_v59 = vsub.f32 %v10213_v38, %v9487_v27 }
 0x32d   : > { %v4653_v3 = vsel %vm4077_vm11, %v4365_v41, %v3501_v31  ;;  %v3520_v23 = vsub.f32 %v10213_v38, %v9492_v34  ;;  %v3519_v47 = vsub.f32 %v10213_v38, %v9494_v20  ;;  %v4655_v36 = vsel %vm4079_vm12, %v4367_v9, %v3503_v26 }
 0x32e   : > { %vm5923_vm13 = vcmp.lt.s32.totalorder %v5922_v56, %v5245_v61  ;;  %v5247_v35 = vor.u32 %v4959_v54, %v10212_v12  ;;  %v4958_v62 = vand.u32 4294967168, %v4653_v3  ;;  %v4960_v2 = vand.u32 4294967168, %v4655_v36 }
 0x32f   : > { %vm4094_vm0 = vcmp.lt.s32.totalorder %v3518_v59, 0  ;;  %v4382_v32 = vxor.u32 2147483647, %v3518_v59  ;;  %v5924_v46 = vsel %vm5923_vm13, %v5922_v56, %v5245_v61  ;;  %vm4096_vm15 = vcmp.lt.s32.totalorder %v3520_v23, 0 }
 0x330   : > { %vm6001_vm14 = vcmp.lt.s32.totalorder %v6000_v43, %v5247_v35  ;;  %v5246_v14 = vor.u32 %v4958_v62, %v10212_v12  ;;  %v4384_v27 = vxor.u32 2147483647, %v3520_v23  ;;  %v5248_v51 = vor.u32 %v4960_v2, %v10212_v12 }
 0x331   : > { %v4670_v34 = vsel %vm4094_vm0, %v4382_v32, %v3518_v59  ;;  %v6002_v31 = vsel %vm6001_vm14, %v6000_v43, %v5247_v35  ;;  %vm4095_vm1 = vcmp.lt.s32.totalorder %v3519_v47, 0  ;;  %v4383_v52 = vxor.u32 2147483647, %v3519_v47 }
 0x332   : > { %vm5962_vm2 = vcmp.lt.s32.totalorder %v5961_v11, %v5246_v14  ;;  %v4975_v20 = vand.u32 4294967168, %v4670_v34  ;;  %v4672_v48 = vsel %vm4096_vm15, %v4384_v27, %v3520_v23  ;;  %vm6040_vm3 = vcmp.lt.s32.totalorder %v6039_v33, %v5248_v51 }
 0x333   : > { %v4977_v26 = vand.u32 4294967168, %v4672_v48  ;;  %v5963_v41 = vsel %vm5962_vm2, %v5961_v11, %v5246_v14  ;;  %v3521_v56 = vsub.f32 %v10213_v38, %v9496_v28  ;;  %v4671_v54 = vsel %vm4095_vm1, %v4383_v52, %v3519_v47 }
 0x334   : > { %v5263_v61 = vor.u32 %v4975_v20, %v10169_v7  ;;  %v6041_v9 = vsel %vm6040_vm3, %v6039_v33, %v5248_v51  ;;  %v3536_v3 = vsub.f32 %v10170_v45, %v9504_v16  ;;  %v4976_v59 = vand.u32 4294967168, %v4671_v54 }
 0x335   : > { %v5265_v43 = vor.u32 %v4977_v26, %v10169_v7  ;;  %vm4097_vm4 = vcmp.lt.s32.totalorder %v3521_v56, 0  ;;  %v4385_v35 = vxor.u32 2147483647, %v3521_v56  ;;  %v3538_v11 = vsub.f32 %v10170_v45, %v9506_v13 }
 0x336   : > { %vm5925_vm5 = vcmp.lt.s32.totalorder %v5924_v46, %v5263_v61  ;;  %vm4112_vm6 = vcmp.lt.s32.totalorder %v3536_v3, 0  ;;  %v4400_v23 = vxor.u32 2147483647, %v3536_v3  ;;  %v5264_v28 = vor.u32 %v4976_v59, %v10169_v7 }
 0x337   : > { %vm6003_vm7 = vcmp.lt.s32.totalorder %v6002_v31, %v5265_v43  ;;  %v4673_v62 = vsel %vm4097_vm4, %v4385_v35, %v3521_v56  ;;  %v5926_v47 = vsel %vm5925_vm5, %v5924_v46, %v5263_v61  ;;  %vm4114_vm8 = vcmp.lt.s32.totalorder %v3538_v11, 0 }
 0x338   : > { %v4978_v33 = vand.u32 4294967168, %v4673_v62  ;;  %v4688_v36 = vsel %vm4112_vm6, %v4400_v23, %v3536_v3  ;;  %v4402_v16 = vxor.u32 2147483647, %v3538_v11  ;;  %vm5964_vm9 = vcmp.lt.s32.totalorder %v5963_v41, %v5264_v28 }
 0x339   : > { %v4993_v2 = vand.u32 4294967168, %v4688_v36  ;;  %v6004_v32 = vsel %vm6003_vm7, %v6002_v31, %v5265_v43  ;;  %v3537_v14 = vsub.f32 %v10170_v45, %v9508_v44  ;;  %v5965_v34 = vsel %vm5964_vm9, %v5963_v41, %v5264_v28 }
 0x33a   : > { %v5266_v27 = vor.u32 %v4978_v33, %v10169_v7  ;;  %v4690_v51 = vsel %vm4114_vm8, %v4402_v16, %v3538_v11  ;;  %v3539_v13 = vsub.f32 %v10170_v45, %v9511_v25  ;;  %v3554_v31 = vsub.f32 %v10178_v18, %v9513_v21 }
 0x33b   : > { %v5281_v20 = vor.u32 %v4993_v2, %v10179_v10  ;;  %v4995_v46 = vand.u32 4294967168, %v4690_v51  ;;  %vm4113_vm10 = vcmp.lt.s32.totalorder %v3537_v14, 0  ;;  %v4401_v48 = vxor.u32 2147483647, %v3537_v14  ;;  %v10264_v51 = vld [vmem:[#allocation35_spill] sm:$0xff] }
 0x33c   : > { %vm6042_vm11 = vcmp.lt.s32.totalorder %v6041_v9, %v5266_v27  ;;  %vm4115_vm12 = vcmp.lt.s32.totalorder %v3539_v13, 0  ;;  %v4403_v52 = vxor.u32 2147483647, %v3539_v13  ;;  %vm4130_vm0 = vcmp.lt.s32.totalorder %v3554_v31, 0 }
 0x33d   : > { %vm5927_vm13 = vcmp.lt.s32.totalorder %v5926_v47, %v5281_v20  ;;  %v5283_v44 = vor.u32 %v4995_v46, %v10179_v10  ;;  %v4689_v26 = vsel %vm4113_vm10, %v4401_v48, %v3537_v14  ;;  %v6043_v56 = vsel %vm6042_vm11, %v6041_v9, %v5266_v27 }
 0x33e   : > { %v4994_v41 = vand.u32 4294967168, %v4689_v26  ;;  %v4691_v61 = vsel %vm4115_vm12, %v4403_v52, %v3539_v13  ;;  %v4418_v25 = vxor.u32 2147483647, %v3554_v31  ;;  %v5928_v3 = vsel %vm5927_vm13, %v5926_v47, %v5281_v20  ;;  %v10265_v13 = vld [vmem:[#allocation26_spill] sm:$0xff] }
 0x33f   : > { %vm6005_vm14 = vcmp.lt.s32.totalorder %v6004_v32, %v5283_v44  ;;  %v4996_v54 = vand.u32 4294967168, %v4691_v61  ;;  %v3556_v43 = vsub.f32 %v10178_v18, %v9515_v49  ;;  %v3555_v21 = vsub.f32 %v10178_v18, %v9517_v57  ;;  %v10263_v49 = vld [vmem:[#allocation12_spill] sm:$0xff]  ;;  %v10267_v61 = vld [vmem:[#allocation23_spill] sm:$0xff] }
 0x340   : > { %v5282_v59 = vor.u32 %v4994_v41, %v10179_v10  ;;  %v4706_v35 = vsel %vm4130_vm0, %v4418_v25, %v3554_v31  ;;  %v6006_v23 = vsel %vm6005_vm14, %v6004_v32, %v5283_v44  ;;  %v3557_v47 = vsub.f32 %v10178_v18, %v9519_v8  ;;  %v10266_v8 = vld [vmem:[#allocation9_spill] sm:$0xff] }
 0x341   : > { %v5284_v11 = vor.u32 %v4996_v54, %v10179_v10  ;;  %v5011_v9 = vand.u32 4294967168, %v4706_v35  ;;  %vm4132_vm15 = vcmp.lt.s32.totalorder %v3556_v43, 0  ;;  %v4420_v28 = vxor.u32 2147483647, %v3556_v43 }
 0x342   : > { %vm5966_vm1 = vcmp.lt.s32.totalorder %v5965_v34, %v5282_v59  ;;  %vm4131_vm2 = vcmp.lt.s32.totalorder %v3555_v21, 0  ;;  %v4419_v62 = vxor.u32 2147483647, %v3555_v21  ;;  %vm4133_vm4 = vcmp.lt.s32.totalorder %v3557_v47, 0 }
 0x343   : > { %vm6044_vm3 = vcmp.lt.s32.totalorder %v6043_v56, %v5284_v11  ;;  %v5299_v33 = vor.u32 %v5011_v9, %v10263_v49  ;;  %v4708_v36 = vsel %vm4132_vm15, %v4420_v28, %v3556_v43  ;;  %v5967_v16 = vsel %vm5966_vm1, %v5965_v34, %v5282_v59  ;;  %v10268_v9 = vld [vmem:[#allocation36_spill] sm:$0xff] }
 0x344   : > { %v5013_v2 = vand.u32 4294967168, %v4708_v36  ;;  %v4707_v32 = vsel %vm4131_vm2, %v4419_v62, %v3555_v21  ;;  %v4421_v57 = vxor.u32 2147483647, %v3557_v47  ;;  %v6045_v27 = vsel %vm6044_vm3, %v6043_v56, %v5284_v11  ;;  %v10269_v62 = vld [vmem:[#allocation13_spill] sm:$0xff] }
 0x345   : > { %vm5929_vm5 = vcmp.lt.s32.totalorder %v5928_v3, %v5299_v33  ;;  %v5012_v14 = vand.u32 4294967168, %v4707_v32  ;;  %v3572_v20 = vsub.f32 %v10265_v13, %v10264_v51  ;;  %v3574_v31 = vsub.f32 %v10265_v13, %v10266_v8  ;;  %v10271_v32 = vld [vmem:[#allocation27_spill] sm:$0xff] }
 0x346   : > { %v5301_v46 = vor.u32 %v5013_v2, %v10263_v49  ;;  %v4709_v48 = vsel %vm4133_vm4, %v4421_v57, %v3557_v47  ;;  %v5930_v52 = vsel %vm5929_vm5, %v5928_v3, %v5299_v33  ;;  %v3573_v56 = vsub.f32 %v10265_v13, %v10267_v61  ;;  %v10270_v2 = vld [vmem:[#allocation10_spill] sm:$0xff]  ;;  %v10273_v61 = vld [vmem:[#allocation37_spill] sm:$0xff] }
 0x347   : > { %v5300_v44 = vor.u32 %v5012_v14, %v10263_v49  ;;  %v5014_v34 = vand.u32 4294967168, %v4709_v48  ;;  %vm4148_vm6 = vcmp.lt.s32.totalorder %v3572_v20, 0  ;;  %v4436_v26 = vxor.u32 2147483647, %v3572_v20 }
 0x348   : > { %vm6007_vm7 = vcmp.lt.s32.totalorder %v6006_v23, %v5301_v46  ;;  %vm4150_vm8 = vcmp.lt.s32.totalorder %v3574_v31, 0  ;;  %v4438_v41 = vxor.u32 2147483647, %v3574_v31  ;;  %vm4149_vm10 = vcmp.lt.s32.totalorder %v3573_v56, 0 }
 0x349   : > { %vm5968_vm9 = vcmp.lt.s32.totalorder %v5967_v16, %v5300_v44  ;;  %v5302_v25 = vor.u32 %v5014_v34, %v10263_v49  ;;  %v4724_v54 = vsel %vm4148_vm6, %v4436_v26, %v3572_v20  ;;  %v6008_v43 = vsel %vm6007_vm7, %v6006_v23, %v5301_v46  ;;  %v10272_v46 = vld [vmem:[#allocation24_spill] sm:$0xff] }
 0x34a   : > { %v5029_v3 = vand.u32 4294967168, %v4724_v54  ;;  %v4726_v59 = vsel %vm4150_vm8, %v4438_v41, %v3574_v31  ;;  %v4437_v35 = vxor.u32 2147483647, %v3573_v56  ;;  %v5969_v11 = vsel %vm5968_vm9, %v5967_v16, %v5300_v44 }
 0x34b   : > { %vm6046_vm11 = vcmp.lt.s32.totalorder %v6045_v27, %v5302_v25  ;;  %v5031_v21 = vand.u32 4294967168, %v4726_v59  ;;  %v3575_v28 = vsub.f32 %v10265_v13, %v10268_v9  ;;  %v3590_v57 = vsub.f32 %v10271_v32, %v10270_v2  ;;  %v10274_v59 = vld [vmem:[#allocation38_spill] sm:$0xff] }
 0x34c   : > { %v5317_v47 = vor.u32 %v5029_v3, %v10269_v62  ;;  %v4725_v33 = vsel %vm4149_vm10, %v4437_v35, %v3573_v56  ;;  %v6047_v36 = vsel %vm6046_vm11, %v6045_v27, %v5302_v25  ;;  %v3592_v16 = vsub.f32 %v10271_v32, %v10272_v46 }
 0x34d   : > { %v5319_v14 = vor.u32 %v5031_v21, %v10269_v62  ;;  %v5030_v23 = vand.u32 4294967168, %v4725_v33  ;;  %vm4151_vm12 = vcmp.lt.s32.totalorder %v3575_v28, 0  ;;  %v4439_v51 = vxor.u32 2147483647, %v3575_v28  ;;  %v10275_v21 = vld [vmem:[#allocation14_spill] sm:$0xff] }
 0x34e   : > { %vm5931_vm13 = vcmp.lt.s32.totalorder %v5930_v52, %v5317_v47  ;;  %vm4166_vm0 = vcmp.lt.s32.totalorder %v3590_v57, 0  ;;  %v4454_v20 = vxor.u32 2147483647, %v3590_v57  ;;  %vm4168_vm15 = vcmp.lt.s32.totalorder %v3592_v16, 0 }
 0x34f   : > { %vm6009_vm14 = vcmp.lt.s32.totalorder %v6008_v43, %v5319_v14  ;;  %v5318_v48 = vor.u32 %v5030_v23, %v10269_v62  ;;  %v4727_v8 = vsel %vm4151_vm12, %v4439_v51, %v3575_v28  ;;  %v5932_v31 = vsel %vm5931_vm13, %v5930_v52, %v5317_v47 }
 0x350   : > { %v5032_v27 = vand.u32 4294967168, %v4727_v8  ;;  %v4742_v44 = vsel %vm4166_vm0, %v4454_v20, %v3590_v57  ;;  %v4456_v34 = vxor.u32 2147483647, %v3592_v16  ;;  %v6010_v41 = vsel %vm6009_vm14, %v6008_v43, %v5319_v14  ;;  %v10276_v43 = vld [vmem:[#allocation28_spill] sm:$0xff] }
 0x351   : > { %vm5970_vm1 = vcmp.lt.s32.totalorder %v5969_v11, %v5318_v48  ;;  %v5047_v26 = vand.u32 4294967168, %v4742_v44  ;;  %v3591_v56 = vsub.f32 %v10271_v32, %v10273_v61  ;;  %v3593_v35 = vsub.f32 %v10271_v32, %v10274_v59 }
 0x352   : > { %v5320_v25 = vor.u32 %v5032_v27, %v10269_v62  ;;  %v4744_v54 = vsel %vm4168_vm15, %v4456_v34, %v3592_v16  ;;  %v5971_v3 = vsel %vm5970_vm1, %v5969_v11, %v5318_v48  ;;  %v3608_v33 = vsub.f32 %v10276_v43, %v9554_v5 }
 0x353   : > { %v5335_v9 = vor.u32 %v5047_v26, %v10275_v21  ;;  %v5049_v52 = vand.u32 4294967168, %v4744_v54  ;;  %vm4167_vm2 = vcmp.lt.s32.totalorder %v3591_v56, 0  ;;  %v4455_v28 = vxor.u32 2147483647, %v3591_v56 }
 0x354   : > { %vm6048_vm3 = vcmp.lt.s32.totalorder %v6047_v36, %v5320_v25  ;;  %vm4169_vm4 = vcmp.lt.s32.totalorder %v3593_v35, 0  ;;  %v4457_v47 = vxor.u32 2147483647, %v3593_v35  ;;  %vm4184_vm6 = vcmp.lt.s32.totalorder %v3608_v33, 0 }
 0x355   : > { %vm5933_vm5 = vcmp.lt.s32.totalorder %v5932_v31, %v5335_v9  ;;  %v5337_v2 = vor.u32 %v5049_v52, %v10275_v21  ;;  %v4743_v57 = vsel %vm4167_vm2, %v4455_v28, %v3591_v56  ;;  %v6049_v14 = vsel %vm6048_vm3, %v6047_v36, %v5320_v25 }
 0x356   : > { %v5048_v11 = vand.u32 4294967168, %v4743_v57  ;;  %v4745_v23 = vsel %vm4169_vm4, %v4457_v47, %v3593_v35  ;;  %v4472_v51 = vxor.u32 2147483647, %v3608_v33  ;;  %v5934_v46 = vsel %vm5933_vm5, %v5932_v31, %v5335_v9  ;;  %v10278_v9 = vld [vmem:[#allocation29_spill] sm:$0xff] }
 0x357   : > { %vm6011_vm7 = vcmp.lt.s32.totalorder %v6010_v41, %v5337_v2  ;;  %v5050_v20 = vand.u32 4294967168, %v4745_v23  ;;  %v3610_v16 = vsub.f32 %v10276_v43, %v9560_v58  ;;  %v3609_v5 = vsub.f32 %v10276_v43, %v9562_v30  ;;  %v10277_v58 = vld [vmem:[#allocation15_spill] sm:$0xff] }
 0x358   : > { %v5336_v48 = vor.u32 %v5048_v11, %v10275_v21  ;;  %v4760_v8 = vsel %vm4184_vm6, %v4472_v51, %v3608_v33  ;;  %v6012_v27 = vsel %vm6011_vm7, %v6010_v41, %v5337_v2  ;;  %v3611_v31 = vsub.f32 %v10276_v43, %v9566_v6 }
 0x359   : > { %v5338_v44 = vor.u32 %v5050_v20, %v10275_v21  ;;  %v5065_v36 = vand.u32 4294967168, %v4760_v8  ;;  %vm4186_vm8 = vcmp.lt.s32.totalorder %v3610_v16, 0  ;;  %v4474_v34 = vxor.u32 2147483647, %v3610_v16 }
 0x35a   : > { %vm5972_vm9 = vcmp.lt.s32.totalorder %v5971_v3, %v5336_v48  ;;  %vm4185_vm10 = vcmp.lt.s32.totalorder %v3609_v5, 0  ;;  %v4473_v26 = vxor.u32 2147483647, %v3609_v5  ;;  %vm4187_vm12 = vcmp.lt.s32.totalorder %v3611_v31, 0 }
 0x35b   : > { %vm6050_vm11 = vcmp.lt.s32.totalorder %v6049_v14, %v5338_v44  ;;  %v5353_v61 = vor.u32 %v5065_v36, %v10277_v58  ;;  %v4762_v56 = vsel %vm4186_vm8, %v4474_v34, %v3610_v16  ;;  %v5973_v25 = vsel %vm5972_vm9, %v5971_v3, %v5336_v48 }
 0x35c   : > { %v5067_v41 = vand.u32 4294967168, %v4762_v56  ;;  %v4761_v54 = vsel %vm4185_vm10, %v4473_v26, %v3609_v5  ;;  %v4475_v30 = vxor.u32 2147483647, %v3611_v31  ;;  %v6051_v35 = vsel %vm6050_vm11, %v6049_v14, %v5338_v44  ;;  %v10279_v5 = vld [vmem:[#allocation16_spill] sm:$0xff] }
 0x35d   : > { %vm5935_vm13 = vcmp.lt.s32.totalorder %v5934_v46, %v5353_v61  ;;  %v5066_v59 = vand.u32 4294967168, %v4761_v54  ;;  %v3626_v52 = vsub.f32 %v10278_v9, %v9568_v24  ;;  %v3628_v6 = vsub.f32 %v10278_v9, %v9572_v15 }
 0x35e   : > { %v5355_v28 = vor.u32 %v5067_v41, %v10277_v58  ;;  %v4763_v47 = vsel %vm4187_vm12, %v4475_v30, %v3611_v31  ;;  %v5936_v33 = vsel %vm5935_vm13, %v5934_v46, %v5353_v61  ;;  %v3627_v14 = vsub.f32 %v10278_v9, %v9574_v1  ;;  %v10280_v1 = vld [vmem:[#allocation30_spill] sm:$0xff] }
 0x35f   : > { %v5354_v2 = vor.u32 %v5066_v59, %v10277_v58  ;;  %v5068_v3 = vand.u32 4294967168, %v4763_v47  ;;  %vm4202_vm0 = vcmp.lt.s32.totalorder %v3626_v52, 0  ;;  %v4490_v57 = vxor.u32 2147483647, %v3626_v52 }
 0x360   : > { %vm6013_vm14 = vcmp.lt.s32.totalorder %v6012_v27, %v5355_v28  ;;  %vm4204_vm15 = vcmp.lt.s32.totalorder %v3628_v6, 0  ;;  %v4492_v11 = vxor.u32 2147483647, %v3628_v6  ;;  %vm4203_vm2 = vcmp.lt.s32.totalorder %v3627_v14, 0 }
 0x361   : > { %vm5974_vm1 = vcmp.lt.s32.totalorder %v5973_v25, %v5354_v2  ;;  %v5356_v24 = vor.u32 %v5068_v3, %v10277_v58  ;;  %v4778_v23 = vsel %vm4202_vm0, %v4490_v57, %v3626_v52  ;;  %v6014_v51 = vsel %vm6013_vm14, %v6012_v27, %v5355_v28  ;;  %v10281_v3 = vld [vmem:[#allocation17_spill] sm:$0xff] }
 0x362   : > { %v5083_v20 = vand.u32 4294967168, %v4778_v23  ;;  %v4780_v46 = vsel %vm4204_vm15, %v4492_v11, %v3628_v6  ;;  %v4491_v15 = vxor.u32 2147483647, %v3627_v14  ;;  %v5975_v48 = vsel %vm5974_vm1, %v5973_v25, %v5354_v2  ;;  %v10282_v23 = vld [vmem:[#allocation31_spill] sm:$0xff] }
 0x363   : > { %vm6052_vm3 = vcmp.lt.s32.totalorder %v6051_v35, %v5356_v24  ;;  %v5085_v16 = vand.u32 4294967168, %v4780_v46  ;;  %v3629_v8 = vsub.f32 %v10278_v9, %v9578_v29  ;;  %v3644_v26 = vsub.f32 %v10280_v1, %v9593_v0 }
 0x364   : > { %v5371_v44 = vor.u32 %v5083_v20, %v10279_v5  ;;  %v4779_v36 = vsel %vm4203_vm2, %v4491_v15, %v3627_v14  ;;  %v6053_v34 = vsel %vm6052_vm3, %v6051_v35, %v5356_v24  ;;  %v3646_v25 = vsub.f32 %v10280_v1, %v9595_v22 }
 0x365   : > { %v5373_v31 = vor.u32 %v5085_v16, %v10279_v5  ;;  %v5084_v27 = vand.u32 4294967168, %v4779_v36  ;;  %vm4205_vm4 = vcmp.lt.s32.totalorder %v3629_v8, 0  ;;  %v4493_v61 = vxor.u32 2147483647, %v3629_v8 }
 0x366   : > { %vm5937_vm5 = vcmp.lt.s32.totalorder %v5936_v33, %v5371_v44  ;;  %vm4220_vm6 = vcmp.lt.s32.totalorder %v3644_v26, 0  ;;  %v4508_v56 = vxor.u32 2147483647, %v3644_v26  ;;  %vm4222_vm8 = vcmp.lt.s32.totalorder %v3646_v25, 0 }
 0x367   : > { %vm6015_vm7 = vcmp.lt.s32.totalorder %v6014_v51, %v5373_v31  ;;  %v5372_v29 = vor.u32 %v5084_v27, %v10279_v5  ;;  %v4781_v41 = vsel %vm4205_vm4, %v4493_v61, %v3629_v8  ;;  %v5938_v54 = vsel %vm5937_vm5, %v5936_v33, %v5371_v44  ;;  %v10283_v61 = vld [vmem:[#allocation40_spill] sm:$0xff] }
 0x368   : > { %v5086_v30 = vand.u32 4294967168, %v4781_v41  ;;  %v4796_v59 = vsel %vm4220_vm6, %v4508_v56, %v3644_v26  ;;  %v4510_v0 = vxor.u32 2147483647, %v3646_v25  ;;  %v6016_v52 = vsel %vm6015_vm7, %v6014_v51, %v5373_v31 }
 0x369   : > { %vm5976_vm9 = vcmp.lt.s32.totalorder %v5975_v48, %v5372_v29  ;;  %v5101_v35 = vand.u32 4294967168, %v4796_v59  ;;  %v3645_v28 = vsub.f32 %v10280_v1, %v9600_v42  ;;  %v3647_v22 = vsub.f32 %v10280_v1, %v9602_v39 }
 0x36a   : > { %v5374_v47 = vor.u32 %v5086_v30, %v10279_v5  ;;  %v4798_v6 = vsel %vm4222_vm8, %v4510_v0, %v3646_v25  ;;  %v5977_v2 = vsel %vm5976_vm9, %v5975_v48, %v5372_v29  ;;  %v3662_v42 = vsub.f32 %v10282_v23, %v9604_v53  ;;  %v10284_v30 = vld [vmem:[#allocation41_spill] sm:$0xff]  ;;  %v10289_v5 = vld [vmem:[#allocation19_spill] sm:$0xff] }
 0x36b   : > { %v5389_v57 = vor.u32 %v5101_v35, %v10281_v3  ;;  %v5103_v33 = vand.u32 4294967168, %v4798_v6  ;;  %vm4221_vm10 = vcmp.lt.s32.totalorder %v3645_v28, 0  ;;  %v4509_v11 = vxor.u32 2147483647, %v3645_v28  ;;  %v9749_v14 = vpop.f32.mrb[128].mxu0  ;;  %v10285_v6 = vld [vmem:[#allocation18_spill] sm:$0xff] }
 0x36c   : > { %vm6054_vm11 = vcmp.lt.s32.totalorder %v6053_v34, %v5374_v47  ;;  %vm4223_vm12 = vcmp.lt.s32.totalorder %v3647_v22, 0  ;;  %v4511_v24 = vxor.u32 2147483647, %v3647_v22  ;;  %v9753_v51 = vpop.f32.mrb[129].mxu0  ;;  %v9755_v20 = vpop.f32.mrb[128].mxu1  ;;  %vm4238_vm0 = vcmp.lt.s32.totalorder %v3662_v42, 0 }
 0x36d   : > { %vm5939_vm13 = vcmp.lt.s32.totalorder %v5938_v54, %v5389_v57  ;;  %v5391_v39 = vor.u32 %v5103_v33, %v10281_v3  ;;  %v4797_v46 = vsel %vm4221_vm10, %v4509_v11, %v3645_v28  ;;  %v6055_v15 = vsel %vm6054_vm11, %v6053_v34, %v5374_v47  ;;  %v9758_v16 = vpop.f32.mrb[130].mxu0  ;;  %v9760_v48 = vpop.f32.mrb[129].mxu1 }
 0x36e   : > { %v5102_v8 = vand.u32 4294967168, %v4797_v46  ;;  %v4799_v44 = vsel %vm4223_vm12, %v4511_v24, %v3647_v22  ;;  %v4526_v36 = vxor.u32 2147483647, %v3662_v42  ;;  %v9762_v26 = vpop.f32.mrb[131].mxu0  ;;  %v9764_v53 = vpop.f32.mrb[130].mxu1  ;;  %v5940_v27 = vsel %vm5939_vm13, %v5938_v54, %v5389_v57 }
 0x36f   : > { %vm6017_vm14 = vcmp.lt.s32.totalorder %v6016_v52, %v5391_v39  ;;  %v5104_v31 = vand.u32 4294967168, %v4799_v44  ;;  %v3664_v56 = vsub.f32 %v10282_v23, %v10283_v61  ;;  %v9768_v25 = vpop.f32.mrb[131].mxu1  ;;  %v3663_v59 = vsub.f32 %v10282_v23, %v10284_v30  ;;  %v10288_v30 = vld [vmem:[#allocation42_spill] sm:$0xff] }
 0x370   : > { %v5390_v34 = vor.u32 %v5102_v8, %v10281_v3  ;;  %v4814_v29 = vsel %vm4238_vm0, %v4526_v36, %v3662_v42  ;;  %v6018_v41 = vsel %vm6017_vm14, %v6016_v52, %v5391_v39  ;;  %v3665_v47 = vsub.f32 %v10282_v23, %v9612_v60  ;;  %v10286_v36 = vld [vmem:[#allocation6_spill] sm:$0xff]  ;;  %v10287_v60 = vld [vmem:[#allocation32_spill] sm:$0xff] }
 0x371   : > { %v5392_v0 = vor.u32 %v5104_v31, %v10281_v3  ;;  %v5119_v35 = vand.u32 4294967168, %v4814_v29  ;;  %vm4240_vm15 = vcmp.lt.s32.totalorder %v3664_v56, 0  ;;  %v4528_v28 = vxor.u32 2147483647, %v3664_v56 }
 0x372   : > { %vm5978_vm1 = vcmp.lt.s32.totalorder %v5977_v2, %v5390_v34  ;;  %vm4239_vm2 = vcmp.lt.s32.totalorder %v3663_v59, 0  ;;  %v4527_v54 = vxor.u32 2147483647, %v3663_v59  ;;  %vm4241_vm4 = vcmp.lt.s32.totalorder %v3665_v47, 0 }
 0x373   : > { %vm6056_vm3 = vcmp.lt.s32.totalorder %v6055_v15, %v5392_v0  ;;  %v5407_v22 = vor.u32 %v5119_v35, %v10285_v6  ;;  %v4816_v57 = vsel %vm4240_vm15, %v4528_v28, %v3664_v56  ;;  %v5979_v33 = vsel %vm5978_vm1, %v5977_v2, %v5390_v34  ;;  %v9777_v52 = vpop.f32.mrb[132].mxu0 }
 0x374   : > { %v5121_v11 = vand.u32 4294967168, %v4816_v57  ;;  %v4815_v24 = vsel %vm4239_vm2, %v4527_v54, %v3663_v59  ;;  %v4529_v42 = vxor.u32 2147483647, %v3665_v47  ;;  %v9781_v46 = vpop.f32.mrb[133].mxu0  ;;  %v6057_v44 = vsel %vm6056_vm3, %v6055_v15, %v5392_v0 }
 0x375   : > { %v9779_v39 = vpop.f32.mrb[132].mxu1  ;;  %vm5941_vm5 = vcmp.lt.s32.totalorder %v5940_v27, %v5407_v22  ;;  %v5120_v8 = vand.u32 4294967168, %v4815_v24  ;;  %v3680_v31 = vsub.f32 %v10287_v60, %v10286_v36  ;;  %v9787_v56 = vpop.f32.mrb[134].mxu0  ;;  %v3682_v59 = vsub.f32 %v10287_v60, %v10288_v30 }
 0x376   : > { %v9785_v61 = vpop.f32.mrb[133].mxu1  ;;  %v5409_v2 = vor.u32 %v5121_v11, %v10285_v6  ;;  %v4817_v34 = vsel %vm4241_vm4, %v4529_v42, %v3665_v47  ;;  %v5942_v29 = vsel %vm5941_vm5, %v5940_v27, %v5407_v22  ;;  %v9794_v28 = vpop.f32.mrb[135].mxu0  ;;  %v3681_v27 = vsub.f32 %v10287_v60, %v9629_v4 }
 0x377   : > { %v9792_v35 = vpop.f32.mrb[134].mxu1  ;;  %v5408_v15 = vor.u32 %v5120_v8, %v10285_v6  ;;  %v5122_v0 = vand.u32 4294967168, %v4817_v34  ;;  %vm4256_vm6 = vcmp.lt.s32.totalorder %v3680_v31, 0  ;;  %v4544_v54 = vxor.u32 2147483647, %v3680_v31 }
 0x378   : > { %v9797_v57 = vpop.f32.mrb[135].mxu1  ;;  %vm6019_vm7 = vcmp.lt.s32.totalorder %v6018_v41, %v5409_v2  ;;  %vm4258_vm8 = vcmp.lt.s32.totalorder %v3682_v59, 0  ;;  %v4546_v24 = vxor.u32 2147483647, %v3682_v59  ;;  %vm4257_vm10 = vcmp.lt.s32.totalorder %v3681_v27, 0 }
 0x379   : > { %vm5980_vm9 = vcmp.lt.s32.totalorder %v5979_v33, %v5408_v15  ;;  %v5410_v47 = vor.u32 %v5122_v0, %v10285_v6  ;;  %v4832_v22 = vsel %vm4256_vm6, %v4544_v54, %v3680_v31  ;;  %v6020_v11 = vsel %vm6019_vm7, %v6018_v41, %v5409_v2  ;;  %v10290_v0 = vld [vmem:[#allocation33_spill] sm:$0xff] }
 0x37a   : > { %v5137_v42 = vand.u32 4294967168, %v4832_v22  ;;  %v4834_v36 = vsel %vm4258_vm8, %v4546_v24, %v3682_v59  ;;  %v4545_v8 = vxor.u32 2147483647, %v3681_v27  ;;  %v5981_v30 = vsel %vm5980_vm9, %v5979_v33, %v5408_v15 }
 0x37b   : > { %vm6058_vm11 = vcmp.lt.s32.totalorder %v6057_v44, %v5410_v47  ;;  %v5139_v34 = vand.u32 4294967168, %v4834_v36  ;;  %v3683_v3 = vsub.f32 %v10287_v60, %v9631_v40  ;;  %v9804_v49 = vpop.f32.mrb[136].mxu0  ;;  %v3698_v31 = vsub.f32 %v10290_v0, %v9633_v19 }
 0x37c   : > { %v5425_v18 = vor.u32 %v5137_v42, %v10289_v5  ;;  %v4833_v4 = vsel %vm4257_vm10, %v4545_v8, %v3681_v27  ;;  %v6059_v10 = vsel %vm6058_vm11, %v6057_v44, %v5410_v47  ;;  %v9811_v2 = vpop.f32.mrb[137].mxu0  ;;  %v3700_v44 = vsub.f32 %v10290_v0, %v9635_v63 }
 0x37d   : > { %v9809_v41 = vpop.f32.mrb[136].mxu1  ;;  %v5427_v59 = vor.u32 %v5139_v34, %v10289_v5  ;;  %v5138_v54 = vand.u32 4294967168, %v4833_v4  ;;  %vm4259_vm12 = vcmp.lt.s32.totalorder %v3683_v3, 0  ;;  %v4547_v33 = vxor.u32 2147483647, %v3683_v3  ;;  %v9816_v40 = vpop.f32.mrb[138].mxu0 }
 0x37e   : > { %v9814_v15 = vpop.f32.mrb[137].mxu1  ;;  %vm5943_vm13 = vcmp.lt.s32.totalorder %v5942_v29, %v5425_v18  ;;  %vm4274_vm0 = vcmp.lt.s32.totalorder %v3698_v31, 0  ;;  %v4562_v24 = vxor.u32 2147483647, %v3698_v31  ;;  %v9822_v27 = vpop.f32.mrb[139].mxu0  ;;  %vm4276_vm15 = vcmp.lt.s32.totalorder %v3700_v44, 0 }
 0x37f   : > { %v9820_v19 = vpop.f32.mrb[138].mxu1  ;;  %vm6021_vm14 = vcmp.lt.s32.totalorder %v6020_v11, %v5427_v59  ;;  %v5426_v47 = vor.u32 %v5138_v54, %v10289_v5  ;;  %v4835_v22 = vsel %vm4259_vm12, %v4547_v33, %v3683_v3  ;;  %v5944_v42 = vsel %vm5943_vm13, %v5942_v29, %v5425_v18  ;;  %v10293_v18 = vld [vmem:[#allocation20_spill] sm:$0xff] }
 0x380   : > { %10291 = vst [vmem:[#allocation22_spill] sm:$0xff] %v9820_v19  ;;  %v9825_v36 = vpop.f32.mrb[139].mxu1  ;;  %v5140_v8 = vand.u32 4294967168, %v4835_v22  ;;  %v4850_v34 = vsel %vm4274_vm0, %v4562_v24, %v3698_v31  ;;  %v4564_v4 = vxor.u32 2147483647, %v3700_v44  ;;  %v6022_v60 = vsel %vm6021_vm14, %v6020_v11, %v5427_v59  ;;  %v10294_v59 = vld [vmem:[#allocation2_spill] sm:$0xff] }
 0x381   : > { %10292 = vst [vmem:[#allocation35_spill] sm:$0xff] %v9825_v36  ;;  %vm5982_vm1 = vcmp.lt.s32.totalorder %v5981_v30, %v5426_v47  ;;  %v5155_v6 = vand.u32 4294967168, %v4850_v34  ;;  %v3699_v63 = vsub.f32 %v10290_v0, %v9637_v37  ;;  %v3701_v3 = vsub.f32 %v10290_v0, %v9639_v55 }
 0x382   : > { %v5428_v23 = vor.u32 %v5140_v8, %v10289_v5  ;;  %v4852_v19 = vsel %vm4276_vm15, %v4564_v4, %v3700_v44  ;;  %v5983_v58 = vsel %vm5982_vm1, %v5981_v30, %v5426_v47  ;;  %v3432_v37 = vsub.f32 %v10294_v59, %v9749_v14 }
 0x383   : > { %v5443_v29 = vor.u32 %v5155_v6, %v10293_v18  ;;  %v5157_v54 = vand.u32 4294967168, %v4852_v19  ;;  %vm4275_vm2 = vcmp.lt.s32.totalorder %v3699_v63, 0  ;;  %v4563_v31 = vxor.u32 2147483647, %v3699_v63  ;;  %v9833_v33 = vpop.f32.mrb[140].mxu0 }
 0x384   : > { %vm6060_vm3 = vcmp.lt.s32.totalorder %v6059_v10, %v5428_v23  ;;  %vm4277_vm4 = vcmp.lt.s32.totalorder %v3701_v3, 0  ;;  %v4565_v11 = vxor.u32 2147483647, %v3701_v3  ;;  %v9839_v44 = vpop.f32.mrb[141].mxu0  ;;  %vm4008_vm6 = vcmp.lt.s32.totalorder %v3432_v37, 0 }
 0x385   : > { %v9837_v24 = vpop.f32.mrb[140].mxu1  ;;  %vm5945_vm5 = vcmp.lt.s32.totalorder %v5944_v42, %v5443_v29  ;;  %v5445_v55 = vor.u32 %v5157_v54, %v10293_v18  ;;  %v4851_v30 = vsel %vm4275_vm2, %v4563_v31, %v3699_v63  ;;  %v6061_v6 = vsel %vm6060_vm3, %v6059_v10, %v5428_v23  ;;  %v9844_v47 = vpop.f32.mrb[142].mxu0  ;;  %v10299_v31 = vld [vmem:[#allocation7_spill] sm:$0xff] }
 0x386   : > { %10295 = vst [vmem:[#allocation26_spill] sm:$0xff] %v9837_v24  ;;  %v9842_v19 = vpop.f32.mrb[141].mxu1  ;;  %v5946_v22 = vsel %vm5945_vm5, %v5944_v42, %v5443_v29  ;;  %v5156_v8 = vand.u32 4294967168, %v4851_v30  ;;  %v4853_v34 = vsel %vm4277_vm4, %v4565_v11, %v3701_v3  ;;  %v9848_v14 = vpop.f32.mrb[143].mxu0  ;;  %v4296_v24 = vxor.u32 2147483647, %v3432_v37 }
 0x387   : > { %10296 = vst [vmem:[#allocation9_spill] sm:$0xff] %v9842_v19  ;;  %v9846_v4 = vpop.f32.mrb[142].mxu1  ;;  %v5947_v5 = vrot.slane %v5946_v22, 4  ;;  %vm6023_vm7 = vcmp.lt.s32.totalorder %v6022_v60, %v5445_v55  ;;  %v5158_v0 = vand.u32 4294967168, %v4853_v34  ;;  %v3433_v23 = vsub.f32 %v10294_v59, %v9753_v51 }
 0x388   : > { %10297 = vst [vmem:[#allocation23_spill] sm:$0xff] %v9846_v4  ;;  %v9850_v36 = vpop.f32.mrb[143].mxu1  ;;  %v6024_v63 = vsel %vm6023_vm7, %v6022_v60, %v5445_v55  ;;  %v5444_v10 = vor.u32 %v5156_v8, %v10293_v18  ;;  %v4584_v54 = vsel %vm4008_vm6, %v4296_v24, %v3432_v37  ;;  %v3450_v11 = vsub.f32 %v10299_v31, %v9758_v16 }
 0x389   : > { %10298 = vst [vmem:[#allocation36_spill] sm:$0xff] %v9850_v36  ;;  %vm5948_vm8 = vcmp.lt.s32.totalorder %v5946_v22, %v5947_v5  ;;  %v6025_v42 = vrot.slane %v6024_v63, 4  ;;  %v5446_v3 = vor.u32 %v5158_v0, %v10293_v18  ;;  %vm4009_vm12 = vcmp.lt.s32.totalorder %v3433_v23, 0 }
 0x38a   : > { %v5949_v29 = vsel %vm5948_vm8, %v5946_v22, %v5947_v5  ;;  %vm5984_vm9 = vcmp.lt.s32.totalorder %v5983_v58, %v5444_v10  ;;  %v4297_v36 = vxor.u32 2147483647, %v3433_v23  ;;  %vm4026_vm14 = vcmp.lt.s32.totalorder %v3450_v11, 0 }
 0x38b   : > { %v5950_v30 = vrot.slane %v5949_v29, 2  ;;  %vm6026_vm10 = vcmp.lt.s32.totalorder %v6024_v63, %v6025_v42  ;;  %v5985_v34 = vsel %vm5984_vm9, %v5983_v58, %v5444_v10  ;;  %vm6062_vm11 = vcmp.lt.s32.totalorder %v6061_v6, %v5446_v3 }
 0x38c   : > { %v6027_v60 = vsel %vm6026_vm10, %v6024_v63, %v6025_v42  ;;  %v5986_v55 = vrot.slane %v5985_v34, 4  ;;  %v6063_v8 = vsel %vm6062_vm11, %v6061_v6, %v5446_v3  ;;  %v4314_v5 = vxor.u32 2147483647, %v3450_v11 }
 0x38d   : > { %vm5951_vm13 = vcmp.lt.s32.totalorder %v5949_v29, %v5950_v30  ;;  %v6028_v51 = vrot.slane %v6027_v60, 2  ;;  %v6064_v59 = vrot.slane %v6063_v8, 4  ;;  %v4889_v6 = vand.u32 4294967168, %v4584_v54 }
 0x38e   : > { %v5952_v0 = vsel %vm5951_vm13, %v5949_v29, %v5950_v30  ;;  %vm5987_vm0 = vcmp.lt.s32.totalorder %v5985_v34, %v5986_v55  ;;  %v4585_v42 = vsel %vm4009_vm12, %v4297_v36, %v3433_v23  ;;  %v4602_v3 = vsel %vm4026_vm14, %v4314_v5, %v3450_v11 }
 0x38f   : > { %v5953_v37 = vrot.slane %v5952_v0, 1  ;;  %vm6029_vm15 = vcmp.lt.s32.totalorder %v6027_v60, %v6028_v51  ;;  %v5988_v24 = vsel %vm5987_vm0, %v5985_v34, %v5986_v55  ;;  %vm6065_vm1 = vcmp.lt.s32.totalorder %v6063_v8, %v6064_v59 }
 0x390   : > { %v6030_v16 = vsel %vm6029_vm15, %v6027_v60, %v6028_v51  ;;  %v5989_v22 = vrot.slane %v5988_v24, 2  ;;  %v6066_v58 = vsel %vm6065_vm1, %v6063_v8, %v6064_v59  ;;  %v3451_v29 = vsub.f32 %v10299_v31, %v9762_v26  ;;  %v10300_v8 = vld [vmem:[#allocation3_spill] sm:$0xff]  ;;  %v10301_v26 = vld [vmem:[#allocation4_spill] sm:$0xff] }
 0x391   : > { %vm5954_vm2 = vcmp.lt.s32.totalorder %v5952_v0, %v5953_v37  ;;  %v6031_v63 = vrot.slane %v6030_v16, 1  ;;  %v6067_v10 = vrot.slane %v6066_v58, 2  ;;  %v5177_v59 = vor.u32 %v4889_v6, %v10300_v8  ;;  %v10302_v6 = vld [vmem:[#allocation34_spill] sm:$0xff] }
 0x392   : > { %vm5990_vm3 = vcmp.lt.s32.totalorder %v5988_v24, %v5989_v22  ;;  %v5955_v30 = vsel %vm5954_vm2, %v5952_v0, %v5953_v37  ;;  %v4907_v4 = vand.u32 4294967168, %v4602_v3  ;;  %vm4027_vm6 = vcmp.lt.s32.totalorder %v3451_v29, 0 }
 0x393   : > { %vm6032_vm4 = vcmp.lt.s32.totalorder %v6030_v16, %v6031_v63  ;;  %v5991_v18 = vsel %vm5990_vm3, %v5988_v24, %v5989_v22  ;;  %vm6068_vm5 = vcmp.lt.s32.totalorder %v6066_v58, %v6067_v10  ;;  %v6163_v54 = vand.u32 127, %v5955_v30 }
 0x394   : > { %v6033_v34 = vsel %vm6032_vm4, %v6030_v16, %v6031_v63  ;;  %v5992_v55 = vrot.slane %v5991_v18, 1  ;;  %v6069_v60 = vsel %vm6068_vm5, %v6066_v58, %v6067_v10  ;;  %v4890_v19 = vand.u32 4294967168, %v4585_v42 }
 0x395   : > { %v6070_v51 = vrot.slane %v6069_v60, 1  ;;  %v4315_v36 = vxor.u32 2147483647, %v3451_v29  ;;  %v6165_v23 = vand.u32 127, %v6033_v34  ;;  %v5195_v31 = vor.u32 %v4907_v4, %v10301_v26  ;;  %v10303_v4 = vld [vmem:[#allocation8_spill] sm:$0xff]  ;;  %v10304_v34 = vld [vmem:[#allocation39_spill] sm:$0xff] }
 0x396   : > { %vm5993_vm7 = vcmp.lt.s32.totalorder %v5991_v18, %v5992_v55  ;;  %v5178_v63 = vor.u32 %v4890_v19, %v10300_v8  ;;  %v3468_v30 = vsub.f32 %v10303_v4, %v9777_v52 }
 0x397   : > { %v5994_v11 = vsel %vm5993_vm7, %v5991_v18, %v5992_v55  ;;  %vm6071_vm8 = vcmp.lt.s32.totalorder %v6069_v60, %v6070_v51  ;;  %v4603_v37 = vsel %vm4027_vm6, %v4315_v36, %v3451_v29  ;;  %vm6073_vm9 = vcmp.lt.s32.totalorder %v5177_v59, %v5195_v31 }
 0x398   : > { %v6164_v0 = vand.u32 127, %v5994_v11  ;;  %v6072_v5 = vsel %vm6071_vm8, %v6069_v60, %v6070_v51  ;;  %v4908_v16 = vand.u32 4294967168, %v4603_v37  ;;  %v6074_v29 = vsel %vm6073_vm9, %v5177_v59, %v5195_v31  ;;  %v10306_v37 = vld [vmem:[#allocation5_spill] sm:$0xff] }
 0x399   : > { %v6166_v24 = vand.u32 127, %v6072_v5  ;;  %v6258_v55 = vrot.slane %v10304_v34, %v10302_v6  ;;  %v3469_v60 = vsub.f32 %v10303_v4, %v9781_v46  ;;  %v3576_v51 = vsub.f32 %v10265_v13, %v9755_v20 }
 0x39a   : > { %v6220_v22 = vcombine.low %v6163_v54, %v6164_v0  ;;  %v5196_v10 = vor.u32 %v4908_v16, %v10301_v26  ;;  %vm4044_vm11 = vcmp.lt.s32.totalorder %v3468_v30, 0  ;;  %v4332_v8 = vxor.u32 2147483647, %v3468_v30  ;;  %v10305_v0 = vld [vmem:[#allocation21_spill] sm:$0xff] }
 0x39b   : > { %v6221_v58 = vcombine.low %v6165_v23, %v6166_v24  ;;  %vm4045_vm12 = vcmp.lt.s32.totalorder %v3469_v60, 0  ;;  %v4333_v54 = vxor.u32 2147483647, %v3469_v60  ;;  %v3577_v59 = vsub.f32 %v10265_v13, %v9760_v48 }
 0x39c   : > { %v6242_v42 = vrot.slane %v6220_v22, %v10302_v6  ;;  %vm6112_vm10 = vcmp.lt.s32.totalorder %v5178_v63, %v5196_v10  ;;  %v4620_v23 = vsel %vm4044_vm11, %v4332_v8, %v3468_v30  ;;  %v4440_v31 = vxor.u32 2147483647, %v3576_v51 }
 0x39d   : > { %v6249_v3 = vrot.slane %v6221_v58, %v10302_v6  ;;  %v6113_v52 = vsel %vm6112_vm10, %v5178_v63, %v5196_v10  ;;  %v4925_v11 = vand.u32 4294967168, %v4620_v23  ;;  %v4621_v26 = vsel %vm4045_vm12, %v4333_v54, %v3469_v60 }
 0x39e   : > { %v4926_v46 = vand.u32 4294967168, %v4621_v26  ;;  %v3486_v5 = vsub.f32 %v10305_v0, %v9787_v56  ;;  %vm4152_vm13 = vcmp.lt.s32.totalorder %v3576_v51, 0  ;;  %v3594_v20 = vsub.f32 %v10271_v32, %v9764_v53 }
 0x39f   : > { %v6251_v18 = vcombine.low %v6242_v42, %v6249_v3  ;;  %v5213_v24 = vor.u32 %v4925_v11, %v10306_v37  ;;  %v3487_v16 = vsub.f32 %v10305_v0, %v9794_v28  ;;  %v3595_v13 = vsub.f32 %v10271_v32, %v9768_v25 }
 0x3a0   : > { %v5214_v48 = vor.u32 %v4926_v46, %v10306_v37  ;;  %vm4062_vm0 = vcmp.lt.s32.totalorder %v3486_v5, 0  ;;  %v4350_v22 = vxor.u32 2147483647, %v3486_v5  ;;  %vm4153_vm14 = vcmp.lt.s32.totalorder %v3577_v59, 0 }
 0x3a1   : > { %v6265_v19 = vrot.slane %v6251_v18, %v10302_v6  ;;  %v4441_v58 = vxor.u32 2147483647, %v3577_v59  ;;  %vm6075_vm15 = vcmp.lt.s32.totalorder %v6074_v29, %v5213_v24  ;;  %v4728_v56 = vsel %vm4152_vm13, %v4440_v31, %v3576_v51 }
 0x3a2   : > { %vm6114_vm1 = vcmp.lt.s32.totalorder %v6113_v52, %v5214_v48  ;;  %v4638_v63 = vsel %vm4062_vm0, %v4350_v22, %v3486_v5  ;;  %v6076_v10 = vsel %vm6075_vm15, %v6074_v29, %v5213_v24  ;;  %v4458_v53 = vxor.u32 2147483647, %v3594_v20 }
 0x3a3   : > { %v6266_v36 = vcombine.low %v6258_v55, %v6265_v19  ;;  %v4943_v42 = vand.u32 4294967168, %v4638_v63  ;;  %vm4063_vm2 = vcmp.lt.s32.totalorder %v3487_v16, 0  ;;  %v4351_v3 = vxor.u32 2147483647, %v3487_v16 }
 0x3a4   : > { %vm4170_vm3 = vcmp.lt.s32.totalorder %v3594_v20, 0  ;;  %v4459_v28 = vxor.u32 2147483647, %v3595_v13  ;;  %v6115_v18 = vsel %vm6114_vm1, %v6113_v52, %v5214_v48  ;;  %vm4171_vm4 = vcmp.lt.s32.totalorder %v3595_v13, 0 }
 0x3a5   : > { %6283 = vst [vmem:[%s9165_s30 + $0x8] sm:$0xff] %v6266_v36  ;;  %v5231_v32 = vor.u32 %v4943_v42, %v10257_v50  ;;  %v4639_v25 = vsel %vm4063_vm2, %v4351_v3, %v3487_v16  ;;  %v3504_v4 = vsub.f32 %v10262_v17, %v9804_v49  ;;  %v5033_v30 = vand.u32 4294967168, %v4728_v56 }
 0x3a6   : > { %v4729_v34 = vsel %vm4153_vm14, %v4441_v58, %v3577_v59  ;;  %v4944_v55 = vand.u32 4294967168, %v4639_v25  ;;  %v4746_v60 = vsel %vm4170_vm3, %v4458_v53, %v3594_v20  ;;  %v4747_v19 = vsel %vm4171_vm4, %v4459_v28, %v3595_v13 }
 0x3a7   : > { %vm6077_vm5 = vcmp.lt.s32.totalorder %v6076_v10, %v5231_v32  ;;  %vm4080_vm6 = vcmp.lt.s32.totalorder %v3504_v4, 0  ;;  %v4368_v29 = vxor.u32 2147483647, %v3504_v4  ;;  %v3612_v51 = vsub.f32 %v10276_v43, %v9779_v39 }
 0x3a8   : > { %v5232_v8 = vor.u32 %v4944_v55, %v10257_v50  ;;  %v6078_v54 = vsel %vm6077_vm5, %v6076_v10, %v5231_v32  ;;  %v5034_v36 = vand.u32 4294967168, %v4729_v34  ;;  %v3505_v49 = vsub.f32 %v10262_v17, %v9811_v2  ;;  %v10307_v55 = vld [vmem:[#allocation15_spill] sm:$0xff] }
 0x3a9   : > { %v4656_v23 = vsel %vm4080_vm6, %v4368_v29, %v3504_v4  ;;  %v5051_v52 = vand.u32 4294967168, %v4746_v60  ;;  %v3522_v11 = vsub.f32 %v10213_v38, %v9816_v40  ;;  %v9902_v26 = vor.u32 %v5033_v30, %v10269_v62 }
 0x3aa   : > { %vm6116_vm7 = vcmp.lt.s32.totalorder %v6115_v18, %v5232_v8  ;;  %v4961_v59 = vand.u32 4294967168, %v4656_v23  ;;  %v5052_v31 = vand.u32 4294967168, %v4747_v19  ;;  %vm4081_vm8 = vcmp.lt.s32.totalorder %v3505_v49, 0 }
 0x3ab   : > { %v4369_v39 = vxor.u32 2147483647, %v3505_v49  ;;  %vm4188_vm9 = vcmp.lt.s32.totalorder %v3612_v51, 0  ;;  %v4476_v50 = vxor.u32 2147483647, %v3612_v51  ;;  %v6117_v0 = vsel %vm6116_vm7, %v6115_v18, %v5232_v8  ;;  %v10309_v8 = vld [vmem:[#allocation31_spill] sm:$0xff] }
 0x3ac   : > { %v5249_v46 = vor.u32 %v4961_v59, %v10212_v12  ;;  %v3613_v17 = vsub.f32 %v10276_v43, %v9785_v61  ;;  %vm4098_vm10 = vcmp.lt.s32.totalorder %v3522_v11, 0  ;;  %v4386_v5 = vxor.u32 2147483647, %v3522_v11 }
 0x3ad   : > { %v4657_v2 = vsel %vm4081_vm8, %v4369_v39, %v3505_v49  ;;  %v9908_v20 = vor.u32 %v5034_v36, %v10269_v62  ;;  %v9911_v40 = vor.u32 %v5051_v52, %v10275_v21  ;;  %v3630_v24 = vsub.f32 %v10278_v9, %v9792_v35 }
 0x3ae   : > { %vm6079_vm11 = vcmp.lt.s32.totalorder %v6078_v54, %v5249_v46  ;;  %v4962_v37 = vand.u32 4294967168, %v4657_v2  ;;  %v4674_v16 = vsel %vm4098_vm10, %v4386_v5, %v3522_v11  ;;  %v3523_v48 = vsub.f32 %v10213_v38, %v9822_v27 }
 0x3af   : > { %v6080_v13 = vsel %vm6079_vm11, %v6078_v54, %v5249_v46  ;;  %v9918_v43 = vor.u32 %v5052_v31, %v10275_v21  ;;  %v4764_v61 = vsel %vm4188_vm9, %v4476_v50, %v3612_v51  ;;  %v4979_v22 = vand.u32 4294967168, %v4674_v16  ;;  %v10308_v51 = vld [vmem:[#allocation22_spill] sm:$0xff] }
 0x3b0   : > { %v5250_v62 = vor.u32 %v4962_v37, %v10212_v12  ;;  %vm4189_vm12 = vcmp.lt.s32.totalorder %v3613_v17, 0  ;;  %v3631_v58 = vsub.f32 %v10278_v9, %v9797_v57  ;;  %vm4099_vm13 = vcmp.lt.s32.totalorder %v3523_v48, 0 }
 0x3b1   : > { %v4387_v56 = vxor.u32 2147483647, %v3523_v48  ;;  %v4477_v35 = vxor.u32 2147483647, %v3613_v17  ;;  %v5267_v63 = vor.u32 %v4979_v22, %v10169_v7  ;;  %v3540_v38 = vsub.f32 %v10170_v45, %v9833_v33  ;;  %v10315_v22 = vld [vmem:[#allocation32_spill] sm:$0xff] }
 0x3b2   : > { %vm6118_vm0 = vcmp.lt.s32.totalorder %v6117_v0, %v5250_v62  ;;  %v4494_v21 = vxor.u32 2147483647, %v3630_v24  ;;  %v3648_v27 = vsub.f32 %v10280_v1, %v9809_v41  ;;  %vm4206_vm14 = vcmp.lt.s32.totalorder %v3630_v24, 0 }
 0x3b3   : > { %v4675_v10 = vsel %vm4099_vm13, %v4387_v56, %v3523_v48  ;;  %v6119_v12 = vsel %vm6118_vm0, %v6117_v0, %v5250_v62  ;;  %vm6081_vm15 = vcmp.lt.s32.totalorder %v6080_v13, %v5267_v63  ;;  %vm4116_vm1 = vcmp.lt.s32.totalorder %v3540_v38, 0  ;;  %v10312_v0 = vld [vmem:[#allocation35_spill] sm:$0xff]  ;;  %v10314_v62 = vld [vmem:[#allocation26_spill] sm:$0xff] }
 0x3b4   : > { %v4980_v53 = vand.u32 4294967168, %v4675_v10  ;;  %v5069_v9 = vand.u32 4294967168, %v4764_v61  ;;  %v4495_v57 = vxor.u32 2147483647, %v3631_v58  ;;  %v4404_v42 = vxor.u32 2147483647, %v3540_v38 }
 0x3b5   : > { %v6082_v3 = vsel %vm6081_vm15, %v6080_v13, %v5267_v63  ;;  %v4765_v28 = vsel %vm4189_vm12, %v4477_v35, %v3613_v17  ;;  %vm4207_vm2 = vcmp.lt.s32.totalorder %v3631_v58, 0  ;;  %v3541_v33 = vsub.f32 %v10170_v45, %v9839_v44  ;;  %v10310_v44 = vld [vmem:[#allocation11_spill] sm:$0xff]  ;;  %v10313_v13 = vld [vmem:[#allocation16_spill] sm:$0xff] }
 0x3b6   : > { %v5268_v18 = vor.u32 %v4980_v53, %v10169_v7  ;;  %v4782_v32 = vsel %vm4206_vm14, %v4494_v21, %v3630_v24  ;;  %v4512_v41 = vxor.u32 2147483647, %v3648_v27  ;;  %v3649_v25 = vsub.f32 %v10280_v1, %v9814_v15  ;;  %v10311_v15 = vld [vmem:[#allocation25_spill] sm:$0xff] }
 0x3b7   : > { %v4692_v4 = vsel %vm4116_vm1, %v4404_v42, %v3540_v38  ;;  %vm4117_vm4 = vcmp.lt.s32.totalorder %v3541_v33, 0  ;;  %v4405_v34 = vxor.u32 2147483647, %v3541_v33  ;;  %v9936_v60 = vor.u32 %v5069_v9, %v10307_v55  ;;  %v10316_v38 = vld [vmem:[#allocation12_spill] sm:$0xff]  ;;  %v10318_v9 = vld [vmem:[#allocation23_spill] sm:$0xff] }
 0x3b8   : > { %vm6120_vm3 = vcmp.lt.s32.totalorder %v6119_v12, %v5268_v18  ;;  %v4997_v30 = vand.u32 4294967168, %v4692_v4  ;;  %v4783_v29 = vsel %vm4207_vm2, %v4495_v57, %v3631_v58  ;;  %vm4224_vm5 = vcmp.lt.s32.totalorder %v3648_v27, 0  ;;  %v10319_v57 = vld [vmem:[#allocation33_spill] sm:$0xff]  ;;  %v10321_v4 = vld [vmem:[#allocation36_spill] sm:$0xff] }
 0x3b9   : > { %v6121_v19 = vsel %vm6120_vm3, %v6119_v12, %v5268_v18  ;;  %v5070_v7 = vand.u32 4294967168, %v4765_v28  ;;  %v3666_v45 = vsub.f32 %v10309_v8, %v10308_v51  ;;  %v4693_v36 = vsel %vm4117_vm4, %v4405_v34, %v3541_v33  ;;  %v10317_v12 = vld [vmem:[#allocation9_spill] sm:$0xff] }
 0x3ba   : > { %v5285_v54 = vor.u32 %v4997_v30, %v10310_v44  ;;  %v5087_v23 = vand.u32 4294967168, %v4782_v32  ;;  %v4998_v1 = vand.u32 4294967168, %v4693_v36  ;;  %v3558_v49 = vsub.f32 %v10311_v15, %v9844_v47 }
 0x3bb   : > { %v3559_v52 = vsub.f32 %v10311_v15, %v9848_v14  ;;  %v5088_v59 = vand.u32 4294967168, %v4783_v29  ;;  %v4800_v11 = vsel %vm4224_vm5, %v4512_v41, %v3648_v27  ;;  %vm4225_vm6 = vcmp.lt.s32.totalorder %v3649_v25, 0 }
 0x3bc   : > { %vm6083_vm7 = vcmp.lt.s32.totalorder %v6082_v3, %v5285_v54  ;;  %v4513_v31 = vxor.u32 2147483647, %v3649_v25  ;;  %v5286_v39 = vor.u32 %v4998_v1, %v10310_v44  ;;  %vm4134_vm8 = vcmp.lt.s32.totalorder %v3558_v49, 0 }
 0x3bd   : > { %v4422_v50 = vxor.u32 2147483647, %v3558_v49  ;;  %v4530_v46 = vxor.u32 2147483647, %v3666_v45  ;;  %v3667_v17 = vsub.f32 %v10309_v8, %v10312_v0  ;;  %v6084_v2 = vsel %vm6083_vm7, %v6082_v3, %v5285_v54  ;;  %v10320_v3 = vld [vmem:[#allocation17_spill] sm:$0xff]  ;;  %v10323_v0 = vld [vmem:[#allocation19_spill] sm:$0xff] }
 0x3be   : > { %vm4135_vm9 = vcmp.lt.s32.totalorder %v3559_v52, 0  ;;  %vm4242_vm10 = vcmp.lt.s32.totalorder %v3666_v45, 0  ;;  %vm6122_vm11 = vcmp.lt.s32.totalorder %v6121_v19, %v5286_v39  ;;  %v4423_v5 = vxor.u32 2147483647, %v3559_v52 }
 0x3bf   : > { %v4710_v47 = vsel %vm4134_vm8, %v4422_v50, %v3558_v49  ;;  %v5358_v14 = vor.u32 %v5070_v7, %v10307_v55  ;;  %v5105_v37 = vand.u32 4294967168, %v4800_v11  ;;  %v6123_v16 = vsel %vm6122_vm11, %v6121_v19, %v5286_v39 }
 0x3c0   : > { %v5015_v24 = vand.u32 4294967168, %v4710_v47  ;;  %v5375_v48 = vor.u32 %v5087_v23, %v10313_v13  ;;  %v4801_v61 = vsel %vm4225_vm6, %v4513_v31, %v3649_v25  ;;  %v3684_v58 = vsub.f32 %v10315_v22, %v10314_v62 }
 0x3c1   : > { %v4711_v56 = vsel %vm4135_vm9, %v4423_v5, %v3559_v52  ;;  %v4818_v35 = vsel %vm4242_vm10, %v4530_v46, %v3666_v45  ;;  %v4531_v63 = vxor.u32 2147483647, %v3667_v17  ;;  %v5376_v10 = vor.u32 %v5088_v59, %v10313_v13 }
 0x3c2   : > { %v5303_v21 = vor.u32 %v5015_v24, %v10316_v38  ;;  %v5016_v27 = vand.u32 4294967168, %v4711_v56  ;;  %vm4243_vm12 = vcmp.lt.s32.totalorder %v3667_v17, 0  ;;  %v3685_v53 = vsub.f32 %v10315_v22, %v10317_v12 }
 0x3c3   : > { %v3702_v42 = vsub.f32 %v10319_v57, %v10318_v9  ;;  %v5393_v28 = vor.u32 %v5105_v37, %v10320_v3  ;;  %v5106_v18 = vand.u32 4294967168, %v4801_v61  ;;  %v5123_v32 = vand.u32 4294967168, %v4818_v35  ;;  %v10324_v37 = vld [vmem:[#allocation20_spill] sm:$0xff] }
 0x3c4   : > { %vm6085_vm13 = vcmp.lt.s32.totalorder %v6084_v2, %v5303_v21  ;;  %v5304_v33 = vor.u32 %v5016_v27, %v10316_v38  ;;  %v4548_v41 = vxor.u32 2147483647, %v3684_v58  ;;  %v3703_v30 = vsub.f32 %v10319_v57, %v10321_v4 }
 0x3c5   : > { %v6086_v25 = vsel %vm6085_vm13, %v6084_v2, %v5303_v21  ;;  %v4819_v34 = vsel %vm4243_vm12, %v4531_v63, %v3667_v17  ;;  %vm4260_vm0 = vcmp.lt.s32.totalorder %v3684_v58, 0  ;;  %v4549_v55 = vxor.u32 2147483647, %v3685_v53 }
 0x3c6   : > { %vm6087_vm14 = vcmp.lt.s32.totalorder %v6086_v25, %v9902_v26  ;;  %vm6124_vm15 = vcmp.lt.s32.totalorder %v6123_v16, %v5304_v33  ;;  %v4566_v19 = vxor.u32 2147483647, %v3702_v42  ;;  %vm4261_vm1 = vcmp.lt.s32.totalorder %v3685_v53, 0 }
 0x3c7   : > { %v6088_v29 = vsel %vm6087_vm14, %v6086_v25, %v9902_v26  ;;  %v6125_v7 = vsel %vm6124_vm15, %v6123_v16, %v5304_v33  ;;  %vm4278_vm3 = vcmp.lt.s32.totalorder %v3702_v42, 0  ;;  %v4836_v51 = vsel %vm4260_vm0, %v4548_v41, %v3684_v58 }
 0x3c8   : > { %vm6089_vm2 = vcmp.lt.s32.totalorder %v6088_v29, %v9911_v40  ;;  %vm6126_vm4 = vcmp.lt.s32.totalorder %v6125_v7, %v9908_v20  ;;  %v4567_v44 = vxor.u32 2147483647, %v3703_v30  ;;  %v5124_v54 = vand.u32 4294967168, %v4819_v34 }
 0x3c9   : > { %v6090_v8 = vsel %vm6089_vm2, %v6088_v29, %v9911_v40  ;;  %v6127_v45 = vsel %vm6126_vm4, %v6125_v7, %v9908_v20  ;;  %vm4279_vm7 = vcmp.lt.s32.totalorder %v3703_v30, 0  ;;  %v4837_v26 = vsel %vm4261_vm1, %v4549_v55, %v3685_v53  ;;  %v10322_v40 = vld [vmem:[#allocation18_spill] sm:$0xff] }
 0x3ca   : > { %vm6091_vm5 = vcmp.lt.s32.totalorder %v6090_v8, %v9936_v60  ;;  %vm6128_vm6 = vcmp.lt.s32.totalorder %v6127_v45, %v9918_v43  ;;  %v4854_v23 = vsel %vm4278_vm3, %v4566_v19, %v3702_v42  ;;  %v5394_v15 = vor.u32 %v5106_v18, %v10320_v3 }
 0x3cb   : > { %v6092_v36 = vsel %vm6091_vm5, %v6090_v8, %v9936_v60  ;;  %v6129_v1 = vsel %vm6128_vm6, %v6127_v45, %v9918_v43  ;;  %v5141_v49 = vand.u32 4294967168, %v4836_v51  ;;  %v5411_v20 = vor.u32 %v5123_v32, %v10322_v40 }
 0x3cc   : > { %vm6093_vm8 = vcmp.lt.s32.totalorder %v6092_v36, %v5375_v48  ;;  %vm6130_vm9 = vcmp.lt.s32.totalorder %v6129_v1, %v5358_v14  ;;  %v4855_v11 = vsel %vm4279_vm7, %v4567_v44, %v3703_v30  ;;  %v5142_v31 = vand.u32 4294967168, %v4837_v26 }
 0x3cd   : > { %v6094_v52 = vsel %vm6093_vm8, %v6092_v36, %v5375_v48  ;;  %v6131_v59 = vsel %vm6130_vm9, %v6129_v1, %v5358_v14  ;;  %v5159_v39 = vand.u32 4294967168, %v4854_v23  ;;  %v5412_v50 = vor.u32 %v5124_v54, %v10322_v40 }
 0x3ce   : > { %vm6095_vm10 = vcmp.lt.s32.totalorder %v6094_v52, %v5393_v28  ;;  %vm6132_vm11 = vcmp.lt.s32.totalorder %v6131_v59, %v5376_v10  ;;  %v5429_v43 = vor.u32 %v5141_v49, %v10323_v0  ;;  %v5160_v17 = vand.u32 4294967168, %v4855_v11 }
 0x3cf   : > { %v6096_v60 = vsel %vm6095_vm10, %v6094_v52, %v5393_v28  ;;  %v6133_v46 = vsel %vm6132_vm11, %v6131_v59, %v5376_v10  ;;  %v5430_v5 = vor.u32 %v5142_v31, %v10323_v0  ;;  %v5447_v14 = vor.u32 %v5159_v39, %v10324_v37 }
 0x3d0   : > { %vm6097_vm12 = vcmp.lt.s32.totalorder %v6096_v60, %v5411_v20  ;;  %vm6134_vm13 = vcmp.lt.s32.totalorder %v6133_v46, %v5394_v15  ;;  %v5448_v13 = vor.u32 %v5160_v17, %v10324_v37  ;;  %v10325_v18 = vlaneseq }
 0x3d1   : > { %v6098_v2 = vsel %vm6097_vm12, %v6096_v60, %v5411_v20  ;;  %v6135_v47 = vsel %vm6134_vm13, %v6133_v46, %v5394_v15 }
 0x3d2   : > { %vm6099_vm0 = vcmp.lt.s32.totalorder %v6098_v2, %v5429_v43  ;;  %vm6136_vm14 = vcmp.lt.s32.totalorder %v6135_v47, %v5412_v50  ;;  %vm6286_vm9 = vcmp.lt.s32.totalorder %v10325_v18, 256 }
 0x3d3   : > { %v6100_v24 = vsel %vm6099_vm0, %v6098_v2, %v5429_v43  ;;  %v6137_v16 = vsel %vm6136_vm14, %v6135_v47, %v5412_v50 }
 0x3d4   : > { %vm6101_vm15 = vcmp.lt.s32.totalorder %v6100_v24, %v5447_v14  ;;  %vm6138_vm1 = vcmp.lt.s32.totalorder %v6137_v16, %v5430_v5 }
 0x3d5   : > { %v6102_v48 = vsel %vm6101_vm15, %v6100_v24, %v5447_v14  ;;  %v6139_v61 = vsel %vm6138_vm1, %v6137_v16, %v5430_v5 }
 0x3d6   : > { %v6103_v62 = vrot.slane %v6102_v48, 4  ;;  %vm6140_vm2 = vcmp.lt.s32.totalorder %v6139_v61, %v5448_v13 }
 0x3d7   : > { %v6141_v22 = vsel %vm6140_vm2, %v6139_v61, %v5448_v13 }
 0x3d8   : > { %vm6104_vm3 = vcmp.lt.s32.totalorder %v6102_v48, %v6103_v62  ;;  %v6142_v58 = vrot.slane %v6141_v22, 4 }
 0x3d9   : > { %v6105_v56 = vsel %vm6104_vm3, %v6102_v48, %v6103_v62 }
 0x3da   : > { %v6106_v35 = vrot.slane %v6105_v56, 2  ;;  %vm6143_vm4 = vcmp.lt.s32.totalorder %v6141_v22, %v6142_v58 }
 0x3db   : > { %v6144_v63 = vsel %vm6143_vm4, %v6141_v22, %v6142_v58 }
 0x3dc   : > { %vm6107_vm5 = vcmp.lt.s32.totalorder %v6105_v56, %v6106_v35  ;;  %v6145_v38 = vrot.slane %v6144_v63, 2 }
 0x3dd   : > { %v6108_v21 = vsel %vm6107_vm5, %v6105_v56, %v6106_v35 }
 0x3de   : > { %v6109_v27 = vrot.slane %v6108_v21, 1  ;;  %vm6146_vm6 = vcmp.lt.s32.totalorder %v6144_v63, %v6145_v38 }
 0x3df   : > { %v6147_v10 = vsel %vm6146_vm6, %v6144_v63, %v6145_v38 }
 0x3e0   : > { %vm6110_vm7 = vcmp.lt.s32.totalorder %v6108_v21, %v6109_v27  ;;  %v6148_v12 = vrot.slane %v6147_v10, 1 }
 0x3e1   : > { %v6111_v53 = vsel %vm6110_vm7, %v6108_v21, %v6109_v27 }
 0x3e2   : > { %v6167_v9 = vand.u32 127, %v6111_v53  ;;  %vm6149_vm8 = vcmp.lt.s32.totalorder %v6147_v10, %v6148_v12 }
 0x3e3   : > { %v6150_v57 = vsel %vm6149_vm8, %v6147_v10, %v6148_v12 }
 0x3e4   : > { %v6168_v42 = vand.u32 127, %v6150_v57 }
 0x3e6   : > { %v6267_v3 = vcombine.low %v6167_v9, %v6168_v42 }
 0x3e8   : > { %v6274_v28 = vrot.slane %v6267_v3, %v10302_v6 }
 0x3ea   : > { %v6281_v33 = vrot.slane %v6274_v28, %v10302_v6 }
 0x3ec   : > { %6288 = vst.msk [vmem:[%s9165_s30 + $0x10] sm:$0x3] %vm6286_vm9, %v6281_v33 }
 0x3ed PF: > { %s13_s12 = sadd.s32 1, %s7426_s12  }
 0x3ee   : > { %p10_p5 = scmp.ge.s32.totalorder %s13_s12, 4  }
 0x3f0   :  { %12 = sbr.rel (!%p10_p5) target bundleno = 1 (0x1), region = 62 }

</bundles_post_ra>
